<compile_context>
chip_gen: v5e
topology: v5e:2x2
jax: 0.10.0
libtpu: 0.0.40
codegen_flags: <defaults>
</compile_context>

<pallas_src>
import numpy as np
import jax
import jax.numpy as jnp
from jax.experimental import pallas as pl
from jax.experimental.pallas import tpu as pltpu

STATE_LEN = 362
SEQ_LEN = 360
CONV_SHAPES = [(4, 1, 5), (8, 4, 5), (16, 8, 5), (32, 16, 5)]   # (C_out, C_in, K) torch layout
CONV_LIN = [360, 120, 40, 13]                                    # conv input length per layer
POOL_M = [480, 320, 208, 128]                                    # Lo * C_out per layer


# ----------------------------------------------------------------------------- kernel
def _twin_q_kernel(state_ref, action_ref,
                   t1, c1, t2, c2, t3, c3, t4, c4,
                   w1, b1, w2h, w2a, w2g, b2, w3, b3, w4, b4, w5, b5,
                   out_ref):
    s = state_ref[...]                      # (B, 362) f32
    x = s[:, :SEQ_LEN]                      # (B, 360)  conv input (C=1)
    goal = s[:, SEQ_LEN:STATE_LEN]          # (B, 2)
    act = action_ref[...]                   # (B, 2)

    def mm(a, w):                           # bf16 MXU matmul, f32 accumulate
        return jnp.dot(a.astype(jnp.bfloat16), w, preferred_element_type=jnp.float32)

    def conv_relu_pool(h, t_ref, b_ref):
        # conv1d(k=5, pad=2) as 3 per-phase Toeplitz matmuls; MaxPool1d(3,3) == max of phases.
        hb = h.astype(jnp.bfloat16)
        b = b_ref[...]
        def phase(p):
            y = jnp.dot(hb, t_ref[p], preferred_element_type=jnp.float32) + b
            return jnp.maximum(y, 0.0)                         # ReLU(conv)
        return jnp.maximum(jnp.maximum(phase(0), phase(1)), phase(2))   # MaxPool (>=0 already)

    h = conv_relu_pool(x, t1, c1)           # (B, 480)
    h = conv_relu_pool(h, t2, c2)           # (B, 320)
    h = conv_relu_pool(h, t3, c3)           # (B, 208)
    h = conv_relu_pool(h, t4, c4)           # (B, 128)

    # linear1 (weight pre-permuted to consume the (pos, chan) flatten directly)
    h = jnp.maximum(mm(h, w1[...]) + b1[...], 0.0)             # (B, 32)

    # cat([x, action, goal], 1) @ W2 with W2 pre-split on the host
    z = mm(h, w2h[...]) + mm(act, w2a[...]) + mm(goal, w2g[...]) + b2[...]
    h = jnp.maximum(z, 0.0)

    h = jnp.maximum(mm(h, w3[...]) + b3[...], 0.0)
    h = jnp.maximum(mm(h, w4[...]) + b4[...], 0.0)
    out_ref[...] = mm(h, w5[...]) + b5[...]                    # (B, 1)


def _run_twin(state, action, packed):
    B = state.shape[0]
    param_specs = [
        pl.BlockSpec((None,) + p.shape[1:],
                     lambda h, n=p.ndim - 1: (h,) + (0,) * n)   # head axis on the grid
        for p in packed
    ]
    out = pl.pallas_call(
        _twin_q_kernel,
        out_shape=jax.ShapeDtypeStruct((2, B, 1), jnp.float32),
        grid=(2,),
        in_specs=[pl.BlockSpec((B, STATE_LEN), lambda h: (0, 0)),
                  pl.BlockSpec((B, 2), lambda h: (0, 0))] + param_specs,
        out_specs=pl.BlockSpec((None, B, 1), lambda h: (h, 0, 0)),
        compiler_params=pltpu.CompilerParams(
            dimension_semantics=("parallel",),            # heads -> 2 TCs on v7x
            vmem_limit_bytes=32 * 1024 * 1024),
    )(state, action, *packed)
    return out


@jax.jit
def qnetwork_forward(state, action, packed):
    """Forward pass only; `packed` is the cached, pre-packed parameter tuple."""
    B = state.size // STATE_LEN
    state = jnp.reshape(state, (B, STATE_LEN)).astype(jnp.float32)
    action = action.astype(jnp.float32)
    out = _run_twin(state, action, packed)
    return out[0], out[1]


# ------------------------------------------------------------------- parameter setup (glue)
def make_toeplitz_phases(W, b, L_in):
    """Conv1d(k=5,pad=2) as 3 pool-phase Toeplitz matrices (3, L_in*C_in, Lo*C_out).

    Row ordering = flattened (position, channel) input; column ordering (per phase) =
    (out position lo, out channel), so the pooled output feeds the next layer directly.
    """
    C_out, C_in, K = W.shape
    P = (K - 1) // 2
    Lo = L_in // 3
    m = Lo * C_out
    T = np.zeros((3, L_in * C_in, m), dtype=np.float32)
    Wt = np.asarray(W, np.float32).transpose(1, 0, 2)            # (C_in, C_out, K)
    for p in range(3):
        for lo in range(Lo):
            l = 3 * lo + p                                       # conv output position
            col0 = lo * C_out
            for k in range(K):
                l_in = l + k - P
                if 0 <= l_in < L_in:
                    T[p, l_in * C_in:(l_in + 1) * C_in, col0:col0 + C_out] = Wt[:, :, k]
    bias = np.tile(np.asarray(b, np.float32), Lo)                # (m,)
    return T, bias


def init_head_params(key, hidden_dim):
    """Deterministic synthetic init, PyTorch layouts: conv (C_out,C_in,K); linear (out,in), bias=0.
    Weights are round-tripped through bf16 once (they live in bf16 on device)."""
    keys = jax.random.split(key, 16)
    ki = 0
    convs = []
    for (co, ci, kk) in CONV_SHAPES:
        bound = 1.0 / np.sqrt(ci * kk)
        w = jax.random.uniform(keys[ki], (co, ci, kk), jnp.float32, -bound, bound); ki += 1
        w = w.astype(jnp.bfloat16).astype(jnp.float32)
        b = jax.random.uniform(keys[ki], (co,), jnp.float32, -bound, bound); ki += 1
        convs.append((w, b))

    def xavier(k, out_f, in_f):
        bound = np.sqrt(6.0 / (in_f + out_f))
        w = jax.random.uniform(k, (out_f, in_f), jnp.float32, -bound, bound)
        return w.astype(jnp.bfloat16).astype(jnp.float32)

    lin_shapes = [(32, 128), (hidden_dim, 36), (hidden_dim, hidden_dim),
                  (hidden_dim, hidden_dim), (1, hidden_dim)]
    linears = []
    for (o, i) in lin_shapes:
        w = xavier(keys[ki], o, i); ki += 1
        linears.append((w, jnp.zeros((o,), jnp.float32)))          # weights_init_: bias = 0
    return convs, linears


def pack_head_params(convs, linears):
    """Torch-layout params -> kernel matmul operands (weights bf16, biases f32)."""
    params = []
    for (w, b), L_in in zip(convs, CONV_LIN):
        T, bt = make_toeplitz_phases(np.asarray(w), np.asarray(b), L_in)
        params += [jnp.asarray(T, jnp.bfloat16),
                   jnp.asarray(bt[None, :], jnp.float32)]

    # linear1: torch flatten is channel-major (c*4 + l); kernel features are position-major (l*32 + c)
    lw1, lb1 = linears[0]
    W1 = np.asarray(lw1, np.float32).reshape(32, 32, 4).transpose(2, 1, 0).reshape(128, 32)
    params += [jnp.asarray(W1, jnp.bfloat16),
               jnp.asarray(np.asarray(lb1, np.float32)[None, :])]

    # linear2: pre-split (h rows | action rows | goal rows)
    lw2, lb2 = linears[1]
    W2 = np.asarray(lw2, np.float32).T                              # (36, H)
    params += [jnp.asarray(W2[0:32], jnp.bfloat16),
               jnp.asarray(W2[32:34], jnp.bfloat16),
               jnp.asarray(W2[34:36], jnp.bfloat16),
               jnp.asarray(np.asarray(lb2, np.float32)[None, :])]

    for (w, b) in linears[2:]:
        params += [jnp.asarray(np.asarray(w, np.float32).T, jnp.bfloat16),
                   jnp.asarray(np.asarray(b, np.float32)[None, :])]
    return params


def pack_twin_params(head1, head2):
    """Pack both heads ONCE and stack per-parameter along a leading head axis (grid axis)."""
    p1 = pack_head_params(*head1)
    p2 = pack_head_params(*head2)
    return tuple(jnp.stack([a, b], axis=0) for a, b in zip(p1, p2))


# --------------------------------------------------------------------- plain-JAX reference
def reference_head(state, action, convs, linears):
    B = state.shape[0]
    s = state.reshape(B, 1, STATE_LEN)
    goal = s[:, 0, SEQ_LEN:STATE_LEN]
    h = s[:, :, :SEQ_LEN]
    for w, b in convs:
        h = jax.lax.conv_general_dilated(h, w, (1,), [(2, 2)],
                                         dimension_numbers=('NCH', 'OIH', 'NCH')) + b[None, :, None]
        h = jnp.maximum(h, 0.0)
        h = jax.lax.reduce_window(h, -jnp.inf, jax.lax.max, (1, 1, 3), (1, 1, 3), 'VALID')
        h = jnp.maximum(h, 0.0)
    h = h.reshape(B, 128)                                          # torch channel-major flatten
    lw1, lb1 = linears[0]
    h = jnp.maximum(h @ lw1.T + lb1, 0.0)
    h = jnp.concatenate([h, action, goal], axis=1)
    for w, b in linears[1:4]:
        h = jnp.maximum(h @ w.T + b, 0.0)
    w5, b5 = linears[4]
    return h @ w5.T + b5


if __name__ == "__main__":
    B, hidden_dim = 2, 32
    key = jax.random.PRNGKey(0)
    k_state, k_action, k_h1, k_h2 = jax.random.split(key, 4)

    state = jax.random.normal(k_state, (B, STATE_LEN), jnp.float32)
    action = jax.random.uniform(k_action, (B, 2), jnp.float32, -1.0, 1.0)

    head1 = init_head_params(k_h1, hidden_dim)
    head2 = init_head_params(k_h2, hidden_dim)

    # Host-side packing (Toeplitz build + bf16 cast) happens exactly once and is cached.
    packed = pack_twin_params(head1, head2)

    q1, q2 = qnetwork_forward(state, action, packed)
    q1, q2 = jax.block_until_ready((q1, q2))

    r1 = reference_head(state, action, *head1)
    r2 = reference_head(state, action, *head2)
    # bf16 activations into the MXU (f32 accumulate) -> slightly looser tolerance than pure f32.
    np.testing.assert_allclose(np.asarray(q1), np.asarray(r1), rtol=2e-2, atol=2e-2)
    np.testing.assert_allclose(np.asarray(q2), np.asarray(r2), rtol=2e-2, atol=2e-2)

    print("KERNEL_OK")
</pallas_src>

<mosaic_0001>
module attributes {stable_mosaic.version = 11 : i64} {
  func.func @_twin_q_kernel(%arg0: i32, %arg1: memref<2x362xf32, #tpu.memory_space<vmem>>, %arg2: memref<2x2xf32, #tpu.memory_space<vmem>>, %arg3: memref<1x3x360x480xbf16, #tpu.memory_space<vmem>>, %arg4: memref<1x1x480xf32, #tpu.memory_space<vmem>>, %arg5: memref<1x3x480x320xbf16, #tpu.memory_space<vmem>>, %arg6: memref<1x1x320xf32, #tpu.memory_space<vmem>>, %arg7: memref<1x3x320x208xbf16, #tpu.memory_space<vmem>>, %arg8: memref<1x1x208xf32, #tpu.memory_space<vmem>>, %arg9: memref<1x3x208x128xbf16, #tpu.memory_space<vmem>>, %arg10: memref<1x1x128xf32, #tpu.memory_space<vmem>>, %arg11: memref<1x128x32xbf16, #tpu.memory_space<vmem>>, %arg12: memref<1x1x32xf32, #tpu.memory_space<vmem>>, %arg13: memref<1x32x32xbf16, #tpu.memory_space<vmem>>, %arg14: memref<1x2x32xbf16, #tpu.memory_space<vmem>>, %arg15: memref<1x2x32xbf16, #tpu.memory_space<vmem>>, %arg16: memref<1x1x32xf32, #tpu.memory_space<vmem>>, %arg17: memref<1x32x32xbf16, #tpu.memory_space<vmem>>, %arg18: memref<1x1x32xf32, #tpu.memory_space<vmem>>, %arg19: memref<1x32x32xbf16, #tpu.memory_space<vmem>>, %arg20: memref<1x1x32xf32, #tpu.memory_space<vmem>>, %arg21: memref<1x32x1xbf16, #tpu.memory_space<vmem>>, %arg22: memref<1x1x1xf32, #tpu.memory_space<vmem>>, %arg23: memref<1x2x1xf32, #tpu.memory_space<vmem>>) attributes {dimension_semantics = [#tpu.dimension_semantics<parallel>], iteration_bounds = array<i64: 2>, scalar_prefetch = 0 : i64, scratch_operands = 0 : i64, tpu.core_type = #tpu.core_type<tc>, window_params = [{pipeline_mode = #tpu.pipeline_mode<synchronous>, transform_indices = @transform_0, window_bounds = array<i64: 2, 362>}, {pipeline_mode = #tpu.pipeline_mode<synchronous>, transform_indices = @transform_1, window_bounds = array<i64: 2, 2>}, {transform_indices = @transform_2, window_bounds = array<i64: 1, 3, 360, 480>}, {transform_indices = @transform_3, window_bounds = array<i64: 1, 1, 480>}, {transform_indices = @transform_4, window_bounds = array<i64: 1, 3, 480, 320>}, {transform_indices = @transform_5, window_bounds = array<i64: 1, 1, 320>}, {transform_indices = @transform_6, window_bounds = array<i64: 1, 3, 320, 208>}, {transform_indices = @transform_7, window_bounds = array<i64: 1, 1, 208>}, {transform_indices = @transform_8, window_bounds = array<i64: 1, 3, 208, 128>}, {transform_indices = @transform_9, window_bounds = array<i64: 1, 1, 128>}, {transform_indices = @transform_10, window_bounds = array<i64: 1, 128, 32>}, {transform_indices = @transform_11, window_bounds = array<i64: 1, 1, 32>}, {transform_indices = @transform_12, window_bounds = array<i64: 1, 32, 32>}, {transform_indices = @transform_13, window_bounds = array<i64: 1, 2, 32>}, {transform_indices = @transform_14, window_bounds = array<i64: 1, 2, 32>}, {transform_indices = @transform_15, window_bounds = array<i64: 1, 1, 32>}, {transform_indices = @transform_16, window_bounds = array<i64: 1, 32, 32>}, {transform_indices = @transform_17, window_bounds = array<i64: 1, 1, 32>}, {transform_indices = @transform_18, window_bounds = array<i64: 1, 32, 32>}, {transform_indices = @transform_19, window_bounds = array<i64: 1, 1, 32>}, {transform_indices = @transform_20, window_bounds = array<i64: 1, 32, 1>}, {transform_indices = @transform_21, window_bounds = array<i64: 1, 1, 1>}, {transform_indices = @transform_22, window_bounds = array<i64: 1, 2, 1>}]} {
    %c0 = arith.constant 0 : index
    %c0_0 = arith.constant 0 : index
    %0 = vector.load %arg1[%c0, %c0_0] : memref<2x362xf32, #tpu.memory_space<vmem>>, vector<2x362xf32>
    %1 = vector.extract_strided_slice %0 {offsets = [0, 0], sizes = [2, 360], strides = [1, 1]} : vector<2x362xf32> to vector<2x360xf32>
    %2 = vector.extract_strided_slice %0 {offsets = [0, 360], sizes = [2, 2], strides = [1, 1]} : vector<2x362xf32> to vector<2x2xf32>
    %c0_1 = arith.constant 0 : index
    %c0_2 = arith.constant 0 : index
    %3 = vector.load %arg2[%c0_1, %c0_2] : memref<2x2xf32, #tpu.memory_space<vmem>>, vector<2x2xf32>
    %4 = arith.truncf %1 : vector<2x360xf32> to vector<2x360xbf16>
    %c0_3 = arith.constant 0 : index
    %c0_4 = arith.constant 0 : index
    %c0_5 = arith.constant 0 : index
    %5 = vector.load %arg4[%c0_3, %c0_4, %c0_5] : memref<1x1x480xf32, #tpu.memory_space<vmem>>, vector<1x1x480xf32>
    %6 = vector.shape_cast %5 : vector<1x1x480xf32> to vector<1x480xf32>
    %c0_6 = arith.constant 0 : index
    %c0_7 = arith.constant 0 : index
    %c0_8 = arith.constant 0 : index
    %c0_9 = arith.constant 0 : index
    %7 = vector.load %arg3[%c0_6, %c0_7, %c0_8, %c0_9] : memref<1x3x360x480xbf16, #tpu.memory_space<vmem>>, vector<1x1x360x480xbf16>
    %8 = vector.shape_cast %7 : vector<1x1x360x480xbf16> to vector<360x480xbf16>
    %cst = arith.constant dense<0.000000e+00> : vector<2x480xf32>
    %9 = tpu.matmul %4, %8, %cst {dimension_numbers = #tpu.dot_dimension_numbers<[1], [0], [0], [1], [0, 0, 1, 1], [], []>} : vector<2x360xbf16>, vector<360x480xbf16>, vector<2x480xf32> -> vector<2x480xf32>
    %10 = vector.broadcast %6 : vector<1x480xf32> to vector<2x480xf32>
    %11 = arith.addf %9, %10 : vector<2x480xf32>
    %cst_10 = arith.constant 0.000000e+00 : f32
    %12 = vector.broadcast %cst_10 : f32 to vector<2x480xf32>
    %13 = arith.maximumf %11, %12 : vector<2x480xf32>
    %c0_11 = arith.constant 0 : index
    %c1 = arith.constant 1 : index
    %c0_12 = arith.constant 0 : index
    %c0_13 = arith.constant 0 : index
    %14 = vector.load %arg3[%c0_11, %c1, %c0_12, %c0_13] : memref<1x3x360x480xbf16, #tpu.memory_space<vmem>>, vector<1x1x360x480xbf16>
    %15 = vector.shape_cast %14 : vector<1x1x360x480xbf16> to vector<360x480xbf16>
    %cst_14 = arith.constant dense<0.000000e+00> : vector<2x480xf32>
    %16 = tpu.matmul %4, %15, %cst_14 {dimension_numbers = #tpu.dot_dimension_numbers<[1], [0], [0], [1], [0, 0, 1, 1], [], []>} : vector<2x360xbf16>, vector<360x480xbf16>, vector<2x480xf32> -> vector<2x480xf32>
    %17 = vector.broadcast %6 : vector<1x480xf32> to vector<2x480xf32>
    %18 = arith.addf %16, %17 : vector<2x480xf32>
    %cst_15 = arith.constant 0.000000e+00 : f32
    %19 = vector.broadcast %cst_15 : f32 to vector<2x480xf32>
    %20 = arith.maximumf %18, %19 : vector<2x480xf32>
    %21 = arith.maximumf %13, %20 : vector<2x480xf32>
    %c0_16 = arith.constant 0 : index
    %c2 = arith.constant 2 : index
    %c0_17 = arith.constant 0 : index
    %c0_18 = arith.constant 0 : index
    %22 = vector.load %arg3[%c0_16, %c2, %c0_17, %c0_18] : memref<1x3x360x480xbf16, #tpu.memory_space<vmem>>, vector<1x1x360x480xbf16>
    %23 = vector.shape_cast %22 : vector<1x1x360x480xbf16> to vector<360x480xbf16>
    %cst_19 = arith.constant dense<0.000000e+00> : vector<2x480xf32>
    %24 = tpu.matmul %4, %23, %cst_19 {dimension_numbers = #tpu.dot_dimension_numbers<[1], [0], [0], [1], [0, 0, 1, 1], [], []>} : vector<2x360xbf16>, vector<360x480xbf16>, vector<2x480xf32> -> vector<2x480xf32>
    %25 = vector.broadcast %6 : vector<1x480xf32> to vector<2x480xf32>
    %26 = arith.addf %24, %25 : vector<2x480xf32>
    %cst_20 = arith.constant 0.000000e+00 : f32
    %27 = vector.broadcast %cst_20 : f32 to vector<2x480xf32>
    %28 = arith.maximumf %26, %27 : vector<2x480xf32>
    %29 = arith.maximumf %21, %28 : vector<2x480xf32>
    %30 = arith.truncf %29 : vector<2x480xf32> to vector<2x480xbf16>
    %c0_21 = arith.constant 0 : index
    %c0_22 = arith.constant 0 : index
    %c0_23 = arith.constant 0 : index
    %31 = vector.load %arg6[%c0_21, %c0_22, %c0_23] : memref<1x1x320xf32, #tpu.memory_space<vmem>>, vector<1x1x320xf32>
    %32 = vector.shape_cast %31 : vector<1x1x320xf32> to vector<1x320xf32>
    %c0_24 = arith.constant 0 : index
    %c0_25 = arith.constant 0 : index
    %c0_26 = arith.constant 0 : index
    %c0_27 = arith.constant 0 : index
    %33 = vector.load %arg5[%c0_24, %c0_25, %c0_26, %c0_27] : memref<1x3x480x320xbf16, #tpu.memory_space<vmem>>, vector<1x1x480x320xbf16>
    %34 = vector.shape_cast %33 : vector<1x1x480x320xbf16> to vector<480x320xbf16>
    %cst_28 = arith.constant dense<0.000000e+00> : vector<2x320xf32>
    %35 = tpu.matmul %30, %34, %cst_28 {dimension_numbers = #tpu.dot_dimension_numbers<[1], [0], [0], [1], [0, 0, 1, 1], [], []>} : vector<2x480xbf16>, vector<480x320xbf16>, vector<2x320xf32> -> vector<2x320xf32>
    %36 = vector.broadcast %32 : vector<1x320xf32> to vector<2x320xf32>
    %37 = arith.addf %35, %36 : vector<2x320xf32>
    %cst_29 = arith.constant 0.000000e+00 : f32
    %38 = vector.broadcast %cst_29 : f32 to vector<2x320xf32>
    %39 = arith.maximumf %37, %38 : vector<2x320xf32>
    %c0_30 = arith.constant 0 : index
    %c1_31 = arith.constant 1 : index
    %c0_32 = arith.constant 0 : index
    %c0_33 = arith.constant 0 : index
    %40 = vector.load %arg5[%c0_30, %c1_31, %c0_32, %c0_33] : memref<1x3x480x320xbf16, #tpu.memory_space<vmem>>, vector<1x1x480x320xbf16>
    %41 = vector.shape_cast %40 : vector<1x1x480x320xbf16> to vector<480x320xbf16>
    %cst_34 = arith.constant dense<0.000000e+00> : vector<2x320xf32>
    %42 = tpu.matmul %30, %41, %cst_34 {dimension_numbers = #tpu.dot_dimension_numbers<[1], [0], [0], [1], [0, 0, 1, 1], [], []>} : vector<2x480xbf16>, vector<480x320xbf16>, vector<2x320xf32> -> vector<2x320xf32>
    %43 = vector.broadcast %32 : vector<1x320xf32> to vector<2x320xf32>
    %44 = arith.addf %42, %43 : vector<2x320xf32>
    %cst_35 = arith.constant 0.000000e+00 : f32
    %45 = vector.broadcast %cst_35 : f32 to vector<2x320xf32>
    %46 = arith.maximumf %44, %45 : vector<2x320xf32>
    %47 = arith.maximumf %39, %46 : vector<2x320xf32>
    %c0_36 = arith.constant 0 : index
    %c2_37 = arith.constant 2 : index
    %c0_38 = arith.constant 0 : index
    %c0_39 = arith.constant 0 : index
    %48 = vector.load %arg5[%c0_36, %c2_37, %c0_38, %c0_39] : memref<1x3x480x320xbf16, #tpu.memory_space<vmem>>, vector<1x1x480x320xbf16>
    %49 = vector.shape_cast %48 : vector<1x1x480x320xbf16> to vector<480x320xbf16>
    %cst_40 = arith.constant dense<0.000000e+00> : vector<2x320xf32>
    %50 = tpu.matmul %30, %49, %cst_40 {dimension_numbers = #tpu.dot_dimension_numbers<[1], [0], [0], [1], [0, 0, 1, 1], [], []>} : vector<2x480xbf16>, vector<480x320xbf16>, vector<2x320xf32> -> vector<2x320xf32>
    %51 = vector.broadcast %32 : vector<1x320xf32> to vector<2x320xf32>
    %52 = arith.addf %50, %51 : vector<2x320xf32>
    %cst_41 = arith.constant 0.000000e+00 : f32
    %53 = vector.broadcast %cst_41 : f32 to vector<2x320xf32>
    %54 = arith.maximumf %52, %53 : vector<2x320xf32>
    %55 = arith.maximumf %47, %54 : vector<2x320xf32>
    %56 = arith.truncf %55 : vector<2x320xf32> to vector<2x320xbf16>
    %c0_42 = arith.constant 0 : index
    %c0_43 = arith.constant 0 : index
    %c0_44 = arith.constant 0 : index
    %57 = vector.load %arg8[%c0_42, %c0_43, %c0_44] : memref<1x1x208xf32, #tpu.memory_space<vmem>>, vector<1x1x208xf32>
    %58 = vector.shape_cast %57 : vector<1x1x208xf32> to vector<1x208xf32>
    %c0_45 = arith.constant 0 : index
    %c0_46 = arith.constant 0 : index
    %c0_47 = arith.constant 0 : index
    %c0_48 = arith.constant 0 : index
    %59 = vector.load %arg7[%c0_45, %c0_46, %c0_47, %c0_48] : memref<1x3x320x208xbf16, #tpu.memory_space<vmem>>, vector<1x1x320x208xbf16>
    %60 = vector.shape_cast %59 : vector<1x1x320x208xbf16> to vector<320x208xbf16>
    %cst_49 = arith.constant dense<0.000000e+00> : vector<2x208xf32>
    %61 = tpu.matmul %56, %60, %cst_49 {dimension_numbers = #tpu.dot_dimension_numbers<[1], [0], [0], [1], [0, 0, 1, 1], [], []>} : vector<2x320xbf16>, vector<320x208xbf16>, vector<2x208xf32> -> vector<2x208xf32>
    %62 = vector.broadcast %58 : vector<1x208xf32> to vector<2x208xf32>
    %63 = arith.addf %61, %62 : vector<2x208xf32>
    %cst_50 = arith.constant 0.000000e+00 : f32
    %64 = vector.broadcast %cst_50 : f32 to vector<2x208xf32>
    %65 = arith.maximumf %63, %64 : vector<2x208xf32>
    %c0_51 = arith.constant 0 : index
    %c1_52 = arith.constant 1 : index
    %c0_53 = arith.constant 0 : index
    %c0_54 = arith.constant 0 : index
    %66 = vector.load %arg7[%c0_51, %c1_52, %c0_53, %c0_54] : memref<1x3x320x208xbf16, #tpu.memory_space<vmem>>, vector<1x1x320x208xbf16>
    %67 = vector.shape_cast %66 : vector<1x1x320x208xbf16> to vector<320x208xbf16>
    %cst_55 = arith.constant dense<0.000000e+00> : vector<2x208xf32>
    %68 = tpu.matmul %56, %67, %cst_55 {dimension_numbers = #tpu.dot_dimension_numbers<[1], [0], [0], [1], [0, 0, 1, 1], [], []>} : vector<2x320xbf16>, vector<320x208xbf16>, vector<2x208xf32> -> vector<2x208xf32>
    %69 = vector.broadcast %58 : vector<1x208xf32> to vector<2x208xf32>
    %70 = arith.addf %68, %69 : vector<2x208xf32>
    %cst_56 = arith.constant 0.000000e+00 : f32
    %71 = vector.broadcast %cst_56 : f32 to vector<2x208xf32>
    %72 = arith.maximumf %70, %71 : vector<2x208xf32>
    %73 = arith.maximumf %65, %72 : vector<2x208xf32>
    %c0_57 = arith.constant 0 : index
    %c2_58 = arith.constant 2 : index
    %c0_59 = arith.constant 0 : index
    %c0_60 = arith.constant 0 : index
    %74 = vector.load %arg7[%c0_57, %c2_58, %c0_59, %c0_60] : memref<1x3x320x208xbf16, #tpu.memory_space<vmem>>, vector<1x1x320x208xbf16>
    %75 = vector.shape_cast %74 : vector<1x1x320x208xbf16> to vector<320x208xbf16>
    %cst_61 = arith.constant dense<0.000000e+00> : vector<2x208xf32>
    %76 = tpu.matmul %56, %75, %cst_61 {dimension_numbers = #tpu.dot_dimension_numbers<[1], [0], [0], [1], [0, 0, 1, 1], [], []>} : vector<2x320xbf16>, vector<320x208xbf16>, vector<2x208xf32> -> vector<2x208xf32>
    %77 = vector.broadcast %58 : vector<1x208xf32> to vector<2x208xf32>
    %78 = arith.addf %76, %77 : vector<2x208xf32>
    %cst_62 = arith.constant 0.000000e+00 : f32
    %79 = vector.broadcast %cst_62 : f32 to vector<2x208xf32>
    %80 = arith.maximumf %78, %79 : vector<2x208xf32>
    %81 = arith.maximumf %73, %80 : vector<2x208xf32>
    %82 = arith.truncf %81 : vector<2x208xf32> to vector<2x208xbf16>
    %c0_63 = arith.constant 0 : index
    %c0_64 = arith.constant 0 : index
    %c0_65 = arith.constant 0 : index
    %83 = vector.load %arg10[%c0_63, %c0_64, %c0_65] : memref<1x1x128xf32, #tpu.memory_space<vmem>>, vector<1x1x128xf32>
    %84 = vector.shape_cast %83 : vector<1x1x128xf32> to vector<1x128xf32>
    %c0_66 = arith.constant 0 : index
    %c0_67 = arith.constant 0 : index
    %c0_68 = arith.constant 0 : index
    %c0_69 = arith.constant 0 : index
    %85 = vector.load %arg9[%c0_66, %c0_67, %c0_68, %c0_69] : memref<1x3x208x128xbf16, #tpu.memory_space<vmem>>, vector<1x1x208x128xbf16>
    %86 = vector.shape_cast %85 : vector<1x1x208x128xbf16> to vector<208x128xbf16>
    %cst_70 = arith.constant dense<0.000000e+00> : vector<2x128xf32>
    %87 = tpu.matmul %82, %86, %cst_70 {dimension_numbers = #tpu.dot_dimension_numbers<[1], [0], [0], [1], [0, 0, 1, 1], [], []>} : vector<2x208xbf16>, vector<208x128xbf16>, vector<2x128xf32> -> vector<2x128xf32>
    %88 = vector.broadcast %84 : vector<1x128xf32> to vector<2x128xf32>
    %89 = arith.addf %87, %88 : vector<2x128xf32>
    %cst_71 = arith.constant 0.000000e+00 : f32
    %90 = vector.broadcast %cst_71 : f32 to vector<2x128xf32>
    %91 = arith.maximumf %89, %90 : vector<2x128xf32>
    %c0_72 = arith.constant 0 : index
    %c1_73 = arith.constant 1 : index
    %c0_74 = arith.constant 0 : index
    %c0_75 = arith.constant 0 : index
    %92 = vector.load %arg9[%c0_72, %c1_73, %c0_74, %c0_75] : memref<1x3x208x128xbf16, #tpu.memory_space<vmem>>, vector<1x1x208x128xbf16>
    %93 = vector.shape_cast %92 : vector<1x1x208x128xbf16> to vector<208x128xbf16>
    %cst_76 = arith.constant dense<0.000000e+00> : vector<2x128xf32>
    %94 = tpu.matmul %82, %93, %cst_76 {dimension_numbers = #tpu.dot_dimension_numbers<[1], [0], [0], [1], [0, 0, 1, 1], [], []>} : vector<2x208xbf16>, vector<208x128xbf16>, vector<2x128xf32> -> vector<2x128xf32>
    %95 = vector.broadcast %84 : vector<1x128xf32> to vector<2x128xf32>
    %96 = arith.addf %94, %95 : vector<2x128xf32>
    %cst_77 = arith.constant 0.000000e+00 : f32
    %97 = vector.broadcast %cst_77 : f32 to vector<2x128xf32>
    %98 = arith.maximumf %96, %97 : vector<2x128xf32>
    %99 = arith.maximumf %91, %98 : vector<2x128xf32>
    %c0_78 = arith.constant 0 : index
    %c2_79 = arith.constant 2 : index
    %c0_80 = arith.constant 0 : index
    %c0_81 = arith.constant 0 : index
    %100 = vector.load %arg9[%c0_78, %c2_79, %c0_80, %c0_81] : memref<1x3x208x128xbf16, #tpu.memory_space<vmem>>, vector<1x1x208x128xbf16>
    %101 = vector.shape_cast %100 : vector<1x1x208x128xbf16> to vector<208x128xbf16>
    %cst_82 = arith.constant dense<0.000000e+00> : vector<2x128xf32>
    %102 = tpu.matmul %82, %101, %cst_82 {dimension_numbers = #tpu.dot_dimension_numbers<[1], [0], [0], [1], [0, 0, 1, 1], [], []>} : vector<2x208xbf16>, vector<208x128xbf16>, vector<2x128xf32> -> vector<2x128xf32>
    %103 = vector.broadcast %84 : vector<1x128xf32> to vector<2x128xf32>
    %104 = arith.addf %102, %103 : vector<2x128xf32>
    %cst_83 = arith.constant 0.000000e+00 : f32
    %105 = vector.broadcast %cst_83 : f32 to vector<2x128xf32>
    %106 = arith.maximumf %104, %105 : vector<2x128xf32>
    %107 = arith.maximumf %99, %106 : vector<2x128xf32>
    %c0_84 = arith.constant 0 : index
    %c0_85 = arith.constant 0 : index
    %c0_86 = arith.constant 0 : index
    %108 = vector.load %arg11[%c0_84, %c0_85, %c0_86] : memref<1x128x32xbf16, #tpu.memory_space<vmem>>, vector<1x128x32xbf16>
    %109 = vector.shape_cast %108 : vector<1x128x32xbf16> to vector<128x32xbf16>
    %110 = arith.truncf %107 : vector<2x128xf32> to vector<2x128xbf16>
    %cst_87 = arith.constant dense<0.000000e+00> : vector<2x32xf32>
    %111 = tpu.matmul %110, %109, %cst_87 {dimension_numbers = #tpu.dot_dimension_numbers<[1], [0], [0], [1], [0, 0, 1, 1], [], []>} : vector<2x128xbf16>, vector<128x32xbf16>, vector<2x32xf32> -> vector<2x32xf32>
    %c0_88 = arith.constant 0 : index
    %c0_89 = arith.constant 0 : index
    %c0_90 = arith.constant 0 : index
    %112 = vector.load %arg12[%c0_88, %c0_89, %c0_90] : memref<1x1x32xf32, #tpu.memory_space<vmem>>, vector<1x1x32xf32>
    %113 = vector.shape_cast %112 : vector<1x1x32xf32> to vector<1x32xf32>
    %114 = vector.broadcast %113 : vector<1x32xf32> to vector<2x32xf32>
    %115 = arith.addf %111, %114 : vector<2x32xf32>
    %cst_91 = arith.constant 0.000000e+00 : f32
    %116 = vector.broadcast %cst_91 : f32 to vector<2x32xf32>
    %117 = arith.maximumf %115, %116 : vector<2x32xf32>
    %c0_92 = arith.constant 0 : index
    %c0_93 = arith.constant 0 : index
    %c0_94 = arith.constant 0 : index
    %118 = vector.load %arg13[%c0_92, %c0_93, %c0_94] : memref<1x32x32xbf16, #tpu.memory_space<vmem>>, vector<1x32x32xbf16>
    %119 = vector.shape_cast %118 : vector<1x32x32xbf16> to vector<32x32xbf16>
    %120 = arith.truncf %117 : vector<2x32xf32> to vector<2x32xbf16>
    %cst_95 = arith.constant dense<0.000000e+00> : vector<2x32xf32>
    %121 = tpu.matmul %120, %119, %cst_95 {dimension_numbers = #tpu.dot_dimension_numbers<[1], [0], [0], [1], [0, 0, 1, 1], [], []>} : vector<2x32xbf16>, vector<32x32xbf16>, vector<2x32xf32> -> vector<2x32xf32>
    %c0_96 = arith.constant 0 : index
    %c0_97 = arith.constant 0 : index
    %c0_98 = arith.constant 0 : index
    %122 = vector.load %arg14[%c0_96, %c0_97, %c0_98] : memref<1x2x32xbf16, #tpu.memory_space<vmem>>, vector<1x2x32xbf16>
    %123 = vector.shape_cast %122 : vector<1x2x32xbf16> to vector<2x32xbf16>
    %124 = arith.truncf %3 : vector<2x2xf32> to vector<2x2xbf16>
    %cst_99 = arith.constant dense<0.000000e+00> : vector<2x32xf32>
    %125 = tpu.matmul %124, %123, %cst_99 {dimension_numbers = #tpu.dot_dimension_numbers<[1], [0], [0], [1], [0, 0, 1, 1], [], []>} : vector<2x2xbf16>, vector<2x32xbf16>, vector<2x32xf32> -> vector<2x32xf32>
    %126 = arith.addf %121, %125 : vector<2x32xf32>
    %c0_100 = arith.constant 0 : index
    %c0_101 = arith.constant 0 : index
    %c0_102 = arith.constant 0 : index
    %127 = vector.load %arg15[%c0_100, %c0_101, %c0_102] : memref<1x2x32xbf16, #tpu.memory_space<vmem>>, vector<1x2x32xbf16>
    %128 = vector.shape_cast %127 : vector<1x2x32xbf16> to vector<2x32xbf16>
    %129 = arith.truncf %2 : vector<2x2xf32> to vector<2x2xbf16>
    %cst_103 = arith.constant dense<0.000000e+00> : vector<2x32xf32>
    %130 = tpu.matmul %129, %128, %cst_103 {dimension_numbers = #tpu.dot_dimension_numbers<[1], [0], [0], [1], [0, 0, 1, 1], [], []>} : vector<2x2xbf16>, vector<2x32xbf16>, vector<2x32xf32> -> vector<2x32xf32>
    %131 = arith.addf %126, %130 : vector<2x32xf32>
    %c0_104 = arith.constant 0 : index
    %c0_105 = arith.constant 0 : index
    %c0_106 = arith.constant 0 : index
    %132 = vector.load %arg16[%c0_104, %c0_105, %c0_106] : memref<1x1x32xf32, #tpu.memory_space<vmem>>, vector<1x1x32xf32>
    %133 = vector.shape_cast %132 : vector<1x1x32xf32> to vector<1x32xf32>
    %134 = vector.broadcast %133 : vector<1x32xf32> to vector<2x32xf32>
    %135 = arith.addf %131, %134 : vector<2x32xf32>
    %cst_107 = arith.constant 0.000000e+00 : f32
    %136 = vector.broadcast %cst_107 : f32 to vector<2x32xf32>
    %137 = arith.maximumf %135, %136 : vector<2x32xf32>
    %c0_108 = arith.constant 0 : index
    %c0_109 = arith.constant 0 : index
    %c0_110 = arith.constant 0 : index
    %138 = vector.load %arg17[%c0_108, %c0_109, %c0_110] : memref<1x32x32xbf16, #tpu.memory_space<vmem>>, vector<1x32x32xbf16>
    %139 = vector.shape_cast %138 : vector<1x32x32xbf16> to vector<32x32xbf16>
    %140 = arith.truncf %137 : vector<2x32xf32> to vector<2x32xbf16>
    %cst_111 = arith.constant dense<0.000000e+00> : vector<2x32xf32>
    %141 = tpu.matmul %140, %139, %cst_111 {dimension_numbers = #tpu.dot_dimension_numbers<[1], [0], [0], [1], [0, 0, 1, 1], [], []>} : vector<2x32xbf16>, vector<32x32xbf16>, vector<2x32xf32> -> vector<2x32xf32>
    %c0_112 = arith.constant 0 : index
    %c0_113 = arith.constant 0 : index
    %c0_114 = arith.constant 0 : index
    %142 = vector.load %arg18[%c0_112, %c0_113, %c0_114] : memref<1x1x32xf32, #tpu.memory_space<vmem>>, vector<1x1x32xf32>
    %143 = vector.shape_cast %142 : vector<1x1x32xf32> to vector<1x32xf32>
    %144 = vector.broadcast %143 : vector<1x32xf32> to vector<2x32xf32>
    %145 = arith.addf %141, %144 : vector<2x32xf32>
    %cst_115 = arith.constant 0.000000e+00 : f32
    %146 = vector.broadcast %cst_115 : f32 to vector<2x32xf32>
    %147 = arith.maximumf %145, %146 : vector<2x32xf32>
    %c0_116 = arith.constant 0 : index
    %c0_117 = arith.constant 0 : index
    %c0_118 = arith.constant 0 : index
    %148 = vector.load %arg19[%c0_116, %c0_117, %c0_118] : memref<1x32x32xbf16, #tpu.memory_space<vmem>>, vector<1x32x32xbf16>
    %149 = vector.shape_cast %148 : vector<1x32x32xbf16> to vector<32x32xbf16>
    %150 = arith.truncf %147 : vector<2x32xf32> to vector<2x32xbf16>
    %cst_119 = arith.constant dense<0.000000e+00> : vector<2x32xf32>
    %151 = tpu.matmul %150, %149, %cst_119 {dimension_numbers = #tpu.dot_dimension_numbers<[1], [0], [0], [1], [0, 0, 1, 1], [], []>} : vector<2x32xbf16>, vector<32x32xbf16>, vector<2x32xf32> -> vector<2x32xf32>
    %c0_120 = arith.constant 0 : index
    %c0_121 = arith.constant 0 : index
    %c0_122 = arith.constant 0 : index
    %152 = vector.load %arg20[%c0_120, %c0_121, %c0_122] : memref<1x1x32xf32, #tpu.memory_space<vmem>>, vector<1x1x32xf32>
    %153 = vector.shape_cast %152 : vector<1x1x32xf32> to vector<1x32xf32>
    %154 = vector.broadcast %153 : vector<1x32xf32> to vector<2x32xf32>
    %155 = arith.addf %151, %154 : vector<2x32xf32>
    %cst_123 = arith.constant 0.000000e+00 : f32
    %156 = vector.broadcast %cst_123 : f32 to vector<2x32xf32>
    %157 = arith.maximumf %155, %156 : vector<2x32xf32>
    %c0_124 = arith.constant 0 : index
    %c0_125 = arith.constant 0 : index
    %c0_126 = arith.constant 0 : index
    %158 = vector.load %arg21[%c0_124, %c0_125, %c0_126] : memref<1x32x1xbf16, #tpu.memory_space<vmem>>, vector<1x32x1xbf16>
    %159 = vector.shape_cast %158 : vector<1x32x1xbf16> to vector<32x1xbf16>
    %160 = arith.truncf %157 : vector<2x32xf32> to vector<2x32xbf16>
    %cst_127 = arith.constant dense<0.000000e+00> : vector<2x1xf32>
    %161 = tpu.matmul %160, %159, %cst_127 {dimension_numbers = #tpu.dot_dimension_numbers<[1], [0], [0], [1], [0, 0, 1, 1], [], []>} : vector<2x32xbf16>, vector<32x1xbf16>, vector<2x1xf32> -> vector<2x1xf32>
    %c0_128 = arith.constant 0 : index
    %c0_129 = arith.constant 0 : index
    %c0_130 = arith.constant 0 : index
    %162 = vector.load %arg22[%c0_128, %c0_129, %c0_130] : memref<1x1x1xf32, #tpu.memory_space<vmem>>, vector<1x1x1xf32>
    %163 = vector.shape_cast %162 : vector<1x1x1xf32> to vector<1x1xf32>
    %164 = vector.broadcast %163 : vector<1x1xf32> to vector<2x1xf32>
    %165 = arith.addf %161, %164 : vector<2x1xf32>
    %c0_131 = arith.constant 0 : index
    %c0_132 = arith.constant 0 : index
    %c0_133 = arith.constant 0 : index
    %166 = vector.load %arg23[%c0_131, %c0_132, %c0_133] : memref<1x2x1xf32, #tpu.memory_space<vmem>>, vector<1x2x1xf32>
    %167 = vector.shape_cast %166 : vector<1x2x1xf32> to vector<2x1xf32>
    %168 = vector.shape_cast %165 : vector<2x1xf32> to vector<1x2x1xf32>
    tpu.vector_store %arg23[%c0_131, %c0_132, %c0_133], %168 {strides = array<i32>} : memref<1x2x1xf32, #tpu.memory_space<vmem>>, vector<1x2x1xf32>,
    return
  }
  func.func @transform_0(%arg0: i32) -> (i32, i32) {
    %c0_i32 = arith.constant 0 : i32
    %c0_i32_0 = arith.constant 0 : i32
    %c0_i32_1 = arith.constant 0 : i32
    return %c0_i32, %c0_i32_0 : i32, i32
  }
  func.func @transform_1(%arg0: i32) -> (i32, i32) {
    %c0_i32 = arith.constant 0 : i32
    %c0_i32_0 = arith.constant 0 : i32
    %c0_i32_1 = arith.constant 0 : i32
    return %c0_i32, %c0_i32_0 : i32, i32
  }
  func.func @transform_2(%arg0: i32) -> (i32, i32, i32, i32) {
    %c0_i32 = arith.constant 0 : i32
    %c0_i32_0 = arith.constant 0 : i32
    %c0_i32_1 = arith.constant 0 : i32
    %c0_i32_2 = arith.constant 0 : i32
    return %arg0, %c0_i32, %c0_i32_0, %c0_i32_1 : i32, i32, i32, i32
  }
  func.func @transform_3(%arg0: i32) -> (i32, i32, i32) {
    %c0_i32 = arith.constant 0 : i32
    %c0_i32_0 = arith.constant 0 : i32
    %c0_i32_1 = arith.constant 0 : i32
    return %arg0, %c0_i32, %c0_i32_0 : i32, i32, i32
  }
  func.func @transform_4(%arg0: i32) -> (i32, i32, i32, i32) {
    %c0_i32 = arith.constant 0 : i32
    %c0_i32_0 = arith.constant 0 : i32
    %c0_i32_1 = arith.constant 0 : i32
    %c0_i32_2 = arith.constant 0 : i32
    return %arg0, %c0_i32, %c0_i32_0, %c0_i32_1 : i32, i32, i32, i32
  }
  func.func @transform_5(%arg0: i32) -> (i32, i32, i32) {
    %c0_i32 = arith.constant 0 : i32
    %c0_i32_0 = arith.constant 0 : i32
    %c0_i32_1 = arith.constant 0 : i32
    return %arg0, %c0_i32, %c0_i32_0 : i32, i32, i32
  }
  func.func @transform_6(%arg0: i32) -> (i32, i32, i32, i32) {
    %c0_i32 = arith.constant 0 : i32
    %c0_i32_0 = arith.constant 0 : i32
    %c0_i32_1 = arith.constant 0 : i32
    %c0_i32_2 = arith.constant 0 : i32
    return %arg0, %c0_i32, %c0_i32_0, %c0_i32_1 : i32, i32, i32, i32
  }
  func.func @transform_7(%arg0: i32) -> (i32, i32, i32) {
    %c0_i32 = arith.constant 0 : i32
    %c0_i32_0 = arith.constant 0 : i32
    %c0_i32_1 = arith.constant 0 : i32
    return %arg0, %c0_i32, %c0_i32_0 : i32, i32, i32
  }
  func.func @transform_8(%arg0: i32) -> (i32, i32, i32, i32) {
    %c0_i32 = arith.constant 0 : i32
    %c0_i32_0 = arith.constant 0 : i32
    %c0_i32_1 = arith.constant 0 : i32
    %c0_i32_2 = arith.constant 0 : i32
    return %arg0, %c0_i32, %c0_i32_0, %c0_i32_1 : i32, i32, i32, i32
  }
  func.func @transform_9(%arg0: i32) -> (i32, i32, i32) {
    %c0_i32 = arith.constant 0 : i32
    %c0_i32_0 = arith.constant 0 : i32
    %c0_i32_1 = arith.constant 0 : i32
    return %arg0, %c0_i32, %c0_i32_0 : i32, i32, i32
  }
  func.func @transform_10(%arg0: i32) -> (i32, i32, i32) {
    %c0_i32 = arith.constant 0 : i32
    %c0_i32_0 = arith.constant 0 : i32
    %c0_i32_1 = arith.constant 0 : i32
    return %arg0, %c0_i32, %c0_i32_0 : i32, i32, i32
  }
  func.func @transform_11(%arg0: i32) -> (i32, i32, i32) {
    %c0_i32 = arith.constant 0 : i32
    %c0_i32_0 = arith.constant 0 : i32
    %c0_i32_1 = arith.constant 0 : i32
    return %arg0, %c0_i32, %c0_i32_0 : i32, i32, i32
  }
  func.func @transform_12(%arg0: i32) -> (i32, i32, i32) {
    %c0_i32 = arith.constant 0 : i32
    %c0_i32_0 = arith.constant 0 : i32
    %c0_i32_1 = arith.constant 0 : i32
    return %arg0, %c0_i32, %c0_i32_0 : i32, i32, i32
  }
  func.func @transform_13(%arg0: i32) -> (i32, i32, i32) {
    %c0_i32 = arith.constant 0 : i32
    %c0_i32_0 = arith.constant 0 : i32
    %c0_i32_1 = arith.constant 0 : i32
    return %arg0, %c0_i32, %c0_i32_0 : i32, i32, i32
  }
  func.func @transform_14(%arg0: i32) -> (i32, i32, i32) {
    %c0_i32 = arith.constant 0 : i32
    %c0_i32_0 = arith.constant 0 : i32
    %c0_i32_1 = arith.constant 0 : i32
    return %arg0, %c0_i32, %c0_i32_0 : i32, i32, i32
  }
  func.func @transform_15(%arg0: i32) -> (i32, i32, i32) {
    %c0_i32 = arith.constant 0 : i32
    %c0_i32_0 = arith.constant 0 : i32
    %c0_i32_1 = arith.constant 0 : i32
    return %arg0, %c0_i32, %c0_i32_0 : i32, i32, i32
  }
  func.func @transform_16(%arg0: i32) -> (i32, i32, i32) {
    %c0_i32 = arith.constant 0 : i32
    %c0_i32_0 = arith.constant 0 : i32
    %c0_i32_1 = arith.constant 0 : i32
    return %arg0, %c0_i32, %c0_i32_0 : i32, i32, i32
  }
  func.func @transform_17(%arg0: i32) -> (i32, i32, i32) {
    %c0_i32 = arith.constant 0 : i32
    %c0_i32_0 = arith.constant 0 : i32
    %c0_i32_1 = arith.constant 0 : i32
    return %arg0, %c0_i32, %c0_i32_0 : i32, i32, i32
  }
  func.func @transform_18(%arg0: i32) -> (i32, i32, i32) {
    %c0_i32 = arith.constant 0 : i32
    %c0_i32_0 = arith.constant 0 : i32
    %c0_i32_1 = arith.constant 0 : i32
    return %arg0, %c0_i32, %c0_i32_0 : i32, i32, i32
  }
  func.func @transform_19(%arg0: i32) -> (i32, i32, i32) {
    %c0_i32 = arith.constant 0 : i32
    %c0_i32_0 = arith.constant 0 : i32
    %c0_i32_1 = arith.constant 0 : i32
    return %arg0, %c0_i32, %c0_i32_0 : i32, i32, i32
  }
  func.func @transform_20(%arg0: i32) -> (i32, i32, i32) {
    %c0_i32 = arith.constant 0 : i32
    %c0_i32_0 = arith.constant 0 : i32
    %c0_i32_1 = arith.constant 0 : i32
    return %arg0, %c0_i32, %c0_i32_0 : i32, i32, i32
  }
  func.func @transform_21(%arg0: i32) -> (i32, i32, i32) {
    %c0_i32 = arith.constant 0 : i32
    %c0_i32_0 = arith.constant 0 : i32
    %c0_i32_1 = arith.constant 0 : i32
    return %arg0, %c0_i32, %c0_i32_0 : i32, i32, i32
  }
  func.func @transform_22(%arg0: i32) -> (i32, i32, i32) {
    %c0_i32 = arith.constant 0 : i32
    %c0_i32_0 = arith.constant 0 : i32
    %c0_i32_1 = arith.constant 0 : i32
    return %arg0, %c0_i32, %c0_i32_0 : i32, i32, i32
  }
}

</mosaic_0001>

<bundles_post_ra>
// kernel: qnetwork_forward.1
= control target key start
LH: loop header
LB: loop body
LE: loop exit
PB: predicated region body
PF: predicated region fallthrough
CT: control target
= control target key end

     0   :  { %s13560_s0 = inlined_call_operand.vmem [shape: f32[2,362], index: 0, kind: input, shape index: {}]   ;;  %s13561_s1 = inlined_call_operand.vmem [shape: f32[2,2], index: 1, kind: input, shape index: {}]   ;;  %s13562_s2 = inlined_call_operand.vmem [shape: bf16[2,3,360,480], index: 2, kind: input, shape index: {}]   ;;  %s13563_s3 = inlined_call_operand.vmem [shape: f32[2,1,480], index: 3, kind: input, shape index: {}]   ;;  %s13564_s4 = inlined_call_operand.vmem [shape: bf16[2,3,480,320], index: 4, kind: input, shape index: {}]   ;;  %s13565_s5 = inlined_call_operand.vmem [shape: f32[2,1,320], index: 5, kind: input, shape index: {}]   ;;  %s13566_s6 = inlined_call_operand.vmem [shape: bf16[2,3,320,208], index: 6, kind: input, shape index: {}]   ;;  %s13567_s7 = inlined_call_operand.vmem [shape: f32[2,1,208], index: 7, kind: input, shape index: {}]   ;;  %s13568_s8 = inlined_call_operand.vmem [shape: bf16[2,3,208,128], index: 8, kind: input, shape index: {}]   ;;  %s13569_s9 = inlined_call_operand.vmem [shape: f32[2,1,128], index: 9, kind: input, shape index: {}]   ;;  %s13570_s10 = inlined_call_operand.vmem [shape: bf16[2,128,32], index: 10, kind: input, shape index: {}]   ;;  %s13571_s11 = inlined_call_operand.vmem [shape: f32[2,1,32], index: 11, kind: input, shape index: {}]   ;;  %s13572_s12 = inlined_call_operand.vmem [shape: bf16[2,32,32], index: 12, kind: input, shape index: {}]   ;;  %s13573_s13 = inlined_call_operand.vmem [shape: bf16[2,2,32], index: 13, kind: input, shape index: {}]   ;;  %s13574_s14 = inlined_call_operand.vmem [shape: bf16[2,2,32], index: 14, kind: input, shape index: {}]   ;;  %s13575_s15 = inlined_call_operand.vmem [shape: f32[2,1,32], index: 15, kind: input, shape index: {}]   ;;  %s13576_s16 = inlined_call_operand.vmem [shape: bf16[2,32,32], index: 16, kind: input, shape index: {}]   ;;  %s13577_s17 = inlined_call_operand.vmem [shape: f32[2,1,32], index: 17, kind: input, shape index: {}]   ;;  %s13578_s18 = inlined_call_operand.vmem [shape: bf16[2,32,32], index: 18, kind: input, shape index: {}]   ;;  %s13579_s19 = inlined_call_operand.vmem [shape: f32[2,1,32], index: 19, kind: input, shape index: {}]   ;;  %s13580_s20 = inlined_call_operand.vmem [shape: bf16[2,32,1], index: 20, kind: input, shape index: {}]   ;;  %s13581_s21 = inlined_call_operand.vmem [shape: f32[2,1,1], index: 21, kind: input, shape index: {}]   ;;  %s13582_s22 = inlined_call_operand.vmem [shape: f32[2,2,1], index: 22, kind: output, shape index: {}]  }
   0x1   :  { %13584 = sst [smem:[#allocation2_spill]] %s13560_s0 }
   0x2   :  { %13585 = sst [smem:[#allocation3_spill]] %s13561_s1 }
   0x3   :  { %13586 = sst [smem:[#allocation4_spill]] %s13562_s2 }
   0x4   :  { %13587 = sst [smem:[#allocation5_spill]] %s13563_s3  ;;  %s11717_s3 = smov 0  }
   0x5   :  { %13588 = sst [smem:[#allocation6_spill]] %s13564_s4 }
   0x6   :  { %13589 = sst [smem:[#allocation7_spill]] %s13565_s5 }
   0x7   :  { %13590 = sst [smem:[#allocation8_spill]] %s13566_s6 }
   0x8 LB: > { %s7412_s28 = sadd.s32 4294967295, %s11599_s3   ;;  %p7416_p0 = scmp.ge.s32.totalorder %s11599_s3, 1  ;;  %s11599_s3 = sphi %s11717_s3, %s32_s3  }
   0x9   : > { %p783_p1 = scmp.lt.s32.totalorder %s11599_s3, 3 }
   0xb   : > { %p784_p2 = pnand %p7416_p0, %p783_p1 }
   0xc   : > { %p920_p3 = scmp.lt.s32.totalorder (!%p784_p2), %s7412_s28, 1  ;;  %s13591_s0 = sld [smem:[#allocation4_spill]] (!%p784_p2) }
   0xd   : > { %787 = sbr.rel (%p784_p2) target bundleno = 1855 (0x73f), region = 108  ;;  %s13592_s24 = sld [smem:[#allocation2_spill]] (!%p784_p2) }
   0xe   : > { %s13593_s2 = sld [smem:[#allocation5_spill]] (!%p784_p2) }
  0x12   : > { %s13600_s28 = smov (!%p920_p3, %s7412_s28), 1  ;;  %vm1573_vm0 = vcmask 1043456   ;;  %vm1569_vm1 = vcmask 850944   ;;  %vm3792_vm2 = vcmask 785408   ;;  %vm5730_vm3 = vcmask 523264  }
  0x13   : > { %s11574_s29 = smul.u32 2160, %s13600_s28  ;;  %s7418_s6 = sshll.u32 %s13600_s28, 2  ;;  %vm6570_vm4 = vcmask 654336   ;;  %vm6961_vm5 = vcmask 1040384   ;;  %vm6957_vm6 = vcmask 15360   ;;  %vm6990_vm7 = vcmask 261120  }
  0x14   : > { %s928_s27 = scalar_lea.vmem %s13593_s2, %s7418_s6  ;;  %s11576_s25 = smul.u32 960, %s13600_s28  ;;  %vm7153_vm8 = vcmask 1024  }
  0x15   : > { %s11733_s23 = scalar_lea.vmem %s13591_s0, %s11574_s29  ;;  %s13594_s0 = sld [smem:[#allocation6_spill]] }
  0x16   : > { %v7548_v0 = vld [vmem:[%s11733_s23 + $0xe0] sm:$0xf]  ;;  %v10895_v1 = vld [vmem:[%s11733_s23 + $0xec] sm:$0xf0]  ;;  %v10893_v5 = vld [vmem:[%s11733_s23 + $0xe4] sm:$0xf]  ;;  %s962_s5 = scalar_lea.vmem %s13571_s11, %s13600_s28  ;;  %s984_s26 = scalar_lea.vmem %s13577_s17, %s13600_s28 }
  0x17   : > { %v7676_v2 = vld [vmem:[%s11733_s23 + $0x1e0] sm:$0xf]  ;;  %v7549_v3 = vor.u32 %v10895_v1, %v7548_v0  ;;  %v10927_v4 = vld [vmem:[%s11733_s23 + $0x1ec] sm:$0xf0]  ;;  %v7550_v6 = vld [vmem:[%s11733_s23 + $0xf0] sm:$0xf0] }
  0x18   : > { %v7677_v7 = vor.u32 %v10927_v4, %v7676_v2  ;;  %v7553_v8 = vor.u32 %v10893_v5, %v7550_v6  ;;  %v11742_v9 = vld [vmem:[%s11733_s23 + $0x2c0] sm:$0xff]  ;;  %v10891_v11 = vld [vmem:[%s11733_s23 + $0xcc] sm:$0xf0]  ;;  %v7534_v18 = vld [vmem:[%s11733_s23 + $0xd0] sm:$0xf0]  ;;  %s13583_s4 = sshll.u32 %s13600_s28, 1 }
  0x19   : > { %v7532_v10 = vld [vmem:[%s11733_s23 + $0xc0] sm:$0xf]  ;;  %1586 = vmatpush.bf16.msra.mxu0 %v7549_v3  ;;  %v1385_v12 = vunpack.c.l.b16 %v11742_v9  ;;  %v10923_v15 = vld [vmem:[%s11733_s23 + $0x1cc] sm:$0xf0]  ;;  %v10889_v16 = vld [vmem:[%s11733_s23 + $0xc4] sm:$0xf] }
  0x1a   : > { %v7533_v13 = vor.u32 %v10891_v11, %v7532_v10  ;;  %v7660_v14 = vld [vmem:[%s11733_s23 + $0x1c0] sm:$0xf]  ;;  %1599 = vmatpush.bf16.msra.mxu1 %v7677_v7  ;;  %1625 = vmatpush.bf16.msra.mxu3 %v7553_v8  ;;  %v10951_v20 = vld [vmem:[%s11733_s23 + $0x2ac] sm:$0xf0]  ;;  %v7537_v22 = vor.u32 %v10889_v16, %v7534_v18  ;;  %v10885_v27 = vld [vmem:[%s11733_s23 + $0xa4] sm:$0xf] }
  0x1b   : > { %v7661_v17 = vor.u32 %v10923_v15, %v7660_v14  ;;  %v7772_v19 = vld [vmem:[%s11733_s23 + $0x2a0] sm:$0xf]  ;;  %v1477_v21 = vpack.c.b16 %v1385_v12, %v1385_v12  ;;  %v10887_v24 = vld [vmem:[%s11733_s23 + $0xac] sm:$0xf0]  ;;  %v7518_v28 = vld [vmem:[%s11733_s23 + $0xb0] sm:$0xf0]  ;;  %s12384_s1 = scalar_lea.vmem %s13594_s0, %s11574_s29  ;;  %s973_s0 = scalar_lea.vmem %s13574_s14, %s13600_s28 }
  0x1c   : > { %v7516_v23 = vld [vmem:[%s11733_s23 + $0xa0] sm:$0xf]  ;;  %v10919_v26 = vld [vmem:[%s11733_s23 + $0x1ac] sm:$0xf0]  ;;  %v7773_v31 = vor.u32 %v10951_v20, %v7772_v19  ;;  %v7521_v36 = vor.u32 %v10885_v27, %v7518_v28  ;;  %v10881_v40 = vld [vmem:[%s11733_s23 + $0x84] sm:$0xf] }
  0x1d   : > { %v7644_v25 = vld [vmem:[%s11733_s23 + $0x1a0] sm:$0xf]  ;;  %v1575_v29 = vsel %vm1573_vm0, %v1477_v21, 0  ;;  %1587 = vmatpush.bf16.msra.mxu0 %v7533_v13  ;;  %v7517_v30 = vor.u32 %v10887_v24, %v7516_v23  ;;  %v10883_v35 = vld [vmem:[%s11733_s23 + $0x8c] sm:$0xf0]  ;;  %v1386_v13 = vunpack.c.h.b16 %v11742_v9  ;;  %s11575_s29 = smul.u32 3, %s13600_s28 }
  0x1e   : > { %1613 = vmatpush.bf16.msra.mxu2 %v1575_v29  ;;  %1600 = vmatpush.bf16.msra.mxu1 %v7661_v17  ;;  %v7645_v32 = vor.u32 %v10919_v26, %v7644_v25  ;;  %v7756_v33 = vld [vmem:[%s11733_s23 + $0x280] sm:$0xf]  ;;  %v10947_v37 = vld [vmem:[%s11733_s23 + $0x28c] sm:$0xf0]  ;;  %v7502_v41 = vld [vmem:[%s11733_s23 + $0x90] sm:$0xf0] }
  0x1f   : > { %v7500_v34 = vld [vmem:[%s11733_s23 + $0x80] sm:$0xf]  ;;  %1626 = vmatpush.bf16.msra.mxu3 %v7537_v22  ;;  %v10915_v39 = vld [vmem:[%s11733_s23 + $0x18c] sm:$0xf0]  ;;  %v7757_v43 = vor.u32 %v10947_v37, %v7756_v33  ;;  %v7505_v48 = vor.u32 %v10881_v40, %v7502_v41  ;;  %v10877_v52 = vld [vmem:[%s11733_s23 + $0x64] sm:$0xf]  ;;  %v1478_v26 = vpack.c.b16 %v1386_v13, %v1386_v13 }
  0x20   : > { %v7628_v38 = vld [vmem:[%s11733_s23 + $0x180] sm:$0xf]  ;;  %v7501_v42 = vor.u32 %v10883_v35, %v7500_v34  ;;  %v10879_v47 = vld [vmem:[%s11733_s23 + $0x6c] sm:$0xf0]  ;;  %v7486_v53 = vld [vmem:[%s11733_s23 + $0x70] sm:$0xf0] }
  0x21   : > { %1588 = vmatpush.bf16.msra.mxu0 %v7517_v30  ;;  %v7629_v44 = vor.u32 %v10915_v39, %v7628_v38  ;;  %v7740_v45 = vld [vmem:[%s11733_s23 + $0x260] sm:$0xf]  ;;  %v10943_v49 = vld [vmem:[%s11733_s23 + $0x26c] sm:$0xf0]  ;;  %v7489_v60 = vor.u32 %v10877_v52, %v7486_v53  ;;  %v10873_v0 = vld [vmem:[%s11733_s23 + $0x44] sm:$0xf] }
  0x22   : > { %1614 = vmatpush.bf16.msra.mxu2 %v7773_v31  ;;  %1601 = vmatpush.bf16.msra.mxu1 %v7645_v32  ;;  %v7484_v46 = vld [vmem:[%s11733_s23 + $0x60] sm:$0xf]  ;;  %v10911_v51 = vld [vmem:[%s11733_s23 + $0x16c] sm:$0xf0]  ;;  %v7741_v55 = vor.u32 %v10943_v49, %v7740_v45  ;;  %v7470_v1 = vld [vmem:[%s11733_s23 + $0x50] sm:$0xf0] }
  0x23   : > { %1627 = vmatpush.bf16.msra.mxu3 %v7521_v36  ;;  %v7612_v50 = vld [vmem:[%s11733_s23 + $0x160] sm:$0xf]  ;;  %v7485_v54 = vor.u32 %v10879_v47, %v7484_v46  ;;  %v10875_v59 = vld [vmem:[%s11733_s23 + $0x4c] sm:$0xf0]  ;;  %v7473_v8 = vor.u32 %v10873_v0, %v7470_v1  ;;  %v10869_v14 = vld [vmem:[%s11733_s23 + $0x24] sm:$0xf] }
  0x24   : > { %v7613_v56 = vor.u32 %v10911_v51, %v7612_v50  ;;  %v7724_v57 = vld [vmem:[%s11733_s23 + $0x240] sm:$0xf]  ;;  %v10939_v61 = vld [vmem:[%s11733_s23 + $0x24c] sm:$0xf0]  ;;  %v7454_v15 = vld [vmem:[%s11733_s23 + $0x30] sm:$0xf0] }
  0x25   : > { %1589 = vmatpush.bf16.msra.mxu0 %v7501_v42  ;;  %v7468_v58 = vld [vmem:[%s11733_s23 + $0x40] sm:$0xf]  ;;  %v10907_v63 = vld [vmem:[%s11733_s23 + $0x14c] sm:$0xf0]  ;;  %v7725_v3 = vor.u32 %v10939_v61, %v7724_v57  ;;  %v7457_v9 = vor.u32 %v10869_v14, %v7454_v15  ;;  %v10865_v25 = vld [vmem:[%s11733_s23 + $0x4] sm:$0xf] }
  0x26   : > { %1615 = vmatpush.bf16.msra.mxu2 %v7757_v43  ;;  %1602 = vmatpush.bf16.msra.mxu1 %v7629_v44  ;;  %v7596_v62 = vld [vmem:[%s11733_s23 + $0x140] sm:$0xf]  ;;  %v7469_v2 = vor.u32 %v10875_v59, %v7468_v58  ;;  %v10871_v7 = vld [vmem:[%s11733_s23 + $0x2c] sm:$0xf0]  ;;  %v7438_v27 = vld [vmem:[%s11733_s23 + $0x10] sm:$0xf0] }
  0x27   : > { %1628 = vmatpush.bf16.msra.mxu3 %v7505_v48  ;;  %v7597_v4 = vor.u32 %v10907_v63, %v7596_v62  ;;  %v7708_v5 = vld [vmem:[%s11733_s23 + $0x220] sm:$0xf]  ;;  %v10935_v10 = vld [vmem:[%s11733_s23 + $0x22c] sm:$0xf0]  ;;  %v10925_v28 = vld [vmem:[%s11733_s23 + $0x1e4] sm:$0xf]  ;;  %v7441_v37 = vor.u32 %v10865_v25, %v7438_v27 }
  0x28   : > { %v7452_v6 = vld [vmem:[%s11733_s23 + $0x20] sm:$0xf]  ;;  %v10903_v12 = vld [vmem:[%s11733_s23 + $0x12c] sm:$0xf0]  ;;  %v7709_v18 = vor.u32 %v10935_v10, %v7708_v5  ;;  %v7678_v29 = vld [vmem:[%s11733_s23 + $0x1f0] sm:$0xf0] }
  0x29   : > { %1590 = vmatpush.bf16.msra.mxu0 %v7485_v54  ;;  %v7580_v11 = vld [vmem:[%s11733_s23 + $0x120] sm:$0xf]  ;;  %v7453_v16 = vor.u32 %v10871_v7, %v7452_v6  ;;  %v10931_v20 = vld [vmem:[%s11733_s23 + $0x20c] sm:$0xf0]  ;;  %v7556_v31 = vld [vmem:[%s11733_s23 + $0xe8] sm:$0xf]  ;;  %v7681_v38 = vor.u32 %v10925_v28, %v7678_v29 }
  0x2a   : > { %1616 = vmatpush.bf16.msra.mxu2 %v7741_v55  ;;  %1603 = vmatpush.bf16.msra.mxu1 %v7613_v56  ;;  %v7692_v17 = vld [vmem:[%s11733_s23 + $0x200] sm:$0xf]  ;;  %v7581_v19 = vor.u32 %v10903_v12, %v7580_v11  ;;  %v10867_v22 = vld [vmem:[%s11733_s23 + $0xc] sm:$0xf0]  ;;  %v10896_v32 = vld [vmem:[%s11733_s23 + $0xf4] sm:$0xf0] }
  0x2b   : > { %1629 = vmatpush.bf16.msra.mxu3 %v7489_v60  ;;  %v7436_v21 = vld [vmem:[%s11733_s23] sm:$0xf]  ;;  %v10899_v24 = vld [vmem:[%s11733_s23 + $0x10c] sm:$0xf0]  ;;  %v7693_v33 = vor.u32 %v10931_v20, %v7692_v17  ;;  %v7684_v35 = vld [vmem:[%s11733_s23 + $0x1e8] sm:$0xf]  ;;  %v7557_v40 = vor.u32 %v10896_v32, %v7556_v31 }
  0x2c   : > { %v7564_v23 = vld [vmem:[%s11733_s23 + $0x100] sm:$0xf]  ;;  %v7437_v30 = vor.u32 %v10867_v22, %v7436_v21  ;;  %v10928_v36 = vld [vmem:[%s11733_s23 + $0x1f4] sm:$0xf0]  ;;  %v1578_v39 = vsel %vm1573_vm0, %v1478_v26, 0 }
  0x2d   : > { %1591 = vmatpush.bf16.msra.mxu0 %v7469_v2  ;;  %v7565_v34 = vor.u32 %v10899_v24, %v7564_v23  ;;  %v10921_v41 = vld [vmem:[%s11733_s23 + $0x1c4] sm:$0xf]  ;;  %v7662_v42 = vld [vmem:[%s11733_s23 + $0x1d0] sm:$0xf0]  ;;  %v7685_v44 = vor.u32 %v10928_v36, %v7684_v35  ;;  %v7540_v46 = vld [vmem:[%s11733_s23 + $0xc8] sm:$0xf] }
  0x2e   : > { %1617 = vmatpush.bf16.msra.mxu2 %v7725_v3  ;;  %1604 = vmatpush.bf16.msra.mxu1 %v7597_v4  ;;  %v10949_v43 = vld [vmem:[%s11733_s23 + $0x2a4] sm:$0xf]  ;;  %v7774_v45 = vld [vmem:[%s11733_s23 + $0x2b0] sm:$0xf0]  ;;  %v10892_v47 = vld [vmem:[%s11733_s23 + $0xd4] sm:$0xf0]  ;;  %v7665_v50 = vor.u32 %v10921_v41, %v7662_v42 }
  0x2f   : > { %1630 = vmatpush.bf16.msra.mxu3 %v7473_v8  ;;  %v7668_v48 = vld [vmem:[%s11733_s23 + $0x1c8] sm:$0xf]  ;;  %v10924_v49 = vld [vmem:[%s11733_s23 + $0x1d4] sm:$0xf0]  ;;  %v10917_v51 = vld [vmem:[%s11733_s23 + $0x1a4] sm:$0xf]  ;;  %v7777_v53 = vor.u32 %v10949_v43, %v7774_v45  ;;  %v7541_v54 = vor.u32 %v10892_v47, %v7540_v46 }
  0x30   : > { %v7646_v52 = vld [vmem:[%s11733_s23 + $0x1b0] sm:$0xf0]  ;;  %v10945_v55 = vld [vmem:[%s11733_s23 + $0x284] sm:$0xf]  ;;  %v7669_v58 = vor.u32 %v10924_v49, %v7668_v48  ;;  %v7524_v59 = vld [vmem:[%s11733_s23 + $0xa8] sm:$0xf] }
  0x31   : > { %1592 = vmatpush.bf16.msra.mxu0 %v7453_v16  ;;  %v7758_v56 = vld [vmem:[%s11733_s23 + $0x290] sm:$0xf0]  ;;  %v1006_v57 = vld [vmem:[%s13592_s24] sm:$0x3f]  ;;  %v10888_v60 = vld [vmem:[%s11733_s23 + $0xb4] sm:$0xf0]  ;;  %v7649_v63 = vor.u32 %v10917_v51, %v7646_v52 }
  0x32   : > { %1618 = vmatpush.bf16.msra.mxu2 %v7709_v18  ;;  %1605 = vmatpush.bf16.msra.mxu1 %v7581_v19  ;;  %1009 = vst [vmem:[#allocation1] ss:$4 sm:$0xff] %v1006_v57  ;;  %v7652_v61 = vld [vmem:[%s11733_s23 + $0x1a8] sm:$0xf]  ;;  %v10920_v62 = vld [vmem:[%s11733_s23 + $0x1b4] sm:$0xf0]  ;;  %v7761_v1 = vor.u32 %v10945_v55, %v7758_v56  ;;  %v7525_v2 = vor.u32 %v10888_v60, %v7524_v59 }
  0x33   : > { %1631 = vmatpush.bf16.msra.mxu3 %v7457_v9  ;;  %v10913_v0 = vld [vmem:[%s11733_s23 + $0x184] sm:$0xf]  ;;  %v7630_v3 = vld [vmem:[%s11733_s23 + $0x190] sm:$0xf0]  ;;  %v7653_v6 = vor.u32 %v10920_v62, %v7652_v61  ;;  %v7508_v7 = vld [vmem:[%s11733_s23 + $0x88] sm:$0xf] }
  0x34   : > { %v10941_v4 = vld [vmem:[%s11733_s23 + $0x264] sm:$0xf]  ;;  %v7742_v5 = vld [vmem:[%s11733_s23 + $0x270] sm:$0xf0]  ;;  %v10884_v8 = vld [vmem:[%s11733_s23 + $0x94] sm:$0xf0]  ;;  %v7633_v14 = vor.u32 %v10913_v0, %v7630_v3 }
  0x35   : > { %1593 = vmatpush.bf16.msra.mxu0 %v7437_v30  ;;  %v7636_v10 = vld [vmem:[%s11733_s23 + $0x188] sm:$0xf]  ;;  %v10916_v11 = vld [vmem:[%s11733_s23 + $0x194] sm:$0xf0]  ;;  %v10909_v12 = vld [vmem:[%s11733_s23 + $0x164] sm:$0xf]  ;;  %v7745_v20 = vor.u32 %v10941_v4, %v7742_v5  ;;  %v7509_v21 = vor.u32 %v10884_v8, %v7508_v7 }
  0x36   : > { %1619 = vmatpush.bf16.msra.mxu2 %v7693_v33  ;;  %1606 = vmatpush.bf16.msra.mxu1 %v7565_v34  ;;  %v7614_v13 = vld [vmem:[%s11733_s23 + $0x170] sm:$0xf0]  ;;  %v10937_v15 = vld [vmem:[%s11733_s23 + $0x244] sm:$0xf]  ;;  %v7492_v17 = vld [vmem:[%s11733_s23 + $0x68] sm:$0xf]  ;;  %v7637_v23 = vor.u32 %v10916_v11, %v7636_v10 }
  0x37   : > { %1632 = vmatpush.bf16.msra.mxu3 %v7441_v37  ;;  %v7726_v16 = vld [vmem:[%s11733_s23 + $0x250] sm:$0xf0]  ;;  %v10880_v18 = vld [vmem:[%s11733_s23 + $0x74] sm:$0xf0]  ;;  %v11842_v19 = vld [vmem:[%s11733_s23 + $0x2c8] sm:$0xff]  ;;  %v7617_v30 = vor.u32 %v10909_v12, %v7614_v13  ;;  %s13595_s24 = sld [smem:[#allocation7_spill]] }
  0x38   : > { %v7620_v24 = vld [vmem:[%s11733_s23 + $0x168] sm:$0xf]  ;;  %v10912_v28 = vld [vmem:[%s11733_s23 + $0x174] sm:$0xf0]  ;;  %v1387_v31 = vunpack.c.l.b16 %v11842_v19  ;;  %v7729_v32 = vor.u32 %v10937_v15, %v7726_v16  ;;  %v7493_v33 = vor.u32 %v10880_v18, %v7492_v17  ;;  %v10905_v34 = vld [vmem:[%s11733_s23 + $0x144] sm:$0xf] }
  0x39   : > { %1652 = vmatpush.bf16.msrb.mxu0 %v1578_v39  ;;  %v1012_v22 = vld.sshfl [vmem:[#allocation1 + $0x10] sm:$0xff pattern:$0x73625140]  ;;  %v1010_v9 = vld.sshfl [vmem:[#allocation1] sm:$0xff pattern:$0x73625140]  ;;  %v7621_v37 = vor.u32 %v10912_v28, %v7620_v24 }
  0x3a   : > { %1638 = vmatpush.bf16.msrb.mxu2 %v7681_v38  ;;  %1664 = vmatpush.bf16.msrb.mxu1 %v7557_v40  ;;  %v11845_v25 = vpack.c.bf16 %v1012_v22, %v1012_v22  ;;  %v11847_v26 = vpack.c.bf16 %v1010_v9, %v1010_v9  ;;  %v1011_v27 = vld.sshfl [vmem:[#allocation1 + $0x8] sm:$0xff pattern:$0x73625140]  ;;  %v7598_v35 = vld [vmem:[%s11733_s23 + $0x150] sm:$0xf0] }
  0x3b   : > { %1677 = vmatpush.bf16.msrb.mxu3 %v7685_v44  ;;  %v11850_v29 = vpack.c.bf16 %v1011_v27, %v1011_v27  ;;  %7008 = vst [vmem:[#allocation1] ss:$4 sm:$0xff] %v1006_v57  ;;  %v10933_v36 = vld [vmem:[%s11733_s23 + $0x224] sm:$0xf]  ;;  %v7710_v38 = vld [vmem:[%s11733_s23 + $0x230] sm:$0xf0]  ;;  %v7601_v43 = vor.u32 %v10905_v34, %v7598_v35  ;;  %v1479_v44 = vpack.c.b16 %v1387_v31, %v1387_v31 }
  0x3c   : > { %1594 = vmatmul.bf16.vlgmr.msra.gmra.mxu0 %v11847_v26  ;;  %7786 = vmatmul.msk.bf16.vlgmr.msra.gmra.mxu2 %vm1569_vm1, %v11845_v25  ;;  %v7476_v39 = vld [vmem:[%s11733_s23 + $0x48] sm:$0xf]  ;;  %v10876_v40 = vld [vmem:[%s11733_s23 + $0x54] sm:$0xf0]  ;;  %v7713_v45 = vor.u32 %v10933_v36, %v7710_v38  ;;  %v10901_v47 = vld [vmem:[%s11733_s23 + $0x124] sm:$0xf] }
  0x3d   : > { %1653 = vmatpush.bf16.msrb.mxu0 %v7777_v53  ;;  %v7604_v41 = vld [vmem:[%s11733_s23 + $0x148] sm:$0xf]  ;;  %v10908_v42 = vld [vmem:[%s11733_s23 + $0x154] sm:$0xf0]  ;;  %1607 = vmatmul.bf16.vlgmr.msra.gmra.mxu1 %v11850_v29  ;;  %v7477_v46 = vor.u32 %v10876_v40, %v7476_v39  ;;  %v7582_v48 = vld [vmem:[%s11733_s23 + $0x130] sm:$0xf0]  ;;  %s937_s6 = scalar_lea.vmem %s13595_s24, %s11575_s29  ;;  %s946_s29 = scalar_lea.vmem %s13567_s7, %s13583_s4 }
  0x3e   : > { %1639 = vmatpush.bf16.msrb.mxu2 %v7665_v50  ;;  %1665 = vmatpush.bf16.msrb.mxu1 %v7541_v54  ;;  %v10929_v49 = vld [vmem:[%s11733_s23 + $0x204] sm:$0xf]  ;;  %v7605_v50 = vor.u32 %v10908_v42, %v7604_v41  ;;  %v7694_v51 = vld [vmem:[%s11733_s23 + $0x210] sm:$0xf0]  ;;  %v7460_v52 = vld [vmem:[%s11733_s23 + $0x28] sm:$0xf]  ;;  %v1388_v54 = vunpack.c.h.b16 %v11842_v19  ;;  %v7585_v57 = vor.u32 %v10901_v47, %v7582_v48  ;;  %s954_s24 = scalar_lea.vmem %s13569_s9, %s13600_s28  ;;  %s970_s4 = scalar_lea.vmem %s13573_s13, %s13600_s28 }
  0x3f   : > { %1678 = vmatpush.bf16.msrb.mxu3 %v7669_v58  ;;  %v10872_v53 = vld [vmem:[%s11733_s23 + $0x34] sm:$0xf0]  ;;  %v7588_v55 = vld [vmem:[%s11733_s23 + $0x128] sm:$0xf]  ;;  %v1581_v58 = vsel %vm1573_vm0, %v1479_v44, 0  ;;  %v7697_v60 = vor.u32 %v10929_v49, %v7694_v51 }
  0x40   : > { %1633 = vmatmul.bf16.vlgmr.msra.gmra.mxu3 %v11847_v26  ;;  %v10904_v56 = vld [vmem:[%s11733_s23 + $0x134] sm:$0xf0]  ;;  %v10897_v59 = vld [vmem:[%s11733_s23 + $0x104] sm:$0xf]  ;;  %v7461_v61 = vor.u32 %v10872_v53, %v7460_v52  ;;  %v7566_v62 = vld [vmem:[%s11733_s23 + $0x110] sm:$0xf0]  ;;  %v1480_v5 = vpack.c.b16 %v1388_v54, %v1388_v54 }
  0x41   : > { %1654 = vmatpush.bf16.msrb.mxu0 %v7761_v1  ;;  %v10868_v0 = vld [vmem:[%s11733_s23 + $0x14] sm:$0xf0]  ;;  %v7589_v1 = vor.u32 %v10904_v56, %v7588_v55  ;;  %v10894_v3 = vld [vmem:[%s11733_s23 + $0xec] sm:$0xf]  ;;  %v7558_v4 = vld [vmem:[%s11733_s23 + $0xf8] sm:$0xf0]  ;;  %v7569_v10 = vor.u32 %v10897_v59, %v7566_v62 }
  0x42   : > { %1640 = vmatpush.bf16.msrb.mxu2 %v7649_v63  ;;  %1666 = vmatpush.bf16.msrb.mxu1 %v7525_v2  ;;  %v7444_v63 = vld [vmem:[%s11733_s23 + $0x8] sm:$0xf]  ;;  %v10952_v8 = vld [vmem:[%s11733_s23 + $0x2b4] sm:$0xf0]  ;;  %v10926_v11 = vld [vmem:[%s11733_s23 + $0x1ec] sm:$0xf] }
  0x43   : > { %1679 = vmatpush.bf16.msrb.mxu3 %v7653_v6  ;;  %v7572_v2 = vld [vmem:[%s11733_s23 + $0x108] sm:$0xf]  ;;  %v10900_v6 = vld [vmem:[%s11733_s23 + $0x114] sm:$0xf0]  ;;  %v7686_v12 = vld [vmem:[%s11733_s23 + $0x1f8] sm:$0xf0]  ;;  %v7445_v13 = vor.u32 %v10868_v0, %v7444_v63 }
  0x44   : > { %v7780_v7 = vld [vmem:[%s11733_s23 + $0x2a8] sm:$0xf]  ;;  %v7573_v15 = vor.u32 %v10900_v6, %v7572_v2  ;;  %v1584_v17 = vsel %vm1573_vm0, %v1480_v5, 0  ;;  %v10890_v18 = vld [vmem:[%s11733_s23 + $0xcc] sm:$0xf]  ;;  %v11929_v5 = vld [vmem:[%s11733_s23 + $0x590] sm:$0xff] }
  0x45   : > { %1655 = vmatpush.bf16.msrb.mxu0 %v7745_v20  ;;  %v7781_v16 = vor.u32 %v10952_v8, %v7780_v7  ;;  %v7542_v19 = vld [vmem:[%s11733_s23 + $0xd8] sm:$0xf0]  ;;  %v7689_v20 = vor.u32 %v10926_v11, %v7686_v12  ;;  %v10948_v22 = vld [vmem:[%s11733_s23 + $0x294] sm:$0xf0]  ;;  %v10922_v9 = vld [vmem:[%s11733_s23 + $0x1cc] sm:$0xf] }
  0x46   : > { %1641 = vmatpush.bf16.msrb.mxu2 %v7633_v14  ;;  %1667 = vmatpush.bf16.msrb.mxu1 %v7509_v21  ;;  %v7561_v14 = vor.u32 %v10894_v3, %v7558_v4  ;;  %v7764_v21 = vld [vmem:[%s11733_s23 + $0x288] sm:$0xf]  ;;  %v10950_v24 = vld [vmem:[%s11733_s23 + $0x2ac] sm:$0xf]  ;;  %v7782_v27 = vld [vmem:[%s11733_s23 + $0x2b8] sm:$0xf0]  ;;  %v7545_v28 = vor.u32 %v10890_v18, %v7542_v19  ;;  %v2103_v18 = vunpack.c.l.b16 %v11929_v5 }
  0x47   : > { %1680 = vmatpush.bf16.msrb.mxu3 %v7637_v23  ;;  %v7670_v23 = vld [vmem:[%s11733_s23 + $0x1d8] sm:$0xf0]  ;;  %v10886_v31 = vld [vmem:[%s11733_s23 + $0xac] sm:$0xf]  ;;  %v7785_v34 = vor.u32 %v10950_v24, %v7782_v27  ;;  %v7748_v35 = vld [vmem:[%s11733_s23 + $0x268] sm:$0xf] }
  0x48   : > { %v10944_v36 = vld [vmem:[%s11733_s23 + $0x274] sm:$0xf0]  ;;  %v7654_v38 = vld [vmem:[%s11733_s23 + $0x1b8] sm:$0xf0]  ;;  %v10946_v39 = vld [vmem:[%s11733_s23 + $0x28c] sm:$0xf] }
  0x49   : > { %1656 = vmatpush.bf16.msrb.mxu0 %v7729_v32  ;;  %v7526_v32 = vld [vmem:[%s11733_s23 + $0xb8] sm:$0xf0]  ;;  %v7749_v42 = vor.u32 %v10944_v36, %v7748_v35  ;;  %v7732_v47 = vld [vmem:[%s11733_s23 + $0x248] sm:$0xf]  ;;  %v10940_v48 = vld [vmem:[%s11733_s23 + $0x254] sm:$0xf0] }
  0x4a   : > { %1642 = vmatpush.bf16.msrb.mxu2 %v7617_v30  ;;  %1668 = vmatpush.bf16.msrb.mxu1 %v7493_v33  ;;  %v7765_v30 = vor.u32 %v10948_v22, %v7764_v21  ;;  %v7673_v33 = vor.u32 %v10922_v9, %v7670_v23  ;;  %v7766_v40 = vld [vmem:[%s11733_s23 + $0x298] sm:$0xf0]  ;;  %v7529_v41 = vor.u32 %v10886_v31, %v7526_v32  ;;  %v10914_v49 = vld [vmem:[%s11733_s23 + $0x18c] sm:$0xf]  ;;  %v7716_v59 = vld [vmem:[%s11733_s23 + $0x228] sm:$0xf] }
  0x4b   : > { %1681 = vmatpush.bf16.msrb.mxu3 %v7621_v37  ;;  %v10918_v37 = vld [vmem:[%s11733_s23 + $0x1ac] sm:$0xf]  ;;  %v7510_v44 = vld [vmem:[%s11733_s23 + $0x98] sm:$0xf0]  ;;  %v7733_v54 = vor.u32 %v10940_v48, %v7732_v47  ;;  %v7700_v8 = vld [vmem:[%s11733_s23 + $0x208] sm:$0xf] }
  0x4c   : > { %v10942_v51 = vld [vmem:[%s11733_s23 + $0x26c] sm:$0xf]  ;;  %v7750_v52 = vld [vmem:[%s11733_s23 + $0x278] sm:$0xf0]  ;;  %v7978_v32 = vld [vmem:[%s11733_s23 + $0x390] sm:$0xf] }
  0x4d   : > { %1657 = vmatpush.bf16.msrb.mxu0 %v7713_v45  ;;  %v7657_v45 = vor.u32 %v10918_v37, %v7654_v38  ;;  %v10878_v55 = vld [vmem:[%s11733_s23 + $0x6c] sm:$0xf]  ;;  %v7494_v56 = vld [vmem:[%s11733_s23 + $0x78] sm:$0xf0]  ;;  %v8218_v48 = vld [vmem:[%s11733_s23 + $0x570] sm:$0xf] }
  0x4e   : > { %1643 = vmatpush.bf16.msrb.mxu2 %v7601_v43  ;;  %1669 = vmatpush.bf16.msrb.mxu1 %v7477_v46  ;;  %v10882_v43 = vld [vmem:[%s11733_s23 + $0x8c] sm:$0xf]  ;;  %v7769_v46 = vor.u32 %v10946_v39, %v7766_v40  ;;  %v7622_v62 = vld [vmem:[%s11733_s23 + $0x178] sm:$0xf0]  ;;  %v8122_v40 = vld [vmem:[%s11733_s23 + $0x4b0] sm:$0xf] }
  0x4f   : > { %1682 = vmatpush.bf16.msrb.mxu3 %v7605_v50  ;;  %v7638_v50 = vld [vmem:[%s11733_s23 + $0x198] sm:$0xf0]  ;;  %v7513_v53 = vor.u32 %v10882_v43, %v7510_v44  ;;  %v10938_v63 = vld [vmem:[%s11733_s23 + $0x24c] sm:$0xf]  ;;  %v7962_v44 = vld [vmem:[%s11733_s23 + $0x370] sm:$0xf] }
  0x50   : > { %v7734_v0 = vld [vmem:[%s11733_s23 + $0x258] sm:$0xf0]  ;;  %v10874_v3 = vld [vmem:[%s11733_s23 + $0x4c] sm:$0xf] }
  0x51   : > { %1658 = vmatpush.bf16.msrb.mxu0 %v7697_v60  ;;  %v10936_v60 = vld [vmem:[%s11733_s23 + $0x234] sm:$0xf0]  ;;  %v7478_v4 = vld [vmem:[%s11733_s23 + $0x58] sm:$0xf0]  ;;  %v7737_v7 = vor.u32 %v10938_v63, %v7734_v0  ;;  %v10906_v11 = vld [vmem:[%s11733_s23 + $0x14c] sm:$0xf] }
  0x52   : > { %1644 = vmatpush.bf16.msrb.mxu2 %v7585_v57  ;;  %1670 = vmatpush.bf16.msrb.mxu1 %v7461_v61  ;;  %v7641_v57 = vor.u32 %v10914_v49, %v7638_v50  ;;  %v10910_v61 = vld [vmem:[%s11733_s23 + $0x16c] sm:$0xf]  ;;  %v7717_v2 = vor.u32 %v10936_v60, %v7716_v59  ;;  %v7606_v12 = vld [vmem:[%s11733_s23 + $0x158] sm:$0xf0]  ;;  %v11039_v49 = vld [vmem:[%s11733_s23 + $0x57c] sm:$0xf0] }
  0x53   : > { %1683 = vmatpush.bf16.msrb.mxu3 %v7589_v1  ;;  %v7497_v1 = vor.u32 %v10878_v55, %v7494_v56  ;;  %v7625_v6 = vor.u32 %v10910_v61, %v7622_v62  ;;  %v7462_v21 = vld [vmem:[%s11733_s23 + $0x38] sm:$0xf0]  ;;  %v7609_v22 = vor.u32 %v10906_v11, %v7606_v12  ;;  %v10902_v23 = vld [vmem:[%s11733_s23 + $0x12c] sm:$0xf]  ;;  %v11011_v55 = vld [vmem:[%s11733_s23 + $0x49c] sm:$0xf0] }
  0x54   : > { %7787 = vmatmul.msk.bf16.vlgmr.msrb.gmra.mxu0 %vm1569_vm1, %v11845_v25  ;;  %v7590_v27 = vld [vmem:[%s11733_s23 + $0x138] sm:$0xf0]  ;;  %v10866_v35 = vld [vmem:[%s11733_s23 + $0xc] sm:$0xf]  ;;  %v10971_v60 = vld [vmem:[%s11733_s23 + $0x35c] sm:$0xf0] }
  0x55   : > { %1691 = vmatpush.bf16.msra.mxu0 %v1581_v58  ;;  %v7753_v58 = vor.u32 %v10942_v51, %v7750_v52  ;;  %v7446_v36 = vld [vmem:[%s11733_s23 + $0x18] sm:$0xf0]  ;;  %v7593_v37 = vor.u32 %v10902_v23, %v7590_v27  ;;  %v10898_v39 = vld [vmem:[%s11733_s23 + $0x10c] sm:$0xf]  ;;  %v10981_v51 = vld [vmem:[%s11733_s23 + $0x3b4] sm:$0xf] }
  0x56   : > { %1645 = vmatpush.bf16.msrb.mxu2 %v7569_v10  ;;  %1671 = vmatpush.bf16.msrb.mxu1 %v7445_v13  ;;  %v10932_v10 = vld [vmem:[%s11733_s23 + $0x214] sm:$0xf0]  ;;  %v10934_v13 = vld [vmem:[%s11733_s23 + $0x22c] sm:$0xf]  ;;  %v7574_v43 = vld [vmem:[%s11733_s23 + $0x118] sm:$0xf0]  ;;  %v7449_v47 = vor.u32 %v10866_v35, %v7446_v36 }
  0x57   : > { %1684 = vmatpush.bf16.msrb.mxu3 %v7573_v15  ;;  %v7481_v15 = vor.u32 %v10874_v3, %v7478_v4  ;;  %v7701_v19 = vor.u32 %v10932_v10, %v7700_v8  ;;  %v7996_v52 = vld [vmem:[%s11733_s23 + $0x3c0] sm:$0xf0]  ;;  %v8202_v61 = vld [vmem:[%s11733_s23 + $0x550] sm:$0xf]  ;;  %v11035_v62 = vld [vmem:[%s11733_s23 + $0x55c] sm:$0xf0] }
  0x58   : > { %v7999_v59 = vor.u32 %v10981_v51, %v7996_v52  ;;  %v10977_v0 = vld [vmem:[%s11733_s23 + $0x394] sm:$0xf]  ;;  %v11007_v3 = vld [vmem:[%s11733_s23 + $0x47c] sm:$0xf0]  ;;  %v8186_v11 = vld [vmem:[%s11733_s23 + $0x530] sm:$0xf] }
  0x59   : > { %1692 = vmatpush.bf16.msra.mxu0 %v7781_v16  ;;  %1646 = vmatmul.bf16.vlgmr.msrb.gmra.mxu2 %v11850_v29  ;;  %v7994_v16 = vld [vmem:[%s11733_s23 + $0x3b0] sm:$0xf]  ;;  %v10967_v10 = vld [vmem:[%s11733_s23 + $0x33c] sm:$0xf0]  ;;  %v10969_v27 = vld [vmem:[%s11733_s23 + $0x354] sm:$0xf] }
  0x5a   : > { %1703 = vmatpush.bf16.msra.mxu2 %v7561_v14  ;;  %1716 = vmatpush.bf16.msra.mxu1 %v7689_v20  ;;  %v7718_v14 = vld [vmem:[%s11733_s23 + $0x238] sm:$0xf0]  ;;  %v10870_v20 = vld [vmem:[%s11733_s23 + $0x2c] sm:$0xf]  ;;  %v11031_v12 = vld [vmem:[%s11733_s23 + $0x53c] sm:$0xf0] }
  0x5b   : > { %1730 = vmatpush.bf16.msra.mxu3 %v1584_v17  ;;  %1672 = vmatmul.bf16.vlgmr.msrb.gmra.mxu1 %v11847_v26  ;;  %v10983_v17 = vld [vmem:[%s11733_s23 + $0x3bc] sm:$0xf0]  ;;  %v7721_v9 = vor.u32 %v10934_v13, %v7718_v14  ;;  %v7465_v31 = vor.u32 %v10870_v20, %v7462_v21  ;;  %v10973_v14 = vld [vmem:[%s11733_s23 + $0x374] sm:$0xf]  ;;  %v7914_v20 = vld [vmem:[%s11733_s23 + $0x310] sm:$0xf] }
  0x5c   : > { %1685 = vmatmul.bf16.vlgmr.msrb.gmra.mxu3 %v11850_v29  ;;  %v7995_v24 = vor.u32 %v10983_v17, %v7994_v16  ;;  %v8074_v16 = vld [vmem:[%s11733_s23 + $0x450] sm:$0xf]  ;;  %v11003_v17 = vld [vmem:[%s11733_s23 + $0x45c] sm:$0xf0]  ;;  %v10961_v51 = vld [vmem:[%s11733_s23 + $0x314] sm:$0xf] }
  0x5d   : > { %1693 = vmatpush.bf16.msra.mxu0 %v7765_v30  ;;  %v7702_v30 = vld [vmem:[%s11733_s23 + $0x218] sm:$0xf0]  ;;  %v11027_v23 = vld [vmem:[%s11733_s23 + $0x51c] sm:$0xf0] }
  0x5e   : > { %1704 = vmatpush.bf16.msra.mxu2 %v7545_v28  ;;  %1717 = vmatpush.bf16.msra.mxu1 %v7673_v33  ;;  %v10930_v28 = vld [vmem:[%s11733_s23 + $0x20c] sm:$0xf]  ;;  %v10979_v33 = vld [vmem:[%s11733_s23 + $0x39c] sm:$0xf0] }
  0x5f   : > { %1731 = vmatpush.bf16.msra.mxu3 %v7785_v34  ;;  %v2195_v34 = vpack.c.b16 %v2103_v18, %v2103_v18  ;;  %v7705_v38 = vor.u32 %v10930_v28, %v7702_v30  ;;  %v7948_v28 = vld [vmem:[%s11733_s23 + $0x360] sm:$0xf0]  ;;  %v8058_v30 = vld [vmem:[%s11733_s23 + $0x430] sm:$0xf]  ;;  %v10959_v36 = vld [vmem:[%s11733_s23 + $0x2fc] sm:$0xf0] }
  0x60   : > { %v7951_v35 = vor.u32 %v10969_v27, %v7948_v28 }
  0x61   : > { %1694 = vmatpush.bf16.msra.mxu0 %v7749_v42  ;;  %v7979_v42 = vor.u32 %v10979_v33, %v7978_v32 }
  0x62   : > { %1705 = vmatpush.bf16.msra.mxu2 %v7529_v41  ;;  %1718 = vmatpush.bf16.msra.mxu1 %v7657_v45  ;;  %v11015_v41 = vld [vmem:[%s11733_s23 + $0x4bc] sm:$0xf0] }
  0x63   : > { %1732 = vmatpush.bf16.msra.mxu3 %v7769_v46  ;;  %v10975_v45 = vld [vmem:[%s11733_s23 + $0x37c] sm:$0xf0]  ;;  %v2288_v46 = vsel %vm1573_vm0, %v2195_v34, 0  ;;  %v8123_v50 = vor.u32 %v11015_v41, %v8122_v40  ;;  %v7898_v34 = vld [vmem:[%s11733_s23 + $0x2f0] sm:$0xf] }
  0x64   : > { %v7963_v56 = vor.u32 %v10975_v45, %v7962_v44  ;;  %v10965_v41 = vld [vmem:[%s11733_s23 + $0x334] sm:$0xf]  ;;  %v10995_v44 = vld [vmem:[%s11733_s23 + $0x41c] sm:$0xf0]  ;;  %v7899_v45 = vor.u32 %v10959_v36, %v7898_v34 }
  0x65   : > { %1695 = vmatpush.bf16.msra.mxu0 %v7733_v54  ;;  %v8106_v54 = vld [vmem:[%s11733_s23 + $0x490] sm:$0xf]  ;;  %v11001_v34 = vld [vmem:[%s11733_s23 + $0x454] sm:$0xf] }
  0x66   : > { %1706 = vmatpush.bf16.msra.mxu2 %v7513_v53  ;;  %1719 = vmatpush.bf16.msra.mxu1 %v7641_v57  ;;  %v7577_v53 = vor.u32 %v10898_v39, %v7574_v43  ;;  %v8219_v57 = vor.u32 %v11039_v49, %v8218_v48  ;;  %v8107_v63 = vor.u32 %v11011_v55, %v8106_v54  ;;  %v2104_v39 = vunpack.c.h.b16 %v11929_v5  ;;  %v8042_v43 = vld [vmem:[%s11733_s23 + $0x410] sm:$0xf]  ;;  %v10955_v48 = vld [vmem:[%s11733_s23 + $0x2dc] sm:$0xf0]  ;;  %v7916_v54 = vld [vmem:[%s11733_s23 + $0x320] sm:$0xf0] }
  0x67   : > { %1733 = vmatpush.bf16.msra.mxu3 %v7753_v58  ;;  %v7946_v58 = vld [vmem:[%s11733_s23 + $0x350] sm:$0xf]  ;;  %v11013_v55 = vld [vmem:[%s11733_s23 + $0x4b4] sm:$0xf] }
  0x68   : > { %v7947_v4 = vor.u32 %v10971_v60, %v7946_v58  ;;  %v8138_v49 = vld [vmem:[%s11733_s23 + $0x4d0] sm:$0xf]  ;;  %v2196_v52 = vpack.c.b16 %v2104_v39, %v2104_v39  ;;  %v10991_v58 = vld [vmem:[%s11733_s23 + $0x3fc] sm:$0xf0]  ;;  %v11029_v36 = vld [vmem:[%s11733_s23 + $0x534] sm:$0xf] }
  0x69   : > { %1696 = vmatpush.bf16.msra.mxu0 %v7717_v2  ;;  %v8090_v2 = vld [vmem:[%s11733_s23 + $0x470] sm:$0xf]  ;;  %v11012_v39 = vld [vmem:[%s11733_s23 + $0x4a4] sm:$0xf0] }
  0x6a   : > { %1707 = vmatpush.bf16.msra.mxu2 %v7497_v1  ;;  %1720 = vmatpush.bf16.msra.mxu1 %v7625_v6  ;;  %v7980_v1 = vld [vmem:[%s11733_s23 + $0x3a0] sm:$0xf0]  ;;  %v8203_v6 = vor.u32 %v11035_v62, %v8202_v61  ;;  %v8091_v13 = vor.u32 %v11007_v3, %v8090_v2  ;;  %v7919_v61 = vor.u32 %v10961_v51, %v7916_v54  ;;  %v11009_v3 = vld [vmem:[%s11733_s23 + $0x494] sm:$0xf]  ;;  %v10972_v54 = vld [vmem:[%s11733_s23 + $0x364] sm:$0xf0] }
  0x6b   : > { %1734 = vmatpush.bf16.msra.mxu3 %v7737_v7  ;;  %v7930_v7 = vld [vmem:[%s11733_s23 + $0x330] sm:$0xf]  ;;  %v7983_v8 = vor.u32 %v10977_v0, %v7980_v1  ;;  %v10957_v0 = vld [vmem:[%s11733_s23 + $0x2f4] sm:$0xf]  ;;  %v7900_v1 = vld [vmem:[%s11733_s23 + $0x300] sm:$0xf0] }
  0x6c   : > { %v7931_v18 = vor.u32 %v10967_v10, %v7930_v7  ;;  %v8220_v7 = vld [vmem:[%s11733_s23 + $0x580] sm:$0xf0]  ;;  %v10987_v10 = vld [vmem:[%s11733_s23 + $0x3dc] sm:$0xf0] }
  0x6d   : > { %1697 = vmatpush.bf16.msra.mxu0 %v7701_v19  ;;  %v8187_v19 = vor.u32 %v11031_v12, %v8186_v11  ;;  %v8002_v11 = vld [vmem:[%s11733_s23 + $0x3b8] sm:$0xf]  ;;  %v10984_v12 = vld [vmem:[%s11733_s23 + $0x3c4] sm:$0xf0] }
  0x6e   : > { %1708 = vmatpush.bf16.msra.mxu2 %v7481_v15  ;;  %1721 = vmatpush.bf16.msra.mxu1 %v7609_v22  ;;  %v7964_v15 = vld [vmem:[%s11733_s23 + $0x380] sm:$0xf0]  ;;  %v10963_v22 = vld [vmem:[%s11733_s23 + $0x31c] sm:$0xf0] }
  0x6f   : > { %1735 = vmatpush.bf16.msra.mxu3 %v7721_v9  ;;  %v7967_v21 = vor.u32 %v10973_v14, %v7964_v15  ;;  %v8170_v9 = vld [vmem:[%s11733_s23 + $0x510] sm:$0xf]  ;;  %v7915_v32 = vor.u32 %v10963_v22, %v7914_v20  ;;  %v10953_v15 = vld [vmem:[%s11733_s23 + $0x2d4] sm:$0xf]  ;;  %v8092_v20 = vld [vmem:[%s11733_s23 + $0x480] sm:$0xf0]  ;;  %v8003_v22 = vor.u32 %v10984_v12, %v8002_v11 }
  0x70   : > { %7788 = vmatmul.msk.bf16.vlgmr.msra.gmra.mxu0 %vm1569_vm1, %v11845_v25  ;;  %v8171_v33 = vor.u32 %v11027_v23, %v8170_v9  ;;  %v8204_v9 = vld [vmem:[%s11733_s23 + $0x560] sm:$0xf0]  ;;  %v8130_v23 = vld [vmem:[%s11733_s23 + $0x4b8] sm:$0xf]  ;;  %v11017_v11 = vld [vmem:[%s11733_s23 + $0x4d4] sm:$0xf] }
  0x71   : > { %2299 = vmatpush.bf16.msrb.mxu0 %v7995_v24  ;;  %v8075_v24 = vor.u32 %v11003_v17, %v8074_v16  ;;  %v7884_v16 = vld [vmem:[%s11733_s23 + $0x2e0] sm:$0xf0] }
  0x72   : > { %1709 = vmatpush.bf16.msra.mxu2 %v7465_v31  ;;  %1722 = vmatpush.bf16.msra.mxu1 %v7593_v37  ;;  %v10999_v31 = vld [vmem:[%s11733_s23 + $0x43c] sm:$0xf0]  ;;  %v8154_v37 = vld [vmem:[%s11733_s23 + $0x4f0] sm:$0xf]  ;;  %v7887_v27 = vor.u32 %v10953_v15, %v7884_v16  ;;  %v8140_v12 = vld [vmem:[%s11733_s23 + $0x4e0] sm:$0xf0] }
  0x73   : > { %1736 = vmatpush.bf16.msra.mxu3 %v7705_v38  ;;  %v11023_v38 = vld [vmem:[%s11733_s23 + $0x4fc] sm:$0xf0]  ;;  %v8059_v40 = vor.u32 %v10999_v31, %v8058_v30  ;;  %v7986_v30 = vld [vmem:[%s11733_s23 + $0x398] sm:$0xf]  ;;  %v10980_v31 = vld [vmem:[%s11733_s23 + $0x3a4] sm:$0xf0] }
  0x75   : > { %2300 = vmatpush.bf16.msrb.mxu0 %v7979_v42  ;;  %v7932_v42 = vld [vmem:[%s11733_s23 + $0x340] sm:$0xf0] }
  0x76   : > { %1710 = vmatpush.bf16.msra.mxu2 %v7449_v47  ;;  %7789 = vmatmul.msk.bf16.vlgmr.msra.gmra.mxu3 %vm1569_vm1, %v11845_v25  ;;  %v7882_v47 = vld [vmem:[%s11733_s23 + $0x2d0] sm:$0xf]  ;;  %v7935_v5 = vor.u32 %v10965_v41, %v7932_v42  ;;  %v7970_v42 = vld [vmem:[%s11733_s23 + $0x378] sm:$0xf] }
  0x77   : > { %2326 = vmatpush.bf16.msrb.mxu3 %v2288_v46  ;;  %1723 = vmatpush.bf16.msra.mxu1 %v7577_v53  ;;  %v8155_v46 = vor.u32 %v11023_v38, %v8154_v37  ;;  %v8043_v53 = vor.u32 %v10995_v44, %v8042_v43  ;;  %v8188_v37 = vld [vmem:[%s11733_s23 + $0x540] sm:$0xf0]  ;;  %v8114_v38 = vld [vmem:[%s11733_s23 + $0x498] sm:$0xf]  ;;  %v10976_v43 = vld [vmem:[%s11733_s23 + $0x384] sm:$0xf0] }
  0x78   : > { %v8191_v44 = vor.u32 %v11029_v36, %v8188_v37  ;;  %v7971_v51 = vor.u32 %v10976_v43, %v7970_v42  ;;  %v10960_v36 = vld [vmem:[%s11733_s23 + $0x304] sm:$0xf0]  ;;  %v10978_v43 = vld [vmem:[%s11733_s23 + $0x39c] sm:$0xf] }
  0x79   : > { %2301 = vmatpush.bf16.msrb.mxu0 %v7963_v56  ;;  %1711 = vmatmul.bf16.vlgmr.msra.gmra.mxu2 %v11847_v26  ;;  %v8124_v56 = vld [vmem:[%s11733_s23 + $0x4c0] sm:$0xf0]  ;;  %v10992_v42 = vld [vmem:[%s11733_s23 + $0x404] sm:$0xf0] }
  0x7a   : > { %2312 = vmatpush.bf16.msrb.mxu2 %v8123_v50  ;;  %1724 = vmatmul.bf16.vlgmr.msra.gmra.mxu1 %v11850_v29  ;;  %v11019_v50 = vld [vmem:[%s11733_s23 + $0x4dc] sm:$0xf0]  ;;  %v8127_v62 = vor.u32 %v11013_v55, %v8124_v56  ;;  %v12055_v55 = vld [vmem:[%s11733_s23 + $0x598] sm:$0xff] }
  0x7b   : > { %2327 = vmatpush.bf16.msrb.mxu3 %v8219_v57  ;;  %2338 = vmatpush.bf16.msrb.mxu1 %v7999_v59  ;;  %v8026_v57 = vld [vmem:[%s11733_s23 + $0x3f0] sm:$0xf]  ;;  %v7883_v59 = vor.u32 %v10955_v48, %v7882_v47  ;;  %v8139_v60 = vor.u32 %v11019_v50, %v8138_v49  ;;  %v8060_v47 = vld [vmem:[%s11733_s23 + $0x440] sm:$0xf0]  ;;  %v11025_v48 = vld [vmem:[%s11733_s23 + $0x514] sm:$0xf] }
  0x7c   : > { %v8027_v2 = vor.u32 %v10991_v58, %v8026_v57  ;;  %v8098_v49 = vld [vmem:[%s11733_s23 + $0x478] sm:$0xf]  ;;  %v11008_v50 = vld [vmem:[%s11733_s23 + $0x484] sm:$0xf0]  ;;  %v10993_v58 = vld [vmem:[%s11733_s23 + $0x414] sm:$0xf] }
  0x7d   : > { %2302 = vmatpush.bf16.msrb.mxu0 %v7947_v4  ;;  %v8108_v4 = vld [vmem:[%s11733_s23 + $0x4a0] sm:$0xf0]  ;;  %v8099_v57 = vor.u32 %v11008_v50, %v8098_v49 }
  0x7e   : > { %2313 = vmatpush.bf16.msrb.mxu2 %v8107_v63  ;;  %v2291_v63 = vsel %vm1573_vm0, %v2196_v52, 0  ;;  %v8111_v14 = vor.u32 %v11009_v3, %v8108_v4  ;;  %v7938_v3 = vld [vmem:[%s11733_s23 + $0x338] sm:$0xf]  ;;  %v10968_v4 = vld [vmem:[%s11733_s23 + $0x344] sm:$0xf0] }
  0x7f   : > { %2328 = vmatpush.bf16.msrb.mxu3 %v8203_v6  ;;  %2339 = vmatpush.bf16.msrb.mxu1 %v7983_v8  ;;  %v11037_v6 = vld [vmem:[%s11733_s23 + $0x574] sm:$0xf]  ;;  %v8010_v8 = vld [vmem:[%s11733_s23 + $0x3d0] sm:$0xf]  ;;  %v7939_v15 = vor.u32 %v10968_v4, %v7938_v3  ;;  %v8116_v3 = vld [vmem:[%s11733_s23 + $0x4a8] sm:$0xf0] }
  0x80   : > { %v8223_v17 = vor.u32 %v11037_v6, %v8220_v7 }
  0x81   : > { %2303 = vmatpush.bf16.msrb.mxu0 %v7931_v18  ;;  %v8011_v18 = vor.u32 %v10987_v10, %v8010_v8  ;;  %v10989_v8 = vld [vmem:[%s11733_s23 + $0x3f4] sm:$0xf]  ;;  %v8028_v10 = vld [vmem:[%s11733_s23 + $0x400] sm:$0xf0] }
  0x82   : > { %2314 = vmatpush.bf16.msrb.mxu2 %v8091_v13  ;;  %v7903_v13 = vor.u32 %v10957_v0, %v7900_v1  ;;  %v2105_v1 = vunpack.c.l.b16 %v12055_v55 }
  0x83   : > { %2329 = vmatpush.bf16.msrb.mxu3 %v8187_v19  ;;  %2340 = vmatpush.bf16.msrb.mxu1 %v7967_v21  ;;  %v11005_v19 = vld [vmem:[%s11733_s23 + $0x474] sm:$0xf] }
  0x84   : > { %v11033_v21 = vld [vmem:[%s11733_s23 + $0x554] sm:$0xf]  ;;  %v8095_v28 = vor.u32 %v11005_v19, %v8092_v20  ;;  %v2197_v16 = vpack.c.b16 %v2105_v1, %v2105_v1  ;;  %v10964_v19 = vld [vmem:[%s11733_s23 + $0x324] sm:$0xf0]  ;;  %v8143_v20 = vor.u32 %v11017_v11, %v8140_v12  ;;  %v11038_v11 = vld [vmem:[%s11733_s23 + $0x57c] sm:$0xf] }
  0x85   : > { %2304 = vmatpush.bf16.msrb.mxu0 %v7915_v32  ;;  %v8207_v32 = vor.u32 %v11033_v21, %v8204_v9  ;;  %v8012_v9 = vld [vmem:[%s11733_s23 + $0x3e0] sm:$0xf0]  ;;  %v8228_v12 = vld [vmem:[%s11733_s23 + $0x588] sm:$0xf0] }
  0x86   : > { %2315 = vmatpush.bf16.msrb.mxu2 %v8075_v24  ;;  %v11016_v24 = vld [vmem:[%s11733_s23 + $0x4c4] sm:$0xf0] }
  0x87   : > { %2330 = vmatpush.bf16.msrb.mxu3 %v8171_v33  ;;  %2341 = vmatpush.bf16.msrb.mxu1 %v7951_v35  ;;  %v8131_v33 = vor.u32 %v11016_v24, %v8130_v23  ;;  %v8076_v35 = vld [vmem:[%s11733_s23 + $0x460] sm:$0xf0]  ;;  %v8050_v23 = vld [vmem:[%s11733_s23 + $0x418] sm:$0xf]  ;;  %v10996_v24 = vld [vmem:[%s11733_s23 + $0x424] sm:$0xf0] }
  0x88   : > { %v8079_v41 = vor.u32 %v11001_v34, %v8076_v35  ;;  %v7906_v35 = vld [vmem:[%s11733_s23 + $0x2f8] sm:$0xf]  ;;  %v8051_v37 = vor.u32 %v10996_v24, %v8050_v23  ;;  %v8212_v23 = vld [vmem:[%s11733_s23 + $0x568] sm:$0xf0] }
  0x89   : > { %2305 = vmatpush.bf16.msrb.mxu0 %v7899_v45  ;;  %v8115_v45 = vor.u32 %v11012_v39, %v8114_v38  ;;  %v8034_v39 = vld [vmem:[%s11733_s23 + $0x3f8] sm:$0xf] }
  0x8a   : > { %2316 = vmatpush.bf16.msrb.mxu2 %v8059_v40  ;;  %v7987_v40 = vor.u32 %v10980_v31, %v7986_v30  ;;  %v2294_v30 = vsel %vm1573_vm0, %v2197_v16, 0  ;;  %v8035_v49 = vor.u32 %v10992_v42, %v8034_v39  ;;  %v8100_v16 = vld [vmem:[%s11733_s23 + $0x488] sm:$0xf0] }
  0x8b   : > { %2331 = vmatpush.bf16.msrb.mxu3 %v8155_v46  ;;  %2342 = vmatpush.bf16.msrb.mxu1 %v7935_v5  ;;  %v10997_v46 = vld [vmem:[%s11733_s23 + $0x434] sm:$0xf]  ;;  %v8172_v5 = vld [vmem:[%s11733_s23 + $0x520] sm:$0xf0] }
  0x8c   : > { %v8063_v52 = vor.u32 %v10997_v46, %v8060_v47  ;;  %v8175_v56 = vor.u32 %v11025_v48, %v8172_v5  ;;  %v8210_v46 = vld [vmem:[%s11733_s23 + $0x558] sm:$0xf]  ;;  %v11036_v47 = vld [vmem:[%s11733_s23 + $0x564] sm:$0xf0] }
  0x8d   : > { %2306 = vmatpush.bf16.msrb.mxu0 %v7883_v59  ;;  %v8044_v59 = vld [vmem:[%s11733_s23 + $0x420] sm:$0xf0]  ;;  %v7890_v48 = vld [vmem:[%s11733_s23 + $0x2d8] sm:$0xf]  ;;  %v10956_v5 = vld [vmem:[%s11733_s23 + $0x2e4] sm:$0xf0] }
  0x8e   : > { %2317 = vmatpush.bf16.msrb.mxu2 %v8043_v53  ;;  %v7954_v53 = vld [vmem:[%s11733_s23 + $0x358] sm:$0xf] }
  0x8f   : > { %2332 = vmatpush.bf16.msrb.mxu3 %v8139_v60  ;;  %2343 = vmatpush.bf16.msrb.mxu1 %v7919_v61  ;;  %v11021_v60 = vld [vmem:[%s11733_s23 + $0x4f4] sm:$0xf]  ;;  %v8156_v61 = vld [vmem:[%s11733_s23 + $0x500] sm:$0xf0]  ;;  %v7955_v0 = vor.u32 %v10972_v54, %v7954_v53  ;;  %v8132_v53 = vld [vmem:[%s11733_s23 + $0x4c8] sm:$0xf0] }
  0x90   : > { %2307 = vmatmul.bf16.vlgmr.msrb.gmra.mxu0 %v11847_v26  ;;  %v8159_v6 = vor.u32 %v11021_v60, %v8156_v61  ;;  %v8194_v60 = vld [vmem:[%s11733_s23 + $0x538] sm:$0xf]  ;;  %v11032_v61 = vld [vmem:[%s11733_s23 + $0x544] sm:$0xf0] }
  0x91   : > { %2351 = vmatpush.bf16.msra.mxu0 %v8127_v62  ;;  %v8082_v62 = vld [vmem:[%s11733_s23 + $0x458] sm:$0xf]  ;;  %v8195_v4 = vor.u32 %v11032_v61, %v8194_v60  ;;  %v7892_v60 = vld [vmem:[%s11733_s23 + $0x2e8] sm:$0xf0]  ;;  %v11022_v61 = vld [vmem:[%s11733_s23 + $0x4fc] sm:$0xf] }
  0x92   : > { %2318 = vmatpush.bf16.msrb.mxu2 %v8027_v2  ;;  %8232 = vmatmul.msk.bf16.vlgmr.msrb.gmra.mxu3 %vm1569_vm1, %v11845_v25  ;;  %v8047_v2 = vor.u32 %v10993_v58, %v8044_v59  ;;  %v7972_v58 = vld [vmem:[%s11733_s23 + $0x388] sm:$0xf0]  ;;  %v7891_v59 = vor.u32 %v10956_v5, %v7890_v48 }
  0x93   : > { %2365 = vmatpush.bf16.msra.mxu3 %v2291_v63  ;;  %2344 = vmatpush.bf16.msrb.mxu1 %v7903_v13  ;;  %v11004_v63 = vld [vmem:[%s11733_s23 + $0x464] sm:$0xf0]  ;;  %v8066_v13 = vld [vmem:[%s11733_s23 + $0x438] sm:$0xf]  ;;  %v7908_v48 = vld [vmem:[%s11733_s23 + $0x308] sm:$0xf0] }
  0x94   : > { %v8083_v7 = vor.u32 %v11004_v63, %v8082_v62 }
  0x95   : > { %2352 = vmatpush.bf16.msra.mxu0 %v8111_v14  ;;  %v11000_v14 = vld [vmem:[%s11733_s23 + $0x444] sm:$0xf0] }
  0x96   : > { %2319 = vmatpush.bf16.msrb.mxu2 %v8011_v18  ;;  %v7922_v18 = vld [vmem:[%s11733_s23 + $0x318] sm:$0xf]  ;;  %v8067_v21 = vor.u32 %v11000_v14, %v8066_v13 }
  0x97   : > { %2366 = vmatpush.bf16.msra.mxu3 %v8223_v17  ;;  %2345 = vmatpush.bf16.msrb.mxu1 %v7887_v27  ;;  %v8031_v17 = vor.u32 %v10989_v8, %v8028_v10  ;;  %v10982_v27 = vld [vmem:[%s11733_s23 + $0x3bc] sm:$0xf]  ;;  %v7923_v31 = vor.u32 %v10964_v19, %v7922_v18  ;;  %v7956_v8 = vld [vmem:[%s11733_s23 + $0x368] sm:$0xf0]  ;;  %v11028_v10 = vld [vmem:[%s11733_s23 + $0x524] sm:$0xf0]  ;;  %v8231_v18 = vor.u32 %v11038_v11, %v8228_v12 }
  0x98   : > { %v8162_v19 = vld [vmem:[%s11733_s23 + $0x4f8] sm:$0xf]  ;;  %v8036_v11 = vld [vmem:[%s11733_s23 + $0x408] sm:$0xf0] }
  0x99   : > { %2353 = vmatpush.bf16.msra.mxu0 %v8095_v28  ;;  %2320 = vmatmul.bf16.vlgmr.msrb.gmra.mxu2 %v11850_v29  ;;  %v8004_v28 = vld [vmem:[%s11733_s23 + $0x3c8] sm:$0xf0] }
  0x9a   : > { %2377 = vmatpush.bf16.msra.mxu2 %v8003_v22  ;;  %2346 = vmatmul.bf16.vlgmr.msrb.gmra.mxu1 %v11847_v26  ;;  %v10985_v22 = vld [vmem:[%s11733_s23 + $0x3d4] sm:$0xf]  ;;  %v8007_v38 = vor.u32 %v10982_v27, %v8004_v28  ;;  %v11002_v28 = vld [vmem:[%s11733_s23 + $0x45c] sm:$0xf] }
  0x9b   : > { %2367 = vmatpush.bf16.msra.mxu3 %v8207_v32  ;;  %2390 = vmatpush.bf16.msra.mxu1 %v8131_v33  ;;  %v8226_v32 = vld [vmem:[%s11733_s23 + $0x578] sm:$0xf]  ;;  %v11040_v33 = vld [vmem:[%s11733_s23 + $0x584] sm:$0xf0]  ;;  %v8015_v34 = vor.u32 %v10985_v22, %v8012_v9  ;;  %v11034_v9 = vld [vmem:[%s11733_s23 + $0x55c] sm:$0xf] }
  0x9c   : > { %v11024_v22 = vld [vmem:[%s11733_s23 + $0x504] sm:$0xf0] }
  0x9d   : > { %2354 = vmatpush.bf16.msra.mxu0 %v8079_v41  ;;  %v8227_v41 = vor.u32 %v11040_v33, %v8226_v32  ;;  %v8215_v32 = vor.u32 %v11034_v9, %v8212_v23  ;;  %v8146_v33 = vld [vmem:[%s11733_s23 + $0x4d8] sm:$0xf]  ;;  %v11059_v9 = vld [vmem:[%s11733_s23 + $0x62c] sm:$0xf0] }
  0x9e   : > { %2378 = vmatpush.bf16.msra.mxu2 %v7987_v40  ;;  %v2106_v40 = vunpack.c.h.b16 %v12055_v55  ;;  %v8211_v55 = vor.u32 %v11036_v47, %v8210_v46  ;;  %v10958_v47 = vld [vmem:[%s11733_s23 + $0x2fc] sm:$0xf] }
  0x9f   : > { %2368 = vmatpush.bf16.msra.mxu3 %v8191_v44  ;;  %2391 = vmatpush.bf16.msra.mxu1 %v8115_v45  ;;  %v7988_v44 = vld [vmem:[%s11733_s23 + $0x3a8] sm:$0xf0]  ;;  %v7907_v45 = vor.u32 %v10960_v36, %v7906_v35  ;;  %v11020_v36 = vld [vmem:[%s11733_s23 + $0x4e4] sm:$0xf0] }
  0xa0   : > { %v7991_v50 = vor.u32 %v10978_v43, %v7988_v44  ;;  %v2198_v54 = vpack.c.b16 %v2106_v40, %v2106_v40  ;;  %v7924_v35 = vld [vmem:[%s11733_s23 + $0x328] sm:$0xf0]  ;;  %v8440_v40 = vld [vmem:[%s11733_s23 + $0x680] sm:$0xf]  ;;  %v10998_v43 = vld [vmem:[%s11733_s23 + $0x43c] sm:$0xf] }
  0xa1   : > { %2355 = vmatpush.bf16.msra.mxu0 %v8063_v52  ;;  %v11014_v52 = vld [vmem:[%s11733_s23 + $0x4bc] sm:$0xf]  ;;  %v8068_v44 = vld [vmem:[%s11733_s23 + $0x448] sm:$0xf0] }
  0xa2   : > { %2379 = vmatpush.bf16.msra.mxu2 %v7971_v51  ;;  %v8018_v51 = vld [vmem:[%s11733_s23 + $0x3d8] sm:$0xf]  ;;  %v8135_v62 = vor.u32 %v11014_v52, %v8132_v53  ;;  %v2297_v1 = vsel %vm1573_vm0, %v2198_v54, 0  ;;  %v8071_v52 = vor.u32 %v10998_v43, %v8068_v44  ;;  %v8424_v53 = vld [vmem:[%s11733_s23 + $0x660] sm:$0xf] }
  0xa3   : > { %2369 = vmatpush.bf16.msra.mxu3 %v8175_v56  ;;  %2392 = vmatpush.bf16.msra.mxu1 %v8099_v57  ;;  %v10988_v56 = vld [vmem:[%s11733_s23 + $0x3e4] sm:$0xf0]  ;;  %v10974_v57 = vld [vmem:[%s11733_s23 + $0x37c] sm:$0xf]  ;;  %v11067_v54 = vld [vmem:[%s11733_s23 + $0x66c] sm:$0xf0] }
  0xa4   : > { %v8019_v63 = vor.u32 %v10988_v56, %v8018_v51  ;;  %v12142_v51 = vld [vmem:[%s11733_s23 + $0x860] sm:$0xff]  ;;  %v10994_v56 = vld [vmem:[%s11733_s23 + $0x41c] sm:$0xf]  ;;  %v11127_v43 = vld [vmem:[%s11733_s23 + $0x84c] sm:$0xf0] }
  0xa5   : > { %2356 = vmatpush.bf16.msra.mxu0 %v8047_v2  ;;  %v11010_v2 = vld [vmem:[%s11733_s23 + $0x49c] sm:$0xf] }
  0xa6   : > { %2380 = vmatpush.bf16.msra.mxu2 %v7955_v0  ;;  %v7975_v0 = vor.u32 %v10974_v57, %v7972_v58  ;;  %v8119_v13 = vor.u32 %v11010_v2, %v8116_v3  ;;  %v8052_v57 = vld [vmem:[%s11733_s23 + $0x428] sm:$0xf0]  ;;  %v10954_v58 = vld [vmem:[%s11733_s23 + $0x2dc] sm:$0xf]  ;;  %v8568_v2 = vld [vmem:[%s11733_s23 + $0x780] sm:$0xf] }
  0xa7   : > { %2370 = vmatpush.bf16.msra.mxu3 %v8159_v6  ;;  %2393 = vmatpush.bf16.msra.mxu1 %v8083_v7  ;;  %v8178_v6 = vld [vmem:[%s11733_s23 + $0x518] sm:$0xf]  ;;  %v10970_v7 = vld [vmem:[%s11733_s23 + $0x35c] sm:$0xf]  ;;  %v11103_v3 = vld [vmem:[%s11733_s23 + $0x78c] sm:$0xf0] }
  0xa8   : > { %v7959_v14 = vor.u32 %v10970_v7, %v7956_v8  ;;  %v11063_v7 = vld [vmem:[%s11733_s23 + $0x64c] sm:$0xf0]  ;;  %v7895_v8 = vor.u32 %v10954_v58, %v7892_v60 }
  0xa9   : > { %2357 = vmatpush.bf16.msra.mxu0 %v8031_v17  ;;  %v8179_v17 = vor.u32 %v11028_v10, %v8178_v6  ;;  %v8408_v6 = vld [vmem:[%s11733_s23 + $0x640] sm:$0xf]  ;;  %v10990_v10 = vld [vmem:[%s11733_s23 + $0x3fc] sm:$0xf] }
  0xaa   : > { %2381 = vmatpush.bf16.msra.mxu2 %v7939_v15  ;;  %v11006_v15 = vld [vmem:[%s11733_s23 + $0x47c] sm:$0xf] }
  0xab   : > { %2371 = vmatpush.bf16.msra.mxu3 %v8143_v20  ;;  %2394 = vmatpush.bf16.msra.mxu1 %v8067_v21  ;;  %v10966_v20 = vld [vmem:[%s11733_s23 + $0x33c] sm:$0xf]  ;;  %v7940_v21 = vld [vmem:[%s11733_s23 + $0x348] sm:$0xf0]  ;;  %v8103_v24 = vor.u32 %v11006_v15, %v8100_v16 }
  0xac   : > { %v7943_v27 = vor.u32 %v10966_v20, %v7940_v21  ;;  %v11018_v15 = vld [vmem:[%s11733_s23 + $0x4dc] sm:$0xf]  ;;  %v11099_v20 = vld [vmem:[%s11733_s23 + $0x76c] sm:$0xf0]  ;;  %v8039_v21 = vor.u32 %v10990_v10, %v8036_v11  ;;  %v8632_v11 = vld [vmem:[%s11733_s23 + $0x800] sm:$0xf] }
  0xad   : > { %2358 = vmatpush.bf16.msra.mxu0 %v8015_v34  ;;  %v10962_v34 = vld [vmem:[%s11733_s23 + $0x31c] sm:$0xf]  ;;  %v11047_v10 = vld [vmem:[%s11733_s23 + $0x5cc] sm:$0xf0] }
  0xae   : > { %2382 = vmatpush.bf16.msra.mxu2 %v7923_v31  ;;  %8233 = vmatmul.msk.bf16.vlgmr.msra.gmra.mxu3 %vm1569_vm1, %v11845_v25  ;;  %v8163_v31 = vor.u32 %v11024_v22, %v8162_v19  ;;  %v7927_v42 = vor.u32 %v10962_v34, %v7924_v35  ;;  %v8552_v19 = vld [vmem:[%s11733_s23 + $0x760] sm:$0xf]  ;;  %v8442_v34 = vld [vmem:[%s11733_s23 + $0x690] sm:$0xf0] }
  0xaf   : > { %2404 = vmatpush.bf16.msrb.mxu3 %v2294_v30  ;;  %2395 = vmatpush.bf16.msra.mxu1 %v8051_v37  ;;  %v8084_v30 = vld [vmem:[%s11733_s23 + $0x468] sm:$0xf0]  ;;  %v11030_v37 = vld [vmem:[%s11733_s23 + $0x53c] sm:$0xf]  ;;  %v8392_v22 = vld [vmem:[%s11733_s23 + $0x620] sm:$0xf] }
  0xb0   : > { %2359 = vmatmul.bf16.vlgmr.msra.gmra.mxu0 %v11850_v29  ;;  %v8087_v39 = vor.u32 %v11002_v28, %v8084_v30  ;;  %v8393_v35 = vor.u32 %v11059_v9, %v8392_v22  ;;  %v11083_v22 = vld [vmem:[%s11733_s23 + $0x6ec] sm:$0xf0] }
  0xb1   : > { %2416 = vmatpush.bf16.msrb.mxu0 %v8007_v38  ;;  %v8196_v38 = vld [vmem:[%s11733_s23 + $0x548] sm:$0xf0]  ;;  %v11043_v9 = vld [vmem:[%s11733_s23 + $0x5ac] sm:$0xf0] }
  0xb2   : > { %2383 = vmatpush.bf16.msra.mxu2 %v7907_v45  ;;  %v8147_v45 = vor.u32 %v11020_v36, %v8146_v33  ;;  %v8199_v46 = vor.u32 %v11030_v37, %v8196_v38  ;;  %v11069_v33 = vld [vmem:[%s11733_s23 + $0x684] sm:$0xf]  ;;  %v8376_v36 = vld [vmem:[%s11733_s23 + $0x600] sm:$0xf]  ;;  %v11095_v38 = vld [vmem:[%s11733_s23 + $0x74c] sm:$0xf0] }
  0xb3   : > { %2405 = vmatpush.bf16.msrb.mxu3 %v8227_v41  ;;  %2396 = vmatpush.bf16.msra.mxu1 %v8035_v49  ;;  %v11071_v41 = vld [vmem:[%s11733_s23 + $0x68c] sm:$0xf0]  ;;  %v11026_v49 = vld [vmem:[%s11733_s23 + $0x51c] sm:$0xf]  ;;  %v8536_v37 = vld [vmem:[%s11733_s23 + $0x740] sm:$0xf] }
  0xb4   : > { %v8441_v5 = vor.u32 %v11071_v41, %v8440_v40  ;;  %v11055_v41 = vld [vmem:[%s11733_s23 + $0x60c] sm:$0xf0] }
  0xb5   : > { %2417 = vmatpush.bf16.msrb.mxu0 %v7991_v50  ;;  %v8180_v50 = vld [vmem:[%s11733_s23 + $0x528] sm:$0xf0] }
  0xb6   : > { %2384 = vmatpush.bf16.msra.mxu2 %v7891_v59  ;;  %v8183_v59 = vor.u32 %v11026_v49, %v8180_v50  ;;  %v8360_v50 = vld [vmem:[%s11733_s23 + $0x5e0] sm:$0xf] }
  0xb7   : > { %2406 = vmatpush.bf16.msrb.mxu3 %v8211_v55  ;;  %2397 = vmatpush.bf16.msra.mxu1 %v8019_v63  ;;  %v7911_v55 = vor.u32 %v10958_v47, %v7908_v48  ;;  %v12155_v63 = vld [vmem:[%s928_s27] sm:$0xf]  ;;  %v11065_v47 = vld [vmem:[%s11733_s23 + $0x664] sm:$0xf]  ;;  %v8426_v48 = vld [vmem:[%s11733_s23 + $0x670] sm:$0xf0] }
  0xb8   : > { %v12167_v12 = vperm.slane %v12155_v63, 0  ;;  %s13596_s27 = sld [smem:[#allocation8_spill]] }
  0xb9   : > { %2418 = vmatpush.bf16.msrb.mxu0 %v7975_v0  ;;  %2385 = vmatmul.bf16.vlgmr.msra.gmra.mxu2 %v11847_v26  ;;  %v8425_v0 = vor.u32 %v11067_v54, %v8424_v53  ;;  %v1595_v23 = vpop.f32.mrf.mxu0  ;;  %v11091_v53 = vld [vmem:[%s11733_s23 + $0x72c] sm:$0xf0] }
  0xba   : > { %2429 = vmatpush.bf16.msrb.mxu2 %v8135_v62  ;;  %2398 = vmatmul.bf16.vlgmr.msra.gmra.mxu1 %v11850_v29  ;;  %v2820_v62 = vunpack.c.l.b16 %v12142_v51  ;;  %v1596_v28 = vadd.f32 %v1595_v23, %v12167_v12  ;;  %v11051_v54 = vld [vmem:[%s11733_s23 + $0x5ec] sm:$0xf0]  ;;  %v8616_v23 = vld [vmem:[%s11733_s23 + $0x7e0] sm:$0xf] }
  0xbb   : > { %2407 = vmatpush.bf16.msrb.mxu3 %v8195_v4  ;;  %2443 = vmatpush.bf16.msrb.mxu1 %v2297_v1  ;;  %v8164_v1 = vld [vmem:[%s11733_s23 + $0x508] sm:$0xf0]  ;;  %v8055_v4 = vor.u32 %v10994_v56, %v8052_v57  ;;  %v11123_v56 = vld [vmem:[%s11733_s23 + $0x82c] sm:$0xf0] }
  0xbc   : > { %v2912_v16 = vpack.c.b16 %v2820_v62, %v2820_v62 }
  0xbd   : > { %2419 = vmatpush.bf16.msrb.mxu0 %v7959_v14  ;;  %v8569_v14 = vor.u32 %v11103_v3, %v8568_v2  ;;  %v8361_v2 = vor.u32 %v11051_v54, %v8360_v50  ;;  %v11049_v50 = vld [vmem:[%s11733_s23 + $0x5e4] sm:$0xf]  ;;  %v8456_v54 = vld [vmem:[%s11733_s23 + $0x6a0] sm:$0xf] }
  0xbe   : > { %2430 = vmatpush.bf16.msrb.mxu2 %v8119_v13  ;;  %v8167_v13 = vor.u32 %v11022_v61, %v8164_v1  ;;  %v8410_v1 = vld [vmem:[%s11733_s23 + $0x650] sm:$0xf0]  ;;  %s13091_s30 = scalar_lea.vmem %s13596_s27, %s11576_s25  ;;  %s10860_s27 = sshll.u32 %s13600_s28, 6 }
  0xbf   : > { %2408 = vmatpush.bf16.msrb.mxu3 %v8179_v17  ;;  %2444 = vmatpush.bf16.msrb.mxu1 %v8231_v18  ;;  %v8409_v17 = vor.u32 %v11063_v7, %v8408_v6  ;;  %v8148_v18 = vld [vmem:[%s11733_s23 + $0x4e8] sm:$0xf0]  ;;  %v1621_v57 = vpop.f32.mrf.mxu2  ;;  %v8504_v6 = vld [vmem:[%s11733_s23 + $0x700] sm:$0xf]  ;;  %v11087_v7 = vld [vmem:[%s11733_s23 + $0x70c] sm:$0xf0] }
  0xc0   : > { %v8151_v30 = vor.u32 %v11018_v15, %v8148_v18  ;;  %v8505_v15 = vor.u32 %v11087_v7, %v8504_v6  ;;  %v8448_v6 = vld [vmem:[%s11733_s23 + $0x688] sm:$0xf]  ;;  %v11072_v7 = vld [vmem:[%s11733_s23 + $0x694] sm:$0xf0] }
  0xc1   : > { %2420 = vmatpush.bf16.msrb.mxu0 %v7943_v27  ;;  %v8020_v27 = vld [vmem:[%s11733_s23 + $0x3e8] sm:$0xf0]  ;;  %v1597_v58 = vpop.f32.mrf.mxu0 }
  0xc2   : > { %2431 = vmatpush.bf16.msrb.mxu2 %v8103_v24  ;;  %v10986_v24 = vld [vmem:[%s11733_s23 + $0x3dc] sm:$0xf] }
  0xc3   : > { %2409 = vmatpush.bf16.msrb.mxu3 %v8163_v31  ;;  %2445 = vmatpush.bf16.msrb.mxu1 %v8215_v32  ;;  %v8553_v31 = vor.u32 %v11099_v20, %v8552_v19  ;;  %v3005_v32 = vsel %vm1573_vm0, %v2912_v16, 0  ;;  %v8023_v40 = vor.u32 %v10986_v24, %v8020_v27  ;;  %v12200_v61 = vpop.f32.mrf.mxu3  ;;  %v11057_v16 = vld [vmem:[%s11733_s23 + $0x624] sm:$0xf]  ;;  %v8328_v20 = vld [vmem:[%s11733_s23 + $0x5a0] sm:$0xf] }
  0xc4   : > { %v11115_v24 = vld [vmem:[%s11733_s23 + $0x7ec] sm:$0xf0] }
  0xc5   : > { %2421 = vmatpush.bf16.msrb.mxu0 %v7927_v42  ;;  %v8664_v42 = vld [vmem:[%s11733_s23 + $0x840] sm:$0xf] }
  0xc6   : > { %2432 = vmatpush.bf16.msrb.mxu2 %v8087_v39  ;;  %v1608_v39 = vpop.f32.mrf.mxu1  ;;  %v8665_v49 = vor.u32 %v11127_v43, %v8664_v42  ;;  %v12229_v42 = vperm.slane %v12155_v63, 1 }
  0xc7   : > { %2410 = vmatpush.bf16.msrb.mxu3 %v8147_v45  ;;  %2446 = vmatpush.bf16.msrb.mxu1 %v8199_v46  ;;  %v1609_v44 = vadd.f32 %v1608_v39, %v1596_v28  ;;  %v8445_v45 = vor.u32 %v11069_v33, %v8442_v34  ;;  %v8537_v46 = vor.u32 %v11095_v38, %v8536_v37  ;;  %v1623_v27 = vpop.f32.mrf.mxu2  ;;  %v8472_v39 = vld [vmem:[%s11733_s23 + $0x6c0] sm:$0xf] }
  0xc8   : > { %v8329_v37 = vor.u32 %v11043_v9, %v8328_v20  ;;  %v8617_v38 = vor.u32 %v11115_v24, %v8616_v23  ;;  %v11125_v20 = vld [vmem:[%s11733_s23 + $0x844] sm:$0xf]  ;;  %v8522_v24 = vld [vmem:[%s11733_s23 + $0x730] sm:$0xf0]  ;;  %v8432_v27 = vld [vmem:[%s11733_s23 + $0x668] sm:$0xf] }
  0xc9   : > { %2422 = vmatpush.bf16.msrb.mxu0 %v7911_v55  ;;  %v8648_v55 = vld [vmem:[%s11733_s23 + $0x820] sm:$0xf]  ;;  %v12196_v60 = vadd.f32 %v1621_v57, %v1609_v44  ;;  %v1635_v57 = vadd.f32 %v12200_v61, %v12229_v42 }
  0xca   : > { %2433 = vmatpush.bf16.msrb.mxu2 %v8071_v52  ;;  %8234 = vmatmul.msk.bf16.vlgmr.msrb.gmra.mxu3 %vm1569_vm1, %v11845_v25  ;;  %v8520_v52 = vld [vmem:[%s11733_s23 + $0x720] sm:$0xf]  ;;  %v8649_v3 = vor.u32 %v11123_v56, %v8648_v55  ;;  %v11075_v55 = vld [vmem:[%s11733_s23 + $0x6ac] sm:$0xf0] }
  0xcb   : > { %3016 = vmatpush.bf16.msra.mxu3 %v8441_v5  ;;  %2447 = vmatpush.bf16.msrb.mxu1 %v8183_v59  ;;  %v8377_v5 = vor.u32 %v11055_v41, %v8376_v36  ;;  %v8429_v59 = vor.u32 %v11065_v47, %v8426_v48  ;;  %v8521_v62 = vor.u32 %v11091_v53, %v8520_v52  ;;  %v1636_v33 = vpop.f32.mrf.mxu3  ;;  %v8378_v36 = vld [vmem:[%s11733_s23 + $0x610] sm:$0xf0]  ;;  %v2821_v41 = vunpack.c.h.b16 %v12142_v51  ;;  %v8600_v44 = vld [vmem:[%s11733_s23 + $0x7c0] sm:$0xf] }
  0xcc   : > { %v8362_v52 = vld [vmem:[%s11733_s23 + $0x5f0] sm:$0xf0]  ;;  %v8457_v61 = vor.u32 %v11075_v55, %v8456_v54  ;;  %v11081_v54 = vld [vmem:[%s11733_s23 + $0x6e4] sm:$0xf] }
  0xcd   : > { %2423 = vmatpush.bf16.msrb.mxu0 %v7895_v8  ;;  %v2913_v56 = vpack.c.b16 %v2821_v41, %v2821_v41  ;;  %v8330_v33 = vld [vmem:[%s11733_s23 + $0x5b0] sm:$0xf0]  ;;  %v11117_v55 = vld [vmem:[%s11733_s23 + $0x804] sm:$0xf] }
  0xce   : > { %2434 = vmatpush.bf16.msrb.mxu2 %v8055_v4  ;;  %v8344_v4 = vld [vmem:[%s11733_s23 + $0x5c0] sm:$0xf]  ;;  %v1610_v8 = vpop.f32.mrf.mxu1 }
  0xcf   : > { %3017 = vmatpush.bf16.msra.mxu3 %v8425_v0  ;;  %2448 = vmatpush.bf16.msrb.mxu1 %v8167_v13  ;;  %v11061_v0 = vld [vmem:[%s11733_s23 + $0x644] sm:$0xf]  ;;  %v11119_v13 = vld [vmem:[%s11733_s23 + $0x80c] sm:$0xf0]  ;;  %v8345_v18 = vor.u32 %v11047_v10, %v8344_v4  ;;  %v8538_v4 = vld [vmem:[%s11733_s23 + $0x750] sm:$0xf0] }
  0xd0   : > { %2424 = vmatmul.bf16.vlgmr.msrb.gmra.mxu0 %v11847_v26  ;;  %v8633_v19 = vor.u32 %v11119_v13, %v8632_v11  ;;  %v11045_v8 = vld [vmem:[%s11733_s23 + $0x5c4] sm:$0xf]  ;;  %v8346_v10 = vld [vmem:[%s11733_s23 + $0x5d0] sm:$0xf0] }
  0xd1   : > { %3029 = vmatpush.bf16.msra.mxu0 %v8569_v14  ;;  %v8413_v14 = vor.u32 %v11061_v0, %v8410_v1  ;;  %v12219_v28 = vpop.f32.mrf.mxu0  ;;  %v11093_v0 = vld [vmem:[%s11733_s23 + $0x744] sm:$0xf]  ;;  %v8349_v23 = vor.u32 %v11045_v8, %v8346_v10  ;;  %v8618_v8 = vld [vmem:[%s11733_s23 + $0x7f0] sm:$0xf0] }
  0xd2   : > { %2435 = vmatpush.bf16.msrb.mxu2 %v8039_v21  ;;  %v8488_v21 = vld [vmem:[%s11733_s23 + $0x6e0] sm:$0xf]  ;;  %v8474_v10 = vld [vmem:[%s11733_s23 + $0x6d0] sm:$0xf0] }
  0xd3   : > { %3018 = vmatpush.bf16.msra.mxu3 %v8409_v17  ;;  %2449 = vmatpush.bf16.msrb.mxu1 %v8151_v30  ;;  %v8394_v17 = vld [vmem:[%s11733_s23 + $0x630] sm:$0xf0]  ;;  %v8489_v34 = vor.u32 %v11083_v22, %v8488_v21 }
  0xd4   : > { %v8397_v30 = vor.u32 %v11057_v16, %v8394_v17  ;;  %v8541_v17 = vor.u32 %v11093_v0, %v8538_v4  ;;  %v8666_v21 = vld [vmem:[%s11733_s23 + $0x850] sm:$0xf0] }
  0xd5   : > { %3030 = vmatpush.bf16.msra.mxu0 %v8553_v31  ;;  %v11101_v31 = vld [vmem:[%s11733_s23 + $0x784] sm:$0xf] }
  0xd6   : > { %2436 = vmatpush.bf16.msrb.mxu2 %v8023_v40  ;;  %8235 = vmatmul.msk.bf16.vlgmr.msrb.gmra.mxu1 %vm1569_vm1, %v11845_v25  ;;  %v11079_v40 = vld [vmem:[%s11733_s23 + $0x6cc] sm:$0xf0] }
  0xd7   : > { %3019 = vmatpush.bf16.msra.mxu3 %v8393_v35  ;;  %3043 = vmatpush.bf16.msra.mxu1 %v3005_v32  ;;  %v8570_v32 = vld [vmem:[%s11733_s23 + $0x790] sm:$0xf0]  ;;  %v11053_v35 = vld [vmem:[%s11733_s23 + $0x604] sm:$0xf]  ;;  %v8473_v51 = vor.u32 %v11079_v40, %v8472_v39 }
  0xd8   : > { %v8573_v43 = vor.u32 %v11101_v31, %v8570_v32  ;;  %v1673_v47 = vpop.f32.mrf.mxu1  ;;  %v8381_v48 = vor.u32 %v11053_v35, %v8378_v36  ;;  %v11041_v32 = vld [vmem:[%s11733_s23 + $0x5a4] sm:$0xf]  ;;  %v8576_v35 = vld [vmem:[%s11733_s23 + $0x788] sm:$0xf]  ;;  %v11104_v36 = vld [vmem:[%s11733_s23 + $0x794] sm:$0xf0] }
  0xd9   : > { %3031 = vmatpush.bf16.msra.mxu0 %v8537_v46  ;;  %2437 = vmatmul.bf16.vlgmr.msrb.gmra.mxu2 %v11850_v29  ;;  %v12234_v46 = vperm.slane %v12155_v63, 2  ;;  %v11085_v39 = vld [vmem:[%s11733_s23 + $0x704] sm:$0xf]  ;;  %v8650_v40 = vld [vmem:[%s11733_s23 + $0x830] sm:$0xf0]  ;;  %v8333_v41 = vor.u32 %v11041_v32, %v8330_v33 }
  0xda   : > { %3055 = vmatpush.bf16.msra.mxu2 %v8445_v45  ;;  %v11111_v45 = vld [vmem:[%s11733_s23 + $0x7cc] sm:$0xf0]  ;;  %v8368_v32 = vld [vmem:[%s11733_s23 + $0x5e8] sm:$0xf] }
  0xdb   : > { %3020 = vmatpush.bf16.msra.mxu3 %v8377_v5  ;;  %3044 = vmatpush.bf16.msra.mxu1 %v8665_v49  ;;  %v11097_v5 = vld [vmem:[%s11733_s23 + $0x764] sm:$0xf]  ;;  %v8554_v49 = vld [vmem:[%s11733_s23 + $0x770] sm:$0xf0]  ;;  %v8601_v53 = vor.u32 %v11111_v45, %v8600_v44  ;;  %v1674_v1 = vadd.f32 %v1673_v47, %v12234_v46  ;;  %v8416_v44 = vld [vmem:[%s11733_s23 + $0x648] sm:$0xf]  ;;  %v8577_v47 = vor.u32 %v11104_v36, %v8576_v35 }
  0xdc   : > { %v8557_v58 = vor.u32 %v11097_v5, %v8554_v49  ;;  %v1647_v11 = vpop.f32.mrf.mxu2  ;;  %v11064_v45 = vld [vmem:[%s11733_s23 + $0x654] sm:$0xf0]  ;;  %v8560_v49 = vld [vmem:[%s11733_s23 + $0x768] sm:$0xf] }
  0xdd   : > { %3032 = vmatpush.bf16.msra.mxu0 %v8521_v62  ;;  %v11107_v62 = vld [vmem:[%s11733_s23 + $0x7ac] sm:$0xf0]  ;;  %v8512_v36 = vld [vmem:[%s11733_s23 + $0x708] sm:$0xf] }
  0xde   : > { %3056 = vmatpush.bf16.msra.mxu2 %v8429_v59  ;;  %v8584_v59 = vld [vmem:[%s11733_s23 + $0x7a0] sm:$0xf] }
  0xdf   : > { %3021 = vmatpush.bf16.msra.mxu3 %v8361_v2  ;;  %3045 = vmatpush.bf16.msra.mxu1 %v8649_v3  ;;  %v1662_v2 = vpop.f32.mrf.mxu0  ;;  %v8365_v3 = vor.u32 %v11049_v50, %v8362_v52  ;;  %v8585_v13 = vor.u32 %v11107_v62, %v8584_v59  ;;  %v1686_v16 = vpop.f32.mrf.mxu3  ;;  %v11060_v59 = vld [vmem:[%s11733_s23 + $0x634] sm:$0xf0] }
  0xe0   : > { %v12258_v22 = vadd.f32 %v1686_v16, %v1674_v1  ;;  %v1675_v9 = vpop.f32.mrf.mxu1  ;;  %v8544_v1 = vld [vmem:[%s11733_s23 + $0x748] sm:$0xf]  ;;  %v11096_v2 = vld [vmem:[%s11733_s23 + $0x754] sm:$0xf0] }
  0xe1   : > { %3033 = vmatpush.bf16.msra.mxu0 %v8505_v15  ;;  %v1648_v15 = vadd.f32 %v1647_v11, %v1635_v57  ;;  %v8490_v57 = vld [vmem:[%s11733_s23 + $0x6f0] sm:$0xf0]  ;;  %v8384_v11 = vld [vmem:[%s11733_s23 + $0x608] sm:$0xf] }
  0xe2   : > { %3057 = vmatpush.bf16.msra.mxu2 %v8413_v14  ;;  %v3008_v14 = vsel %vm1573_vm0, %v2913_v56, 0  ;;  %v8634_v56 = vld [vmem:[%s11733_s23 + $0x810] sm:$0xf0]  ;;  %v8493_v4 = vor.u32 %v11081_v54, %v8490_v57  ;;  %v11084_v54 = vld [vmem:[%s11733_s23 + $0x6f4] sm:$0xf0] }
  0xe3   : > { %3022 = vmatpush.bf16.msra.mxu3 %v8345_v18  ;;  %3046 = vmatpush.bf16.msra.mxu1 %v8633_v19  ;;  %v8449_v18 = vor.u32 %v11072_v7, %v8448_v6  ;;  %v11089_v19 = vld [vmem:[%s11733_s23 + $0x724] sm:$0xf]  ;;  %v12264_v31 = vadd.f32 %v12219_v28, %v1648_v15  ;;  %v8637_v0 = vor.u32 %v11117_v55, %v8634_v56  ;;  %v8336_v57 = vld [vmem:[%s11733_s23 + $0x5a8] sm:$0xf] }
  0xe4   : > { %v11121_v28 = vld [vmem:[%s11733_s23 + $0x824] sm:$0xf]  ;;  %v8545_v15 = vor.u32 %v11096_v2, %v8544_v1  ;;  %v8656_v1 = vld [vmem:[%s11733_s23 + $0x828] sm:$0xf]  ;;  %v11066_v2 = vld [vmem:[%s11733_s23 + $0x66c] sm:$0xf] }
  0xe5   : > { %3034 = vmatpush.bf16.msra.mxu0 %v8489_v34  ;;  %v8669_v34 = vor.u32 %v11125_v20, %v8666_v21  ;;  %v8653_v5 = vor.u32 %v11121_v28, %v8650_v40  ;;  %v11077_v7 = vld [vmem:[%s11733_s23 + $0x6c4] sm:$0xf]  ;;  %v11092_v20 = vld [vmem:[%s11733_s23 + $0x734] sm:$0xf0]  ;;  %v8352_v28 = vld [vmem:[%s11733_s23 + $0x5c8] sm:$0xf] }
  0xe6   : > { %3058 = vmatpush.bf16.msra.mxu2 %v8397_v30  ;;  %v11068_v30 = vld [vmem:[%s11733_s23 + $0x674] sm:$0xf0]  ;;  %v8477_v21 = vor.u32 %v11077_v7, %v8474_v10  ;;  %v11105_v40 = vld [vmem:[%s11733_s23 + $0x7a4] sm:$0xf]  ;;  %v8480_v10 = vld [vmem:[%s11733_s23 + $0x6c8] sm:$0xf] }
  0xe7   : > { %3023 = vmatpush.bf16.msra.mxu3 %v8329_v37  ;;  %3047 = vmatpush.bf16.msra.mxu1 %v8617_v38  ;;  %v8525_v37 = vor.u32 %v11089_v19, %v8522_v24  ;;  %v8433_v38 = vor.u32 %v11068_v30, %v8432_v27  ;;  %v1688_v50 = vpop.f32.mrf.mxu3  ;;  %v8528_v19 = vld [vmem:[%s11733_s23 + $0x728] sm:$0xf]  ;;  %v11109_v24 = vld [vmem:[%s11733_s23 + $0x7c4] sm:$0xf]  ;;  %v8602_v27 = vld [vmem:[%s11733_s23 + $0x7d0] sm:$0xf0] }
  0xe8   : > { %v8458_v30 = vld [vmem:[%s11733_s23 + $0x6b0] sm:$0xf0]  ;;  %v8529_v33 = vor.u32 %v11092_v20, %v8528_v19  ;;  %v8605_v35 = vor.u32 %v11109_v24, %v8602_v27  ;;  %v11124_v7 = vld [vmem:[%s11733_s23 + $0x834] sm:$0xf0]  ;;  %v8640_v20 = vld [vmem:[%s11733_s23 + $0x808] sm:$0xf] }
  0xe9   : > { %3035 = vmatpush.bf16.msra.mxu0 %v8473_v51  ;;  %v11100_v51 = vld [vmem:[%s11733_s23 + $0x774] sm:$0xf0]  ;;  %v11098_v27 = vld [vmem:[%s11733_s23 + $0x76c] sm:$0xf] }
  0xea   : > { %3059 = vmatpush.bf16.msra.mxu2 %v8381_v48  ;;  %3024 = vmatmul.bf16.vlgmr.msra.gmra.mxu3 %v11847_v26  ;;  %v1649_v48 = vpop.f32.mrf.mxu2  ;;  %v8561_v62 = vor.u32 %v11100_v51, %v8560_v49  ;;  %v8672_v49 = vld [vmem:[%s11733_s23 + $0x848] sm:$0xf]  ;;  %v11128_v51 = vld [vmem:[%s11733_s23 + $0x854] sm:$0xf0] }
  0xeb   : > { %3068 = vmatpush.bf16.msrb.mxu3 %v8573_v43  ;;  %3048 = vmatpush.bf16.msra.mxu1 %v8601_v53  ;;  %v8506_v43 = vld [vmem:[%s11733_s23 + $0x710] sm:$0xf0]  ;;  %v8417_v53 = vor.u32 %v11064_v45, %v8416_v44  ;;  %v11070_v44 = vld [vmem:[%s11733_s23 + $0x68c] sm:$0xf]  ;;  %v8450_v45 = vld [vmem:[%s11733_s23 + $0x698] sm:$0xf0] }
  0xec   : > { %v8509_v52 = vor.u32 %v11085_v39, %v8506_v43  ;;  %v11048_v43 = vld [vmem:[%s11733_s23 + $0x5d4] sm:$0xf0]  ;;  %v8453_v56 = vor.u32 %v11070_v44, %v8450_v45  ;;  %v11094_v45 = vld [vmem:[%s11733_s23 + $0x74c] sm:$0xf] }
  0xed   : > { %3036 = vmatpush.bf16.msra.mxu0 %v8457_v61  ;;  %v11113_v61 = vld [vmem:[%s11733_s23 + $0x7e4] sm:$0xf]  ;;  %v8353_v55 = vor.u32 %v11048_v43, %v8352_v28  ;;  %v11120_v24 = vld [vmem:[%s11733_s23 + $0x814] sm:$0xf0]  ;;  %v8624_v28 = vld [vmem:[%s11733_s23 + $0x7e8] sm:$0xf] }
  0xee   : > { %3060 = vmatpush.bf16.msra.mxu2 %v8365_v3  ;;  %v12290_v3 = vld [vmem:[%s11733_s23 + $0x868] sm:$0xff]  ;;  %v11116_v44 = vld [vmem:[%s11733_s23 + $0x7f4] sm:$0xf0] }
  0xef   : > { %3069 = vmatpush.bf16.msrb.mxu3 %v8557_v58  ;;  %3049 = vmatpush.bf16.msra.mxu1 %v8585_v13  ;;  %v8400_v58 = vld [vmem:[%s11733_s23 + $0x628] sm:$0xf]  ;;  %v11056_v13 = vld [vmem:[%s11733_s23 + $0x614] sm:$0xf0]  ;;  %v2822_v16 = vunpack.c.l.b16 %v12290_v3 }
  0xf0   : > { %3037 = vmatmul.bf16.vlgmr.msra.gmra.mxu0 %v11850_v29  ;;  %v8401_v6 = vor.u32 %v11060_v59, %v8400_v58  ;;  %v8385_v9 = vor.u32 %v11056_v13, %v8384_v11  ;;  %v11044_v58 = vld [vmem:[%s11733_s23 + $0x5b4] sm:$0xf0]  ;;  %v12327_v59 = vperm.slane %v12155_v63, 3 }
  0xf1   : > { %3082 = vmatpush.bf16.msrb.mxu0 %v3008_v14  ;;  %v1699_v14 = vpop.f32.mrf.mxu0  ;;  %v11080_v63 = vld [vmem:[%s11733_s23 + $0x6d4] sm:$0xf0]  ;;  %v8337_v13 = vor.u32 %v11044_v58, %v8336_v57  ;;  %v11090_v58 = vld [vmem:[%s11733_s23 + $0x72c] sm:$0xf] }
  0xf2   : > { %3061 = vmatpush.bf16.msra.mxu2 %v8349_v23  ;;  %8678 = vmatmul.msk.bf16.vlgmr.msra.gmra.mxu1 %vm1569_vm1, %v11845_v25  ;;  %v11073_v23 = vld [vmem:[%s11733_s23 + $0x6a4] sm:$0xf]  ;;  %v11112_v57 = vld [vmem:[%s11733_s23 + $0x7d4] sm:$0xf0] }
  0xf3   : > { %3070 = vmatpush.bf16.msrb.mxu3 %v8541_v17  ;;  %3094 = vmatpush.bf16.msrb.mxu1 %v8449_v18  ;;  %v12301_v17 = vadd.f32 %v1699_v14, %v12258_v22  ;;  %v8621_v18 = vor.u32 %v11113_v61, %v8618_v8  ;;  %v11052_v22 = vld [vmem:[%s11733_s23 + $0x5f4] sm:$0xf0]  ;;  %v11102_v61 = vld [vmem:[%s11733_s23 + $0x78c] sm:$0xf]  ;;  %v8578_v8 = vld [vmem:[%s11733_s23 + $0x798] sm:$0xf0] }
  0xf4   : > { %v8369_v39 = vor.u32 %v11052_v22, %v8368_v32  ;;  %v8581_v19 = vor.u32 %v11102_v61, %v8578_v8  ;;  %v8464_v22 = vld [vmem:[%s11733_s23 + $0x6a8] sm:$0xf]  ;;  %v11050_v8 = vld [vmem:[%s11733_s23 + $0x5ec] sm:$0xf] }
  0xf5   : > { %3083 = vmatpush.bf16.msrb.mxu0 %v8669_v34  ;;  %v2914_v34 = vpack.c.b16 %v2822_v16, %v2822_v16  ;;  %v8592_v61 = vld [vmem:[%s11733_s23 + $0x7a8] sm:$0xf] }
  0xf6   : > { %3062 = vmatpush.bf16.msra.mxu2 %v8333_v41  ;;  %v8586_v41 = vld [vmem:[%s11733_s23 + $0x7b0] sm:$0xf0] }
  0xf7   : > { %3071 = vmatpush.bf16.msrb.mxu3 %v8525_v37  ;;  %3095 = vmatpush.bf16.msrb.mxu1 %v8433_v38  ;;  %v11088_v37 = vld [vmem:[%s11733_s23 + $0x714] sm:$0xf0]  ;;  %v8461_v38 = vor.u32 %v11073_v23, %v8458_v30  ;;  %v3011_v48 = vsel %vm1573_vm0, %v2914_v34, 0  ;;  %v1725_v50 = vpop.f32.mrf.mxu1  ;;  %v8481_v23 = vor.u32 %v11080_v63, %v8480_v10  ;;  %v8562_v30 = vld [vmem:[%s11733_s23 + $0x778] sm:$0xf0] }
  0xf8   : > { %v8370_v10 = vld [vmem:[%s11733_s23 + $0x5f8] sm:$0xf0]  ;;  %v11108_v63 = vld [vmem:[%s11733_s23 + $0x7b4] sm:$0xf0] }
  0xf9   : > { %3084 = vmatpush.bf16.msrb.mxu0 %v8653_v5  ;;  %3063 = vmatmul.bf16.vlgmr.msra.gmra.mxu2 %v11847_v26  ;;  %v8513_v5 = vor.u32 %v11088_v37, %v8512_v36 }
  0xfa   : > { %3107 = vmatpush.bf16.msrb.mxu2 %v8577_v47  ;;  %v1701_v47 = vpop.f32.mrf.mxu0 }
  0xfb   : > { %3072 = vmatpush.bf16.msrb.mxu3 %v8509_v52  ;;  %3096 = vmatpush.bf16.msrb.mxu1 %v8417_v53  ;;  %v8589_v52 = vor.u32 %v11105_v40, %v8586_v41  ;;  %v8496_v53 = vld [vmem:[%s11733_s23 + $0x6e8] sm:$0xf]  ;;  %v11058_v40 = vld [vmem:[%s11733_s23 + $0x62c] sm:$0xf]  ;;  %v8402_v41 = vld [vmem:[%s11733_s23 + $0x638] sm:$0xf0] }
  0xfc   : > { %v1712_v11 = vpop.f32.mrf.mxu2  ;;  %v8546_v47 = vld [vmem:[%s11733_s23 + $0x758] sm:$0xf0] }
  0xfd   : > { %3085 = vmatpush.bf16.msrb.mxu0 %v8637_v0  ;;  %v8673_v0 = vor.u32 %v11128_v51, %v8672_v49  ;;  %v1713_v16 = vadd.f32 %v1712_v11, %v12327_v59  ;;  %v8405_v49 = vor.u32 %v11058_v40, %v8402_v41  ;;  %v11126_v51 = vld [vmem:[%s11733_s23 + $0x84c] sm:$0xf]  ;;  %v11148_v41 = vld [vmem:[%s12384_s1 + $0x98] sm:$0xf0] }
  0xfe   : > { %3108 = vmatpush.bf16.msrb.mxu2 %v8561_v62  ;;  %v1738_v62 = vpop.f32.mrf.mxu3  ;;  %v11086_v11 = vld [vmem:[%s11733_s23 + $0x70c] sm:$0xf] }
  0xff   : > { %3073 = vmatpush.bf16.msrb.mxu3 %v8493_v4  ;;  %3097 = vmatpush.bf16.msrb.mxu1 %v8401_v6  ;;  %v8434_v4 = vld [vmem:[%s11733_s23 + $0x678] sm:$0xf0]  ;;  %v8497_v6 = vor.u32 %v11084_v54, %v8496_v53  ;;  %v1727_v32 = vpop.f32.mrf.mxu1  ;;  %v8549_v53 = vor.u32 %v11094_v45, %v8546_v47  ;;  %v8608_v54 = vld [vmem:[%s11733_s23 + $0x7c8] sm:$0xf] }
 0x100   : > { %v8437_v14 = vor.u32 %v11066_v2, %v8434_v4  ;;  %v11122_v2 = vld [vmem:[%s11733_s23 + $0x82c] sm:$0xf]  ;;  %v8658_v4 = vld [vmem:[%s11733_s23 + $0x838] sm:$0xf0] }
 0x101   : > { %3086 = vmatpush.bf16.msrb.mxu0 %v8621_v18  ;;  %v8657_v18 = vor.u32 %v11124_v7, %v8656_v1  ;;  %v8626_v32 = vld [vmem:[%s11733_s23 + $0x7f8] sm:$0xf0] }
 0x102   : > { %3109 = vmatpush.bf16.msrb.mxu2 %v8545_v15  ;;  %v2823_v15 = vunpack.c.h.b16 %v12290_v3  ;;  %v1726_v3 = vadd.f32 %v1725_v50, %v1713_v16  ;;  %v8674_v50 = vld [vmem:[%s11733_s23 + $0x858] sm:$0xf0]  ;;  %v8373_v16 = vor.u32 %v11050_v8, %v8370_v10 }
 0x103   : > { %3074 = vmatpush.bf16.msrb.mxu3 %v8477_v21  ;;  %3098 = vmatpush.bf16.msrb.mxu1 %v8385_v9  ;;  %v11062_v21 = vld [vmem:[%s11733_s23 + $0x64c] sm:$0xf]  ;;  %v8418_v9 = vld [vmem:[%s11733_s23 + $0x658] sm:$0xf0] }
 0x104   : > { %v8421_v34 = vor.u32 %v11062_v21, %v8418_v9  ;;  %v12350_v36 = vadd.f32 %v1738_v62, %v1726_v3  ;;  %v8530_v62 = vld [vmem:[%s11733_s23 + $0x738] sm:$0xf0]  ;;  %v11046_v9 = vld [vmem:[%s11733_s23 + $0x5cc] sm:$0xf] }
 0x105   : > { %3087 = vmatpush.bf16.msrb.mxu0 %v8605_v35  ;;  %v2915_v35 = vpack.c.b16 %v2823_v15, %v2823_v15  ;;  %v8533_v7 = vor.u32 %v11090_v58, %v8530_v62  ;;  %v11114_v3 = vld [vmem:[%s11733_s23 + $0x7ec] sm:$0xf] }
 0x106   : > { %3110 = vmatpush.bf16.msrb.mxu2 %v8529_v33  ;;  %v11076_v33 = vld [vmem:[%s11733_s23 + $0x6b4] sm:$0xf0]  ;;  %v1740_v37 = vpop.f32.mrf.mxu3  ;;  %v8629_v45 = vor.u32 %v11114_v3, %v8626_v32  ;;  %v11106_v62 = vld [vmem:[%s11733_s23 + $0x7ac] sm:$0xf]  ;;  %v8684_v3 = vld [vmem:[%s12384_s1] sm:$0xf] }
 0x107   : > { %3075 = vmatpush.bf16.msrb.mxu3 %v8461_v38  ;;  %3099 = vmatpush.bf16.msrb.mxu1 %v8369_v39  ;;  %v8641_v38 = vor.u32 %v11120_v24, %v8640_v20  ;;  %v8565_v39 = vor.u32 %v11098_v27, %v8562_v30  ;;  %v8465_v43 = vor.u32 %v11076_v33, %v8464_v22  ;;  %v11082_v24 = vld [vmem:[%s11733_s23 + $0x6ec] sm:$0xf]  ;;  %v8498_v27 = vld [vmem:[%s11733_s23 + $0x6f8] sm:$0xf0]  ;;  %v8768_v33 = vld [vmem:[%s12384_s1 + $0xa8] sm:$0xf] }
 0x108   : > { %v8593_v20 = vor.u32 %v11108_v63, %v8592_v61  ;;  %v8501_v37 = vor.u32 %v11082_v24, %v8498_v27  ;;  %v11142_v61 = vld [vmem:[%s12384_s1 + $0x68] sm:$0xf0]  ;;  %v8696_v27 = vld [vmem:[%s12384_s1 + $0x18] sm:$0xf] }
 0x109   : > { %3088 = vmatpush.bf16.msrb.mxu0 %v8589_v52  ;;  %v8625_v52 = vor.u32 %v11116_v44, %v8624_v28  ;;  %v8482_v44 = vld [vmem:[%s11733_s23 + $0x6d8] sm:$0xf0] }
 0x10a   : > { %3111 = vmatpush.bf16.msrb.mxu2 %v8513_v5  ;;  %3076 = vmatmul.bf16.vlgmr.msrb.gmra.mxu3 %v11850_v29  ;;  %v3014_v5 = vsel %vm1573_vm0, %v2915_v35, 0  ;;  %v8756_v35 = vld [vmem:[%s12384_s1 + $0x90] sm:$0xf] }
 0x10b   : > { %3121 = vmatpush.bf16.msra.mxu3 %v3011_v48  ;;  %3100 = vmatpush.bf16.msrb.mxu1 %v8353_v55  ;;  %v1714_v48 = vpop.f32.mrf.mxu2  ;;  %v11054_v55 = vld [vmem:[%s11733_s23 + $0x60c] sm:$0xf] }
 0x10c   : > { %8679 = vmatmul.msk.bf16.vlgmr.msrb.gmra.mxu0 %vm1569_vm1, %v11845_v25  ;;  %v8757_v48 = vor.u32 %v11148_v41, %v8756_v35  ;;  %v1743_v41 = vmax.f32 %v12264_v31, 0.0 }
 0x10d   : > { %3133 = vmatpush.bf16.msra.mxu0 %v8453_v56  ;;  %v8386_v56 = vld [vmem:[%s11733_s23 + $0x618] sm:$0xf0]  ;;  %v2308_v15 = vpop.f32.mrf.mxu0 }
 0x10e   : > { %3112 = vmatpush.bf16.msrb.mxu2 %v8497_v6  ;;  %v8389_v1 = vor.u32 %v11054_v55, %v8386_v56  ;;  %v8609_v6 = vor.u32 %v11112_v57, %v8608_v54  ;;  %v11145_v54 = vld [vmem:[%s12384_s1 + $0x80] sm:$0xf0]  ;;  %v2309_v55 = vadd.f32 %v2308_v15, %v12167_v12  ;;  %v11074_v56 = vld [vmem:[%s11733_s23 + $0x6ac] sm:$0xf]  ;;  %v8466_v57 = vld [vmem:[%s11733_s23 + $0x6b8] sm:$0xf0] }
 0x10f   : > { %3122 = vmatpush.bf16.msra.mxu3 %v8673_v0  ;;  %3101 = vmatpush.bf16.msrb.mxu1 %v8337_v13  ;;  %v8677_v0 = vor.u32 %v11126_v51, %v8674_v50  ;;  %v8514_v13 = vld [vmem:[%s11733_s23 + $0x718] sm:$0xf0] }
 0x110   : > { %v8517_v21 = vor.u32 %v11086_v11, %v8514_v13  ;;  %v8610_v51 = vld [vmem:[%s11733_s23 + $0x7d8] sm:$0xf0] }
 0x111   : > { %3134 = vmatpush.bf16.msra.mxu0 %v8437_v14  ;;  %v8661_v14 = vor.u32 %v11122_v2, %v8658_v4  ;;  %v8469_v4 = vor.u32 %v11074_v56, %v8466_v57  ;;  %v11144_v56 = vld [vmem:[%s12384_s1 + $0x7c] sm:$0xf] }
 0x112   : > { %3113 = vmatpush.bf16.msrb.mxu2 %v8481_v23  ;;  %3102 = vmatmul.bf16.vlgmr.msrb.gmra.mxu1 %v11847_v26  ;;  %v8354_v23 = vld [vmem:[%s11733_s23 + $0x5d8] sm:$0xf0] }
 0x113   : > { %3123 = vmatpush.bf16.msra.mxu3 %v8657_v18  ;;  %3146 = vmatpush.bf16.msra.mxu1 %v8581_v19  ;;  %v11118_v18 = vld [vmem:[%s11733_s23 + $0x80c] sm:$0xf]  ;;  %v8642_v19 = vld [vmem:[%s11733_s23 + $0x818] sm:$0xf0]  ;;  %v8357_v22 = vor.u32 %v11046_v9, %v8354_v23 }
 0x114   : > { %v8645_v30 = vor.u32 %v11118_v18, %v8642_v19  ;;  %v8720_v18 = vld [vmem:[%s12384_s1 + $0x48] sm:$0xf]  ;;  %v11139_v19 = vld [vmem:[%s12384_s1 + $0x50] sm:$0xf0] }
 0x115   : > { %3135 = vmatpush.bf16.msra.mxu0 %v8421_v34  ;;  %v11151_v34 = vld [vmem:[%s12384_s1 + $0xb0] sm:$0xf0]  ;;  %v2334_v28 = vpop.f32.mrf.mxu3  ;;  %v2310_v47 = vpop.f32.mrf.mxu0 }
 0x116   : > { %3114 = vmatpush.bf16.msrb.mxu2 %v8465_v43  ;;  %v8769_v40 = vor.u32 %v11151_v34, %v8768_v33  ;;  %v11078_v43 = vld [vmem:[%s11733_s23 + $0x6cc] sm:$0xf]  ;;  %v8864_v33 = vld [vmem:[%s12384_s1 + $0x168] sm:$0xf] }
 0x117   : > { %3124 = vmatpush.bf16.msra.mxu3 %v8641_v38  ;;  %3147 = vmatpush.bf16.msra.mxu1 %v8565_v39  ;;  %v11042_v38 = vld [vmem:[%s11733_s23 + $0x5ac] sm:$0xf]  ;;  %v8338_v39 = vld [vmem:[%s11733_s23 + $0x5b8] sm:$0xf0]  ;;  %v2347_v50 = vpop.f32.mrf.mxu1 }
 0x119   : > { %3136 = vmatpush.bf16.msra.mxu0 %v8405_v49  ;;  %3115 = vmatmul.bf16.vlgmr.msrb.gmra.mxu2 %v11850_v29  ;;  %v11110_v49 = vld [vmem:[%s11733_s23 + $0x7cc] sm:$0xf] }
 0x11a   : > { %3160 = vmatpush.bf16.msra.mxu2 %v3014_v5  ;;  %v8341_v5 = vor.u32 %v11042_v38, %v8338_v39  ;;  %v8613_v58 = vor.u32 %v11110_v49, %v8610_v51  ;;  %v8770_v38 = vld [vmem:[%s12384_s1 + $0xb4] sm:$0xf0]  ;;  %v11147_v49 = vld [vmem:[%s12384_s1 + $0x94] sm:$0xf] }
 0x11b   : > { %3125 = vmatpush.bf16.msra.mxu3 %v8625_v52  ;;  %3148 = vmatpush.bf16.msra.mxu1 %v8549_v53  ;;  %v8485_v52 = vor.u32 %v11078_v43, %v8482_v44  ;;  %v8744_v53 = vld [vmem:[%s12384_s1 + $0x78] sm:$0xf] }
 0x11c   : > { %v2321_v2 = vpop.f32.mrf.mxu2 }
 0x11d   : > { %3137 = vmatpush.bf16.msra.mxu0 %v8389_v1  ;;  %v8745_v1 = vor.u32 %v11145_v54, %v8744_v53  ;;  %v2322_v8 = vadd.f32 %v2321_v2, %v2309_v55  ;;  %v8840_v54 = vld [vmem:[%s12384_s1 + $0x138] sm:$0xf]  ;;  %v11169_v55 = vld [vmem:[%s12384_s1 + $0x140] sm:$0xf0] }
 0x11e   : > { %3161 = vmatpush.bf16.msra.mxu2 %v8677_v0  ;;  %v8594_v0 = vld [vmem:[%s11733_s23 + $0x7b8] sm:$0xf0] }
 0x11f   : > { %3126 = vmatpush.bf16.msra.mxu3 %v8609_v6  ;;  %3149 = vmatpush.bf16.msra.mxu1 %v8533_v7  ;;  %v2336_v6 = vpop.f32.mrf.mxu3  ;;  %v8732_v7 = vld [vmem:[%s12384_s1 + $0x60] sm:$0xf]  ;;  %v8597_v10 = vor.u32 %v11106_v62, %v8594_v0  ;;  %v2335_v63 = vadd.f32 %v2334_v28, %v2322_v8  ;;  %v2349_v11 = vpop.f32.mrf.mxu1  ;;  %v8746_v62 = vld [vmem:[%s12384_s1 + $0x84] sm:$0xf0]  ;;  %v8734_v8 = vld [vmem:[%s12384_s1 + $0x6c] sm:$0xf0] }
 0x120   : > { %v8733_v13 = vor.u32 %v11142_v61, %v8732_v7  ;;  %v8749_v0 = vor.u32 %v11144_v56, %v8746_v62  ;;  %v11166_v6 = vld [vmem:[%s12384_s1 + $0x128] sm:$0xf0]  ;;  %v11141_v7 = vld [vmem:[%s12384_s1 + $0x64] sm:$0xf]  ;;  %v8816_v11 = vld [vmem:[%s12384_s1 + $0x108] sm:$0xf] }
 0x121   : > { %3138 = vmatpush.bf16.msra.mxu0 %v8373_v16  ;;  %v2455_v15 = vmax.f32 %v2335_v63, 0.0 }
 0x122   : > { %3162 = vmatpush.bf16.msra.mxu2 %v8661_v14  ;;  %v1742_v14 = vmax.f32 %v12196_v60, 0.0  ;;  %v8721_v60 = vor.u32 %v11139_v19, %v8720_v18  ;;  %v8804_v19 = vld [vmem:[%s12384_s1 + $0xf0] sm:$0xf] }
 0x123   : > { %3127 = vmatpush.bf16.msra.mxu3 %v8593_v20  ;;  %3150 = vmatpush.bf16.msra.mxu1 %v8517_v21  ;;  %v2348_v20 = vadd.f32 %v2347_v50, %v12229_v42  ;;  %v8708_v21 = vld [vmem:[%s12384_s1 + $0x30] sm:$0xf] }
 0x124   : > { %v12415_v16 = vmax.f32 %v1742_v14, %v2455_v15  ;;  %v11138_v14 = vld [vmem:[%s12384_s1 + $0x4c] sm:$0xf] }
 0x125   : > { %3139 = vmatpush.bf16.msra.mxu0 %v8357_v22  ;;  %v11130_v22 = vld [vmem:[%s12384_s1 + $0x8] sm:$0xf0] }
 0x126   : > { %3163 = vmatpush.bf16.msra.mxu2 %v8645_v30  ;;  %8680 = vmatmul.msk.bf16.vlgmr.msra.gmra.mxu3 %vm1569_vm1, %v11845_v25  ;;  %v11133_v30 = vld [vmem:[%s12384_s1 + $0x20] sm:$0xf0]  ;;  %v8685_v28 = vor.u32 %v11130_v22, %v8684_v3  ;;  %v8792_v3 = vld [vmem:[%s12384_s1 + $0xd8] sm:$0xf]  ;;  %v11132_v22 = vld [vmem:[%s12384_s1 + $0x1c] sm:$0xf] }
 0x127   : > { %3796 = vmatpush.bf16.msrb.mxu3 %v8769_v40  ;;  %3151 = vmatpush.bf16.msra.mxu1 %v8501_v37  ;;  %v8697_v32 = vor.u32 %v11133_v30, %v8696_v27  ;;  %v11150_v37 = vld [vmem:[%s12384_s1 + $0xac] sm:$0xf] }
 0x128   : > { %v8773_v40 = vor.u32 %v11150_v37, %v8770_v38 }
 0x129   : > { %3140 = vmatpush.bf16.msra.mxu0 %v8341_v5  ;;  %v11172_v5 = vld [vmem:[%s12384_s1 + $0x158] sm:$0xf0] }
 0x12a   : > { %3164 = vmatpush.bf16.msra.mxu2 %v8629_v45 }
 0x12b   : > { %3797 = vmatpush.bf16.msrb.mxu3 %v8757_v48  ;;  %3152 = vmatpush.bf16.msra.mxu1 %v8485_v52  ;;  %v8852_v48 = vld [vmem:[%s12384_s1 + $0x150] sm:$0xf]  ;;  %v8758_v52 = vld [vmem:[%s12384_s1 + $0x9c] sm:$0xf0] }
 0x12c   : > { %3141 = vmatmul.bf16.vlgmr.msra.gmra.mxu0 %v11847_v26  ;;  %v2323_v26 = vpop.f32.mrf.mxu2  ;;  %v8853_v50 = vor.u32 %v11172_v5, %v8852_v48  ;;  %v8761_v53 = vor.u32 %v11147_v49, %v8758_v52 }
 0x12d   : > { %v2360_v23 = vpop.f32.mrf.mxu0  ;;  %v8722_v26 = vld [vmem:[%s12384_s1 + $0x54] sm:$0xf0] }
 0x12e   : > { %3165 = vmatpush.bf16.msra.mxu2 %v8613_v58  ;;  %v2361_v24 = vadd.f32 %v2360_v23, %v2348_v20  ;;  %v8841_v58 = vor.u32 %v11169_v55, %v8840_v54  ;;  %v8725_v18 = vor.u32 %v11138_v14, %v8722_v26  ;;  %v11135_v20 = vld [vmem:[%s12384_s1 + $0x34] sm:$0xf]  ;;  %v11196_v54 = vld [vmem:[%s12384_s1 + $0x218] sm:$0xf0]  ;;  %v1745_v14 = vmax.f32 %v12350_v36, 0.0 }
 0x12f   : > { %3798 = vmatpush.bf16.msrb.mxu3 %v8745_v1  ;;  %3153 = vmatpush.bf16.msra.mxu1 %v8469_v4  ;;  %v8828_v4 = vld [vmem:[%s12384_s1 + $0x120] sm:$0xf]  ;;  %v11195_v55 = vld [vmem:[%s12384_s1 + $0x214] sm:$0xf] }
 0x130   : > { %v8829_v61 = vor.u32 %v11166_v6, %v8828_v4  ;;  %v11192_v4 = vld [vmem:[%s12384_s1 + $0x1fc] sm:$0xf]  ;;  %v11187_v36 = vld [vmem:[%s12384_s1 + $0x1d0] sm:$0xf0] }
 0x131   : > { %v2373_v34 = vpop.f32.mrf.mxu3 }
 0x132   : > { %3166 = vmatpush.bf16.msra.mxu2 %v8597_v10  ;;  %3154 = vmatmul.bf16.vlgmr.msra.gmra.mxu1 %v11850_v29  ;;  %v11136_v29 = vld [vmem:[%s12384_s1 + $0x38] sm:$0xf0]  ;;  %v2374_v39 = vadd.f32 %v2373_v34, %v2361_v24  ;;  %v8737_v10 = vor.u32 %v11141_v7, %v8734_v8 }
 0x133   : > { %3799 = vmatpush.bf16.msrb.mxu3 %v8733_v13  ;;  %v8709_v9 = vor.u32 %v11136_v29, %v8708_v21  ;;  %v11163_v13 = vld [vmem:[%s12384_s1 + $0x110] sm:$0xf0]  ;;  %v8710_v29 = vld [vmem:[%s12384_s1 + $0x3c] sm:$0xf0] }
 0x134   : > { %v2456_v43 = vmax.f32 %v2374_v39, 0.0  ;;  %v8817_v15 = vor.u32 %v11163_v13, %v8816_v11  ;;  %v8713_v23 = vor.u32 %v11135_v20, %v8710_v29  ;;  %v11190_v11 = vld [vmem:[%s12384_s1 + $0x1e8] sm:$0xf0]  ;;  %v11189_v13 = vld [vmem:[%s12384_s1 + $0x1e4] sm:$0xf] }
 0x135   : > { %8681 = vmatmul.msk.bf16.vlgmr.msra.gmra.mxu2 %vm1569_vm1, %v11845_v25  ;;  %v11175_v25 = vld [vmem:[%s12384_s1 + $0x170] sm:$0xf0]  ;;  %v2362_v45 = vpop.f32.mrf.mxu0  ;;  %v11217_v29 = vld [vmem:[%s12384_s1 + $0x2c0] sm:$0xf0] }
 0x136   : > { %v8865_v35 = vor.u32 %v11175_v25, %v8864_v33  ;;  %v12434_v44 = vmax.f32 %v1743_v41, %v2456_v43  ;;  %v1744_v33 = vmax.f32 %v12301_v17, 0.0  ;;  %v11129_v41 = vld [vmem:[%s12384_s1 + $0x4] sm:$0xf]  ;;  %v8686_v45 = vld [vmem:[%s12384_s1 + $0xc] sm:$0xf0] }
 0x137   : > { %3800 = vmatpush.bf16.msrb.mxu3 %v8721_v60  ;;  %v2399_v47 = vpop.f32.mrf.mxu1  ;;  %v11160_v60 = vld [vmem:[%s12384_s1 + $0xf8] sm:$0xf0]  ;;  %v8960_v17 = vld [vmem:[%s12384_s1 + $0x228] sm:$0xf]  ;;  %v8689_v5 = vor.u32 %v11129_v41, %v8686_v45 }
 0x138   : > { %3809 = vmatpush.bf16.msrb.mxu0 %v8865_v35  ;;  %v8805_v21 = vor.u32 %v11160_v60, %v8804_v19  ;;  %v8698_v35 = vld [vmem:[%s12384_s1 + $0x24] sm:$0xf0] }
 0x139   : > { %v2375_v51 = vpop.f32.mrf.mxu3  ;;  %v8701_v37 = vor.u32 %v11132_v22, %v8698_v35  ;;  %v11214_v22 = vld [vmem:[%s12384_s1 + $0x2a8] sm:$0xf0]  ;;  %v11183_v35 = vld [vmem:[%s12384_s1 + $0x1b4] sm:$0xf] }
 0x13a   : > { %v11198_v51 = vld [vmem:[%s12384_s1 + $0x22c] sm:$0xf] }
 0x13b   : > { %3801 = vmatpush.bf16.msrb.mxu3 %v8709_v9 }
 0x13c   : > { %3810 = vmatpush.bf16.msrb.mxu0 %v8853_v50  ;;  %v2386_v31 = vpop.f32.mrf.mxu2  ;;  %v8962_v50 = vld [vmem:[%s12384_s1 + $0x234] sm:$0xf0] }
 0x13d   : > { %v2387_v57 = vadd.f32 %v2386_v31, %v12234_v46  ;;  %v8948_v31 = vld [vmem:[%s12384_s1 + $0x210] sm:$0xf] }
 0x13e   : > { %v8949_v56 = vor.u32 %v11196_v54, %v8948_v31  ;;  %v8776_v31 = vld [vmem:[%s12384_s1 + $0xb0] sm:$0xf] }
 0x13f   : > { %3802 = vmatpush.bf16.msrb.mxu3 %v8697_v32  ;;  %v2400_v1 = vadd.f32 %v2399_v47, %v2387_v57  ;;  %v2401_v2 = vpop.f32.mrf.mxu1  ;;  %v11157_v32 = vld [vmem:[%s12384_s1 + $0xe0] sm:$0xf0]  ;;  %v11199_v47 = vld [vmem:[%s12384_s1 + $0x230] sm:$0xf0]  ;;  %v8950_v57 = vld [vmem:[%s12384_s1 + $0x21c] sm:$0xf0] }
 0x140   : > { %3811 = vmatpush.bf16.msrb.mxu0 %v8841_v58  ;;  %v8793_v34 = vor.u32 %v11157_v32, %v8792_v3  ;;  %v8961_v49 = vor.u32 %v11199_v47, %v8960_v17  ;;  %v8953_v58 = vor.u32 %v11195_v55, %v8950_v57  ;;  %v11193_v2 = vld [vmem:[%s12384_s1 + $0x200] sm:$0xf0]  ;;  %v9020_v32 = vld [vmem:[%s12384_s1 + $0x2a0] sm:$0xf]  ;;  %v9008_v17 = vld [vmem:[%s12384_s1 + $0x288] sm:$0xf] }
 0x141   : > { %v11211_v47 = vld [vmem:[%s12384_s1 + $0x290] sm:$0xf0]  ;;  %v11152_v55 = vld [vmem:[%s12384_s1 + $0xb8] sm:$0xf0] }
 0x142   : > { %3822 = vmatpush.bf16.msrb.mxu1 %v8961_v49  ;;  %v8888_v49 = vld [vmem:[%s12384_s1 + $0x198] sm:$0xf]  ;;  %v11208_v57 = vld [vmem:[%s12384_s1 + $0x278] sm:$0xf0] }
 0x143   : > { %3803 = vmatpush.bf16.msrb.mxu3 %v8685_v28  ;;  %v8780_v28 = vld [vmem:[%s12384_s1 + $0xc0] sm:$0xf] }
 0x144   : > { %3812 = vmatpush.bf16.msrb.mxu0 %v8829_v61  ;;  %v2388_v63 = vpop.f32.mrf.mxu2  ;;  %v8938_v61 = vld [vmem:[%s12384_s1 + $0x204] sm:$0xf0] }
 0x145   : > { %v8941_v8 = vor.u32 %v11192_v4, %v8938_v61  ;;  %v8924_v63 = vld [vmem:[%s12384_s1 + $0x1e0] sm:$0xf] }
 0x146   : > { %3823 = vmatpush.bf16.msrb.mxu1 %v8949_v56  ;;  %v8925_v26 = vor.u32 %v11190_v11, %v8924_v63  ;;  %v8996_v56 = vld [vmem:[%s12384_s1 + $0x270] sm:$0xf]  ;;  %v11216_v63 = vld [vmem:[%s12384_s1 + $0x2bc] sm:$0xf]  ;;  %v9034_v11 = vld [vmem:[%s12384_s1 + $0x2c4] sm:$0xf0] }
 0x147   : > { %3848 = vmatpush.bf16.msra.mxu3 %v8773_v40  ;;  %v11154_v40 = vld [vmem:[%s12384_s1 + $0xc8] sm:$0xf0] }
 0x148   : > { %3813 = vmatpush.bf16.msrb.mxu0 %v8817_v15  ;;  %v8781_v43 = vor.u32 %v11154_v40, %v8780_v28  ;;  %v8902_v28 = vld [vmem:[%s12384_s1 + $0x1bc] sm:$0xf0] }
 0x14b   : > { %3849 = vmatpush.bf16.msra.mxu3 %v8761_v53  ;;  %v8965_v53 = vor.u32 %v11198_v51, %v8962_v50  ;;  %v11181_v51 = vld [vmem:[%s12384_s1 + $0x1a0] sm:$0xf0]  ;;  %v11180_v50 = vld [vmem:[%s12384_s1 + $0x19c] sm:$0xf] }
 0x14c   : > { %3814 = vmatpush.bf16.msrb.mxu0 %v8805_v21  ;;  %v9032_v21 = vld [vmem:[%s12384_s1 + $0x2b8] sm:$0xf] }
 0x14d   : > { %v2412_v9 = vpop.f32.mrf.mxu3  ;;  %v2425_v27 = vpop.f32.mrf.mxu0 }
 0x14e   : > { %v2413_v24 = vadd.f32 %v2412_v9, %v2400_v1  ;;  %v2426_v30 = vadd.f32 %v2425_v27, %v12327_v59  ;;  %v8936_v1 = vld [vmem:[%s12384_s1 + $0x1f8] sm:$0xf]  ;;  %v9033_v9 = vor.u32 %v11217_v29, %v9032_v21  ;;  %v11213_v29 = vld [vmem:[%s12384_s1 + $0x2a4] sm:$0xf] }
 0x14f   : > { %3850 = vmatpush.bf16.msra.mxu3 %v8749_v0  ;;  %v8937_v7 = vor.u32 %v11193_v2, %v8936_v1  ;;  %v11178_v1 = vld [vmem:[%s12384_s1 + $0x188] sm:$0xf0] }
 0x150   : > { %v2457_v25 = vmax.f32 %v2413_v24, 0.0  ;;  %3815 = vmatpush.bf16.msrb.mxu0 %v8793_v34  ;;  %v11186_v24 = vld [vmem:[%s12384_s1 + $0x1cc] sm:$0xf]  ;;  %3837 = vmatpush.bf16.msrb.mxu2 %v9033_v9  ;;  %v11184_v34 = vld [vmem:[%s12384_s1 + $0x1b8] sm:$0xf0] }
 0x151   : > { %3824 = vmatpush.bf16.msrb.mxu1 %v8937_v7  ;;  %v8878_v7 = vld [vmem:[%s12384_s1 + $0x18c] sm:$0xf0] }
 0x152   : > { %v12463_v38 = vmax.f32 %v1744_v33, %v2457_v25  ;;  %v9021_v33 = vor.u32 %v11214_v22, %v9020_v32  ;;  %v8900_v25 = vld [vmem:[%s12384_s1 + $0x1b0] sm:$0xf] }
 0x153   : > { %3851 = vmatpush.bf16.msra.mxu3 %v8737_v10  ;;  %v2451_v39 = vpop.f32.mrf.mxu1  ;;  %v9022_v9 = vld [vmem:[%s12384_s1 + $0x2ac] sm:$0xf0] }
 0x154   : > { %3816 = vmatpush.bf16.msrb.mxu0 %v8781_v43  ;;  %3838 = vmatpush.bf16.msrb.mxu2 %v9021_v33  ;;  %v8905_v43 = vor.u32 %v11183_v35, %v8902_v28  ;;  %v11174_v33 = vld [vmem:[%s12384_s1 + $0x16c] sm:$0xf] }
 0x155   : > { %v2414_v48 = vpop.f32.mrf.mxu3  ;;  %v2427_v52 = vpop.f32.mrf.mxu0  ;;  %3825 = vmatpush.bf16.msrb.mxu1 %v8925_v26  ;;  %v9037_v26 = vor.u32 %v11216_v63, %v9034_v11  ;;  %v8704_v11 = vld [vmem:[%s12384_s1 + $0x20] sm:$0xf] }
 0x156   : > { %v8890_v52 = vld [vmem:[%s12384_s1 + $0x1a4] sm:$0xf0] }
 0x157   : > { %3852 = vmatpush.bf16.msra.mxu3 %v8725_v18  ;;  %v8926_v18 = vld [vmem:[%s12384_s1 + $0x1ec] sm:$0xf0]  ;;  %v8893_v54 = vor.u32 %v11180_v50, %v8890_v52  ;;  %v11140_v50 = vld [vmem:[%s12384_s1 + $0x58] sm:$0xf0] }
 0x158   : > { %3874 = vmatpush.bf16.msra.mxu0 %v8965_v53  ;;  %v8929_v19 = vor.u32 %v11189_v13, %v8926_v18  ;;  %v8777_v13 = vor.u32 %v11152_v55, %v8776_v31  ;;  %v11168_v52 = vld [vmem:[%s12384_s1 + $0x13c] sm:$0xf]  ;;  %v8986_v55 = vld [vmem:[%s12384_s1 + $0x264] sm:$0xf0] }
 0x15b   : > { %3853 = vmatpush.bf16.msra.mxu3 %v8713_v23  ;;  %v2453_v62 = vpop.f32.mrf.mxu1  ;;  %v8912_v23 = vld [vmem:[%s12384_s1 + $0x1c8] sm:$0xf] }
 0x15c   : > { %v2438_v0 = vpop.f32.mrf.mxu2  ;;  %3875 = vmatpush.bf16.msra.mxu0 %v8953_v58  ;;  %v8913_v27 = vor.u32 %v11187_v36, %v8912_v23  ;;  %v8997_v62 = vor.u32 %v11208_v57, %v8996_v56  ;;  %v8752_v23 = vld [vmem:[%s12384_s1 + $0x80] sm:$0xf]  ;;  %v9025_v36 = vor.u32 %v11213_v29, %v9022_v9  ;;  %v11218_v9 = vld [vmem:[%s12384_s1 + $0x2c8] sm:$0xf0] }
 0x15d   : > { %v2439_v6 = vadd.f32 %v2438_v0, %v2426_v30  ;;  %v8914_v30 = vld [vmem:[%s12384_s1 + $0x1d4] sm:$0xf0]  ;;  %v8876_v0 = vld [vmem:[%s12384_s1 + $0x180] sm:$0xf] }
 0x15e   : > { %v8917_v3 = vor.u32 %v11186_v24, %v8914_v30  ;;  %3826 = vmatpush.bf16.msrb.mxu1 %v8913_v27  ;;  %v8877_v4 = vor.u32 %v11178_v1, %v8876_v0  ;;  %v11146_v27 = vld [vmem:[%s12384_s1 + $0x88] sm:$0xf0]  ;;  %v8972_v30 = vld [vmem:[%s12384_s1 + $0x240] sm:$0xf]  ;;  %v8716_v0 = vld [vmem:[%s12384_s1 + $0x38] sm:$0xf] }
 0x15f   : > { %3854 = vmatpush.bf16.msra.mxu3 %v8701_v37  ;;  %v2452_v10 = vadd.f32 %v2451_v39, %v2439_v6  ;;  %v8901_v39 = vor.u32 %v11184_v34, %v8900_v25  ;;  %v11177_v6 = vld [vmem:[%s12384_s1 + $0x184] sm:$0xf]  ;;  %v8866_v25 = vld [vmem:[%s12384_s1 + $0x174] sm:$0xf0]  ;;  %v11210_v34 = vld [vmem:[%s12384_s1 + $0x28c] sm:$0xf]  ;;  %v8753_v28 = vor.u32 %v11146_v27, %v8752_v23 }
 0x160   : > { %3876 = vmatpush.bf16.msra.mxu0 %v8941_v8  ;;  %v8869_v35 = vor.u32 %v11174_v33, %v8866_v25  ;;  %v11137_v1 = vld [vmem:[%s12384_s1 + $0x40] sm:$0xf0]  ;;  %v9040_v29 = vld [vmem:[%s12384_s1 + $0x2c0] sm:$0xf]  ;;  %v9347_v27 = vld [vmem:[%s12384_s1 + $0x438] sm:$0xf] }
 0x161   : > { %v2458_v15 = vmax.f32 %v2452_v10, 0.0  ;;  %v8881_v10 = vor.u32 %v11177_v6, %v8878_v7  ;;  %v11201_v7 = vld [vmem:[%s12384_s1 + $0x244] sm:$0xf]  ;;  %v8717_v63 = vor.u32 %v11137_v1, %v8716_v0  ;;  %v9041_v33 = vor.u32 %v11218_v9, %v9040_v29  ;;  %v9311_v0 = vld [vmem:[%s12384_s1 + $0x3f0] sm:$0xf] }
 0x162   : > { %3827 = vmatpush.bf16.msrb.mxu1 %v8901_v39  ;;  %v11256_v1 = vld [vmem:[%s12384_s1 + $0x3f8] sm:$0xf0]  ;;  %v8872_v29 = vld [vmem:[%s12384_s1 + $0x170] sm:$0xf] }
 0x163   : > { %3855 = vmatpush.bf16.msra.mxu3 %v8689_v5  ;;  %v12486_v60 = vmax.f32 %v1745_v14, %v2458_v15  ;;  %v9009_v5 = vor.u32 %v11211_v47, %v9008_v17  ;;  %v8764_v14 = vld [vmem:[%s12384_s1 + $0x98] sm:$0xf]  ;;  %v11207_v47 = vld [vmem:[%s12384_s1 + $0x274] sm:$0xf]  ;;  %v11176_v9 = vld [vmem:[%s12384_s1 + $0x178] sm:$0xf0] }
 0x164   : > { %v2440_v20 = vpop.f32.mrf.mxu2  ;;  %3877 = vmatpush.bf16.msra.mxu0 %v8929_v19  ;;  %v11149_v19 = vld [vmem:[%s12384_s1 + $0xa0] sm:$0xf0] }
 0x165   : > { %3839 = vmatpush.bf16.msrb.mxu2 %v9009_v5  ;;  %v11205_v20 = vld [vmem:[%s12384_s1 + $0x260] sm:$0xf0]  ;;  %v8765_v24 = vor.u32 %v11149_v19, %v8764_v14  ;;  %v8818_v19 = vld [vmem:[%s12384_s1 + $0x114] sm:$0xf0] }
 0x168   : > { %3878 = vmatpush.bf16.msra.mxu0 %v8917_v3  ;;  %v11202_v3 = vld [vmem:[%s12384_s1 + $0x248] sm:$0xf0] }
 0x169   : > { %3840 = vmatpush.bf16.msrb.mxu2 %v8997_v62  ;;  %v8973_v22 = vor.u32 %v11202_v3, %v8972_v30  ;;  %v11265_v3 = vld [vmem:[%s12384_s1 + $0x440] sm:$0xf0] }
 0x16c   : > { %3879 = vmatpush.bf16.msra.mxu0 %v8905_v43  ;;  %v11171_v43 = vld [vmem:[%s12384_s1 + $0x154] sm:$0xf] }
 0x16d   : > { %v3025_v37 = vpop.f32.mrf.mxu3  ;;  %v3038_v41 = vpop.f32.mrf.mxu0 }
 0x16e   : > { %v3026_v40 = vadd.f32 %v3025_v37, %v12167_v12  ;;  %v8889_v12 = vor.u32 %v11181_v51, %v8888_v49  ;;  %v9010_v37 = vld [vmem:[%s12384_s1 + $0x294] sm:$0xf0]  ;;  %v8728_v51 = vld [vmem:[%s12384_s1 + $0x50] sm:$0xf] }
 0x16f   : > { %v3051_v45 = vpop.f32.mrf.mxu1  ;;  %v9013_v39 = vor.u32 %v11210_v34, %v9010_v37 }
 0x170   : > { %v3039_v48 = vadd.f32 %v3038_v41, %v3026_v40  ;;  %3828 = vmatpush.bf16.msrb.mxu1 %v8889_v12  ;;  %3880 = vmatpush.bf16.msra.mxu0 %v8893_v54  ;;  %v8740_v40 = vld [vmem:[%s12384_s1 + $0x68] sm:$0xf]  ;;  %v11143_v41 = vld [vmem:[%s12384_s1 + $0x70] sm:$0xf0]  ;;  %v11204_v54 = vld [vmem:[%s12384_s1 + $0x25c] sm:$0xf] }
 0x171   : > { %v8741_v49 = vor.u32 %v11143_v41, %v8740_v40  ;;  %v8989_v56 = vor.u32 %v11204_v54, %v8986_v55  ;;  %v9348_v40 = vor.u32 %v11265_v3, %v9347_v27  ;;  %v8873_v3 = vor.u32 %v11176_v9, %v8872_v29 }
 0x172   : > { %v3052_v53 = vadd.f32 %v3051_v45, %v3039_v48  ;;  %v8854_v45 = vld [vmem:[%s12384_s1 + $0x15c] sm:$0xf0] }
 0x173   : > { %v8857_v17 = vor.u32 %v11171_v43, %v8854_v45  ;;  %v8998_v48 = vld [vmem:[%s12384_s1 + $0x27c] sm:$0xf0]  ;;  %v11262_v43 = vld [vmem:[%s12384_s1 + $0x428] sm:$0xf0]  ;;  %v11156_v45 = vld [vmem:[%s12384_s1 + $0xdc] sm:$0xf] }
 0x174   : > { %v3172_v58 = vmax.f32 %v3052_v53, 0.0  ;;  %3829 = vmatpush.bf16.msrb.mxu1 %v8877_v4  ;;  %3881 = vmatpush.bf16.msra.mxu0 %v8881_v10  ;;  %v9001_v5 = vor.u32 %v11207_v47, %v8998_v48  ;;  %v8842_v53 = vld [vmem:[%s12384_s1 + $0x144] sm:$0xf0]  ;;  %v8830_v4 = vld [vmem:[%s12384_s1 + $0x12c] sm:$0xf0] }
 0x175   : > { %v3027_v2 = vpop.f32.mrf.mxu3  ;;  %v3040_v8 = vpop.f32.mrf.mxu0  ;;  %v8845_v31 = vor.u32 %v11168_v52, %v8842_v53  ;;  %v11259_v52 = vld [vmem:[%s12384_s1 + $0x410] sm:$0xf0]  ;;  %v11153_v53 = vld [vmem:[%s12384_s1 + $0xc4] sm:$0xf] }
 0x176   : > { %v3176_v61 = vmax.f32 %v12415_v16, %v3172_v58  ;;  %v8984_v16 = vld [vmem:[%s12384_s1 + $0x258] sm:$0xf]  ;;  %v8729_v58 = vor.u32 %v11140_v50, %v8728_v51  ;;  %v11165_v2 = vld [vmem:[%s12384_s1 + $0x124] sm:$0xf]  ;;  %v9323_v50 = vld [vmem:[%s12384_s1 + $0x408] sm:$0xf] }
 0x177   : > { %v3053_v15 = vpop.f32.mrf.mxu1  ;;  %v8985_v21 = vor.u32 %v11205_v20, %v8984_v16  ;;  %v8833_v6 = vor.u32 %v11165_v2, %v8830_v4  ;;  %v8992_v4 = vld [vmem:[%s12384_s1 + $0x260] sm:$0xf] }
 0x178   : > { %v12519_v18 = vpack.c.bf16 %v3176_v61, %v3176_v61  ;;  %3889 = vmatpush.bf16.msra.mxu1 %v9037_v26  ;;  %v8974_v61 = vld [vmem:[%s12384_s1 + $0x24c] sm:$0xf0]  ;;  %v11162_v26 = vld [vmem:[%s12384_s1 + $0x10c] sm:$0xf] }
 0x179   : > { %3841 = vmatpush.bf16.msrb.mxu2 %v8985_v21  ;;  %v8977_v10 = vor.u32 %v11201_v7, %v8974_v61  ;;  %v8821_v16 = vor.u32 %v11162_v26, %v8818_v19  ;;  %v9312_v61 = vor.u32 %v11256_v1, %v9311_v0  ;;  %v9287_v19 = vld [vmem:[%s12384_s1 + $0x3c0] sm:$0xf]  ;;  %v11285_v0 = vld [vmem:[%s12384_s1 + $0x4e4] sm:$0xf]  ;;  %v9433_v1 = vld [vmem:[%s12384_s1 + $0x4ec] sm:$0xf0] }
 0x17a   : > { %3804 = vmatmul.bf16.vlgmr.msrb.gmra.mxu3 %v12519_v18 }
 0x17b   : > { %3900 = vmatpush.bf16.msrb.mxu3 %v8777_v13  ;;  %v11134_v13 = vld [vmem:[%s12384_s1 + $0x28] sm:$0xf0] }
 0x17c   : > { %v3064_v32 = vpop.f32.mrf.mxu2  ;;  %3890 = vmatpush.bf16.msra.mxu1 %v9025_v36  ;;  %v8705_v21 = vor.u32 %v11134_v13, %v8704_v11  ;;  %v8692_v36 = vld [vmem:[%s12384_s1 + $0x8] sm:$0xf]  ;;  %v11203_v13 = vld [vmem:[%s12384_s1 + $0x250] sm:$0xf0] }
 0x17d   : > { %3842 = vmatpush.bf16.msrb.mxu2 %v8973_v22  ;;  %v3065_v57 = vadd.f32 %v3064_v32, %v12229_v42  ;;  %v11159_v32 = vld [vmem:[%s12384_s1 + $0xf4] sm:$0xf]  ;;  %v8806_v22 = vld [vmem:[%s12384_s1 + $0xfc] sm:$0xf0]  ;;  %v8980_v11 = vld [vmem:[%s12384_s1 + $0x248] sm:$0xf] }
 0x17e   : > { %v8809_v34 = vor.u32 %v11159_v32, %v8806_v22  ;;  %v9275_v32 = vld [vmem:[%s12384_s1 + $0x3a8] sm:$0xf]  ;;  %v11247_v22 = vld [vmem:[%s12384_s1 + $0x3b0] sm:$0xf0] }
 0x17f   : > { %3901 = vmatpush.bf16.msrb.mxu3 %v8765_v24  ;;  %v11131_v24 = vld [vmem:[%s12384_s1 + $0x10] sm:$0xf0] }
 0x180   : > { %3891 = vmatpush.bf16.msra.mxu1 %v9013_v39  ;;  %v8693_v37 = vor.u32 %v11131_v24, %v8692_v36  ;;  %v9028_v39 = vld [vmem:[%s12384_s1 + $0x2a8] sm:$0xf]  ;;  %v11241_v36 = vld [vmem:[%s12384_s1 + $0x380] sm:$0xf0] }
 0x181   : > { %3861 = vmatpush.bf16.msra.mxu2 %v8869_v35 }
 0x183   : > { %3902 = vmatpush.bf16.msrb.mxu3 %v8753_v28  ;;  %v11215_v28 = vld [vmem:[%s12384_s1 + $0x2b0] sm:$0xf0] }
 0x184   : > { %v3066_v12 = vpop.f32.mrf.mxu2  ;;  %3892 = vmatpush.bf16.msra.mxu1 %v9001_v5  ;;  %v9029_v47 = vor.u32 %v11215_v28, %v9028_v39  ;;  %v9016_v5 = vld [vmem:[%s12384_s1 + $0x290] sm:$0xf]  ;;  %v11173_v39 = vld [vmem:[%s12384_s1 + $0x160] sm:$0xf0]  ;;  %v9239_v28 = vld [vmem:[%s12384_s1 + $0x360] sm:$0xf] }
 0x185   : > { %3862 = vmatpush.bf16.msra.mxu2 %v8857_v17  ;;  %v8794_v17 = vld [vmem:[%s12384_s1 + $0xe4] sm:$0xf0] }
 0x186   : > { %v8797_v48 = vor.u32 %v11156_v45, %v8794_v17  ;;  %v11244_v45 = vld [vmem:[%s12384_s1 + $0x398] sm:$0xf0]  ;;  %v8848_v17 = vld [vmem:[%s12384_s1 + $0x140] sm:$0xf] }
 0x187   : > { %3903 = vmatpush.bf16.msrb.mxu3 %v8741_v49  ;;  %v11212_v49 = vld [vmem:[%s12384_s1 + $0x298] sm:$0xf0] }
 0x188   : > { %3893 = vmatpush.bf16.msra.mxu1 %v8989_v56  ;;  %v9017_v54 = vor.u32 %v11212_v49, %v9016_v5  ;;  %v9004_v56 = vld [vmem:[%s12384_s1 + $0x278] sm:$0xf]  ;;  %v11170_v5 = vld [vmem:[%s12384_s1 + $0x148] sm:$0xf0]  ;;  %v11288_v49 = vld [vmem:[%s12384_s1 + $0x4fc] sm:$0xf] }
 0x189   : > { %v3090_v62 = vpop.f32.mrf.mxu0  ;;  %3863 = vmatpush.bf16.msra.mxu2 %v8845_v31  ;;  %v8782_v31 = vld [vmem:[%s12384_s1 + $0xcc] sm:$0xf0] }
 0x18a   : > { %3856 = vmatmul.bf16.vlgmr.msra.gmra.mxu3 %v12519_v18  ;;  %v8785_v55 = vor.u32 %v11153_v53, %v8782_v31 }
 0x18b   : > { %3904 = vmatpush.bf16.msrb.mxu3 %v8729_v58 }
 0x18c   : > { %3894 = vmatpush.bf16.msra.mxu1 %v8977_v10  ;;  %v9299_v10 = vld [vmem:[%s12384_s1 + $0x3d8] sm:$0xf] }
 0x18d   : > { %v3077_v8 = vpop.f32.mrf.mxu3  ;;  %3864 = vmatpush.bf16.msra.mxu2 %v8833_v6  ;;  %v11206_v6 = vld [vmem:[%s12384_s1 + $0x268] sm:$0xf0] }
 0x18e   : > { %v3078_v42 = vadd.f32 %v3077_v8, %v3065_v57  ;;  %v11209_v57 = vld [vmem:[%s12384_s1 + $0x280] sm:$0xf0] }
 0x18f   : > { %v3103_v14 = vpop.f32.mrf.mxu1  ;;  %3905 = vmatpush.bf16.msrb.mxu3 %v8717_v63  ;;  %v9005_v2 = vor.u32 %v11209_v57, %v9004_v56  ;;  %v8836_v56 = vld [vmem:[%s12384_s1 + $0x128] sm:$0xf] }
 0x190   : > { %v3091_v15 = vadd.f32 %v3090_v62, %v3078_v42  ;;  %v3104_v58 = vadd.f32 %v3103_v14, %v12234_v46  ;;  %v9324_v62 = vor.u32 %v11259_v52, %v9323_v50  ;;  %v11253_v46 = vld [vmem:[%s12384_s1 + $0x3e0] sm:$0xf0]  ;;  %v8993_v42 = vor.u32 %v11206_v6, %v8992_v4  ;;  %v9227_v50 = vld [vmem:[%s12384_s1 + $0x348] sm:$0xf]  ;;  %v11232_v4 = vld [vmem:[%s12384_s1 + $0x338] sm:$0xf0] }
 0x191   : > { %v3092_v23 = vpop.f32.mrf.mxu0  ;;  %3865 = vmatpush.bf16.msra.mxu2 %v8821_v16  ;;  %v9300_v26 = vor.u32 %v11253_v46, %v9299_v10  ;;  %v11250_v16 = vld [vmem:[%s12384_s1 + $0x3c8] sm:$0xf0]  ;;  %v9436_v10 = vor.u32 %v11285_v0, %v9433_v1 }
 0x192   : > { %v3173_v20 = vmax.f32 %v3091_v15, 0.0  ;;  %v9251_v23 = vld [vmem:[%s12384_s1 + $0x378] sm:$0xf]  ;;  %v9288_v27 = vor.u32 %v11250_v16, %v9287_v19 }
 0x193   : > { %3906 = vmatpush.bf16.msrb.mxu3 %v8705_v21  ;;  %v8981_v21 = vor.u32 %v11203_v13, %v8980_v11  ;;  %v11164_v11 = vld [vmem:[%s12384_s1 + $0x118] sm:$0xf0]  ;;  %v9203_v13 = vld [vmem:[%s12384_s1 + $0x318] sm:$0xf] }
 0x194   : > { %v3177_v30 = vmax.f32 %v12434_v44, %v3173_v20  ;;  %v9335_v44 = vld [vmem:[%s12384_s1 + $0x420] sm:$0xf]  ;;  %v9421_v19 = vld [vmem:[%s12384_s1 + $0x4d4] sm:$0xf0] }
 0x195   : > { %v3079_v25 = vpop.f32.mrf.mxu3  ;;  %3866 = vmatpush.bf16.msra.mxu2 %v8809_v34  ;;  %v9336_v51 = vor.u32 %v11262_v43, %v9335_v44  ;;  %v9252_v34 = vor.u32 %v11241_v36, %v9251_v23  ;;  %v9263_v43 = vld [vmem:[%s12384_s1 + $0x390] sm:$0xf]  ;;  %v8812_v36 = vld [vmem:[%s12384_s1 + $0xf8] sm:$0xf] }
 0x196   : > { %v12568_v35 = vpack.c.bf16 %v3177_v30, %v3177_v30  ;;  %v9264_v52 = vor.u32 %v11244_v45, %v9263_v43  ;;  %v11276_v43 = vld [vmem:[%s12384_s1 + $0x49c] sm:$0xf]  ;;  %v9397_v45 = vld [vmem:[%s12384_s1 + $0x4a4] sm:$0xf0] }
 0x197   : > { %v3105_v41 = vpop.f32.mrf.mxu1  ;;  %3907 = vmatpush.bf16.msrb.mxu3 %v8693_v37  ;;  %v8860_v37 = vld [vmem:[%s12384_s1 + $0x158] sm:$0xf] }
 0x198   : > { %3817 = vmatmul.bf16.vlgmr.msrb.gmra.mxu0 %v12568_v35  ;;  %v9276_v41 = vor.u32 %v11247_v22, %v9275_v32  ;;  %v11279_v32 = vld [vmem:[%s12384_s1 + $0x4b4] sm:$0xf]  ;;  %v9409_v22 = vld [vmem:[%s12384_s1 + $0x4bc] sm:$0xf0] }
 0x199   : > { %3941 = vmatpush.bf16.msrb.mxu0 %v9041_v33  ;;  %3867 = vmatpush.bf16.msra.mxu2 %v8797_v48 }
 0x19a   : > { %3908 = vmatmul.bf16.vlgmr.msrb.gmra.mxu3 %v12519_v18 }
 0x19b   : > { %4569 = vmatpush.bf16.msra.mxu3 %v9348_v40 }
 0x19c   : > { %v3116_v12 = vpop.f32.mrf.mxu2 }
 0x19d   : > { %3942 = vmatpush.bf16.msrb.mxu0 %v9029_v47  ;;  %3868 = vmatpush.bf16.msra.mxu2 %v8785_v55  ;;  %v3117_v7 = vadd.f32 %v3116_v12, %v3104_v58  ;;  %v11235_v12 = vld [vmem:[%s12384_s1 + $0x350] sm:$0xf0] }
 0x19e   : > { %v9228_v58 = vor.u32 %v11235_v12, %v9227_v50  ;;  %v11155_v50 = vld [vmem:[%s12384_s1 + $0xd0] sm:$0xf0]  ;;  %v9167_v12 = vld [vmem:[%s12384_s1 + $0x2d0] sm:$0xf] }
 0x19f   : > { %4570 = vmatpush.bf16.msra.mxu3 %v9336_v51  ;;  %v9445_v51 = vld [vmem:[%s12384_s1 + $0x504] sm:$0xf0] }
 0x1a0   : > { %v9448_v55 = vor.u32 %v11288_v49, %v9445_v51  ;;  %v9400_v51 = vor.u32 %v11276_v43, %v9397_v45  ;;  %v11179_v43 = vld [vmem:[%s12384_s1 + $0x190] sm:$0xf0] }
 0x1a1   : > { %3943 = vmatpush.bf16.msrb.mxu0 %v9017_v54  ;;  %v8849_v54 = vor.u32 %v11170_v5, %v8848_v17  ;;  %v8932_v17 = vld [vmem:[%s12384_s1 + $0x1e8] sm:$0xf] }
 0x1a2   : > { %v8788_v5 = vld [vmem:[%s12384_s1 + $0xc8] sm:$0xf] }
 0x1a3   : > { %4571 = vmatpush.bf16.msra.mxu3 %v9324_v62  ;;  %v11167_v62 = vld [vmem:[%s12384_s1 + $0x130] sm:$0xf0] }
 0x1a4   : > { %v3118_v8 = vpop.f32.mrf.mxu2 }
 0x1a5   : > { %3944 = vmatpush.bf16.msrb.mxu0 %v9005_v2  ;;  %v9215_v2 = vld [vmem:[%s12384_s1 + $0x330] sm:$0xf]  ;;  %v8837_v8 = vor.u32 %v11167_v62, %v8836_v56  ;;  %v11289_v56 = vld [vmem:[%s12384_s1 + $0x500] sm:$0xf0]  ;;  %v8789_v62 = vor.u32 %v11155_v50, %v8788_v5  ;;  %v9395_v5 = vld [vmem:[%s12384_s1 + $0x498] sm:$0xf] }
 0x1a6   : > { %v11252_v50 = vld [vmem:[%s12384_s1 + $0x3dc] sm:$0xf] }
 0x1a7   : > { %4572 = vmatpush.bf16.msra.mxu3 %v9312_v61  ;;  %v11200_v61 = vld [vmem:[%s12384_s1 + $0x238] sm:$0xf0] }
 0x1a9   : > { %v3129_v63 = vpop.f32.mrf.mxu3  ;;  %v3142_v15 = vpop.f32.mrf.mxu0  ;;  %3945 = vmatpush.bf16.msrb.mxu0 %v8993_v42  ;;  %v9216_v42 = vor.u32 %v11232_v4, %v9215_v2  ;;  %v8920_v2 = vld [vmem:[%s12384_s1 + $0x1d0] sm:$0xf]  ;;  %v11188_v4 = vld [vmem:[%s12384_s1 + $0x1d8] sm:$0xf0] }
 0x1aa   : > { %v3130_v14 = vadd.f32 %v3129_v63, %v3117_v7  ;;  %v3143_v25 = vadd.f32 %v3142_v15, %v12327_v59  ;;  %v8861_v59 = vor.u32 %v11173_v39, %v8860_v37  ;;  %v8968_v7 = vld [vmem:[%s12384_s1 + $0x230] sm:$0xf]  ;;  %v11229_v15 = vld [vmem:[%s12384_s1 + $0x320] sm:$0xf0] }
 0x1ab   : > { %4573 = vmatpush.bf16.msra.mxu3 %v9300_v26  ;;  %v8824_v63 = vld [vmem:[%s12384_s1 + $0x110] sm:$0xf]  ;;  %v11282_v26 = vld [vmem:[%s12384_s1 + $0x4cc] sm:$0xf]  ;;  %v9204_v9 = vor.u32 %v11229_v15, %v9203_v13  ;;  %v11185_v15 = vld [vmem:[%s12384_s1 + $0x1c0] sm:$0xf0] }
 0x1ac   : > { %v3174_v20 = vmax.f32 %v3130_v14, 0.0  ;;  %v8969_v14 = vor.u32 %v11200_v61, %v8968_v7  ;;  %v8825_v29 = vor.u32 %v11164_v11, %v8824_v63  ;;  %v9424_v23 = vor.u32 %v11282_v26, %v9421_v19  ;;  %v11270_v61 = vld [vmem:[%s12384_s1 + $0x46c] sm:$0xf]  ;;  %v9337_v63 = vld [vmem:[%s12384_s1 + $0x42c] sm:$0xf0] }
 0x1ad   : > { %3946 = vmatpush.bf16.msrb.mxu0 %v8981_v21  ;;  %v8921_v11 = vor.u32 %v11188_v4, %v8920_v2  ;;  %v11249_v2 = vld [vmem:[%s12384_s1 + $0x3c4] sm:$0xf]  ;;  %v9289_v4 = vld [vmem:[%s12384_s1 + $0x3cc] sm:$0xf0] }
 0x1ae   : > { %v3178_v24 = vmax.f32 %v12463_v38, %v3174_v20  ;;  %v11238_v38 = vld [vmem:[%s12384_s1 + $0x368] sm:$0xf0]  ;;  %v8956_v20 = vld [vmem:[%s12384_s1 + $0x218] sm:$0xf] }
 0x1af   : > { %v3155_v30 = vpop.f32.mrf.mxu1  ;;  %4574 = vmatpush.bf16.msra.mxu3 %v9288_v27  ;;  %v9240_v48 = vor.u32 %v11238_v38, %v9239_v28  ;;  %v9191_v27 = vld [vmem:[%s12384_s1 + $0x300] sm:$0xf]  ;;  %v9412_v28 = vor.u32 %v11279_v32, %v9409_v22  ;;  %v11182_v32 = vld [vmem:[%s12384_s1 + $0x1a8] sm:$0xf0] }
 0x1b0   : > { %v12604_v33 = vpack.c.bf16 %v3178_v24, %v3178_v24  ;;  %v3156_v47 = vadd.f32 %v3155_v30, %v3143_v25  ;;  %v11161_v24 = vld [vmem:[%s12384_s1 + $0x100] sm:$0xf0]  ;;  %v8944_v25 = vld [vmem:[%s12384_s1 + $0x200] sm:$0xf] }
 0x1b1   : > { %v3131_v40 = vpop.f32.mrf.mxu3  ;;  %v3144_v44 = vpop.f32.mrf.mxu0  ;;  %v8813_v37 = vor.u32 %v11161_v24, %v8812_v36  ;;  %v8800_v38 = vld [vmem:[%s12384_s1 + $0xe0] sm:$0xf]  ;;  %v9523_v24 = vld [vmem:[%s12384_s1 + $0x590] sm:$0xf] }
 0x1b2   : > { %3830 = vmatmul.bf16.vlgmr.msrb.gmra.mxu1 %v12604_v33  ;;  %3882 = vmatmul.bf16.vlgmr.msra.gmra.mxu0 %v12604_v33  ;;  %v11158_v40 = vld [vmem:[%s12384_s1 + $0xe8] sm:$0xf0]  ;;  %v9179_v44 = vld [vmem:[%s12384_s1 + $0x2e8] sm:$0xf] }
 0x1b3   : > { %3913 = vmatpush.bf16.msrb.mxu1 %v8873_v3  ;;  %4556 = vmatpush.bf16.msra.mxu0 %v9252_v34  ;;  %v11226_v3 = vld [vmem:[%s12384_s1 + $0x308] sm:$0xf0] }
 0x1b4   : > { %4575 = vmatpush.bf16.msra.mxu3 %v9276_v41  ;;  %v11194_v34 = vld [vmem:[%s12384_s1 + $0x208] sm:$0xf0]  ;;  %v9192_v39 = vor.u32 %v11226_v3, %v9191_v27  ;;  %v11308_v27 = vld [vmem:[%s12384_s1 + $0x598] sm:$0xf0]  ;;  %v8896_v3 = vld [vmem:[%s12384_s1 + $0x1a0] sm:$0xf] }
 0x1b5   : > { %v8945_v41 = vor.u32 %v11194_v34, %v8944_v25  ;;  %v9407_v34 = vld [vmem:[%s12384_s1 + $0x4b0] sm:$0xf] }
 0x1b7   : > { %3914 = vmatpush.bf16.msrb.mxu1 %v8861_v59  ;;  %v3157_v53 = vpop.f32.mrf.mxu1  ;;  %4557 = vmatpush.bf16.msra.mxu0 %v9240_v48  ;;  %v11223_v59 = vld [vmem:[%s12384_s1 + $0x2f0] sm:$0xf0]  ;;  %v8801_v48 = vor.u32 %v11158_v40, %v8800_v38  ;;  %v9313_v38 = vld [vmem:[%s12384_s1 + $0x3fc] sm:$0xf0]  ;;  %v8897_v40 = vor.u32 %v11182_v32, %v8896_v3  ;;  %v9463_v3 = vld [vmem:[%s12384_s1 + $0x518] sm:$0xf] }
 0x1b8   : > { %v3168_v31 = vpop.f32.mrf.mxu2  ;;  %4576 = vmatpush.bf16.msra.mxu3 %v9264_v52  ;;  %v9180_v49 = vor.u32 %v11223_v59, %v9179_v44  ;;  %v11220_v52 = vld [vmem:[%s12384_s1 + $0x2d8] sm:$0xf0]  ;;  %v9511_v44 = vld [vmem:[%s12384_s1 + $0x578] sm:$0xf]  ;;  %v8884_v59 = vld [vmem:[%s12384_s1 + $0x188] sm:$0xf] }
 0x1b9   : > { %v3169_v57 = vadd.f32 %v3168_v31, %v3156_v47  ;;  %v11191_v47 = vld [vmem:[%s12384_s1 + $0x1f0] sm:$0xf0]  ;;  %v11273_v31 = vld [vmem:[%s12384_s1 + $0x484] sm:$0xf]  ;;  %v9168_v0 = vor.u32 %v11220_v52, %v9167_v12  ;;  %v9301_v12 = vld [vmem:[%s12384_s1 + $0x3e4] sm:$0xf0]  ;;  %v8885_v52 = vor.u32 %v11179_v43, %v8884_v59 }
 0x1ba   : > { %v8933_v53 = vor.u32 %v11191_v47, %v8932_v17  ;;  %v9515_v47 = vld [vmem:[%s12384_s1 + $0x588] sm:$0xf]  ;;  %v11293_v32 = vld [vmem:[%s12384_s1 + $0x520] sm:$0xf0]  ;;  %v11295_v59 = vld [vmem:[%s12384_s1 + $0x530] sm:$0xf0] }
 0x1bb   : > { %v3175_v6 = vmax.f32 %v3169_v57, 0.0  ;;  %3915 = vmatpush.bf16.msrb.mxu1 %v8849_v54  ;;  %4558 = vmatpush.bf16.msra.mxu0 %v9228_v58  ;;  %v9385_v54 = vld [vmem:[%s12384_s1 + $0x48c] sm:$0xf0]  ;;  %v11264_v57 = vld [vmem:[%s12384_s1 + $0x43c] sm:$0xf]  ;;  %v9464_v43 = vor.u32 %v11293_v32, %v9463_v3 }
 0x1bc   : > { %4634 = vmatpush.bf16.msrb.mxu3 %v9448_v55  ;;  %v9443_v55 = vld [vmem:[%s12384_s1 + $0x4f8] sm:$0xf]  ;;  %v9349_v58 = vld [vmem:[%s12384_s1 + $0x444] sm:$0xf0]  ;;  %v9388_v1 = vor.u32 %v11273_v31, %v9385_v54  ;;  %v11302_v31 = vld [vmem:[%s12384_s1 + $0x568] sm:$0xf0] }
 0x1bd   : > { %v3179_v46 = vmax.f32 %v12486_v60, %v3175_v6  ;;  %4577 = vmatmul.bf16.vlgmr.msra.gmra.mxu3 %v12568_v35  ;;  %v11197_v60 = vld [vmem:[%s12384_s1 + $0x220] sm:$0xf0]  ;;  %v9444_v6 = vor.u32 %v11289_v56, %v9443_v55  ;;  %v9352_v7 = vor.u32 %v11264_v57, %v9349_v58  ;;  %v9304_v56 = vor.u32 %v11252_v50, %v9301_v12  ;;  %v9503_v57 = vld [vmem:[%s12384_s1 + $0x570] sm:$0xf]  ;;  %v11304_v58 = vld [vmem:[%s12384_s1 + $0x578] sm:$0xf0] }
 0x1be   : > { %v8957_v30 = vor.u32 %v11197_v60, %v8956_v20  ;;  %v11267_v20 = vld [vmem:[%s12384_s1 + $0x454] sm:$0xf]  ;;  %v9361_v60 = vld [vmem:[%s12384_s1 + $0x45c] sm:$0xf0]  ;;  %v9722_v12 = vld [vmem:[%s12384_s1 + $0x630] sm:$0xf] }
 0x1bf   : > { %v12637_v16 = vpack.c.bf16 %v3179_v46, %v3179_v46  ;;  %3916 = vmatpush.bf16.msrb.mxu1 %v8837_v8  ;;  %4559 = vmatpush.bf16.msra.mxu0 %v9216_v42  ;;  %v9373_v8 = vld [vmem:[%s12384_s1 + $0x474] sm:$0xf0]  ;;  %v11286_v46 = vld [vmem:[%s12384_s1 + $0x4e8] sm:$0xf0]  ;;  %v11261_v42 = vld [vmem:[%s12384_s1 + $0x424] sm:$0xf] }
 0x1c0   : > { %4635 = vmatpush.bf16.msrb.mxu3 %v9436_v10  ;;  %v3170_v21 = vpop.f32.mrf.mxu2  ;;  %v9431_v10 = vld [vmem:[%s12384_s1 + $0x4e0] sm:$0xf]  ;;  %v9376_v13 = vor.u32 %v11270_v61, %v9373_v8  ;;  %v9340_v19 = vor.u32 %v11261_v42, %v9337_v63  ;;  %v9504_v61 = vor.u32 %v11304_v58, %v9503_v57  ;;  %v11301_v42 = vld [vmem:[%s12384_s1 + $0x560] sm:$0xf0]  ;;  %v9371_v63 = vld [vmem:[%s12384_s1 + $0x468] sm:$0xf] }
 0x1c1   : > { %9042 = vmatmul.msk.bf16.vlgmr.msrb.gmra.mxu2 %vm3792_vm2, %v12637_v16  ;;  %v9432_v26 = vor.u32 %v11286_v46, %v9431_v10  ;;  %v9419_v21 = vld [vmem:[%s12384_s1 + $0x4c8] sm:$0xf]  ;;  %v9292_v10 = vor.u32 %v11249_v2, %v9289_v4  ;;  %v9491_v46 = vld [vmem:[%s12384_s1 + $0x558] sm:$0xf]  ;;  %v11287_v50 = vld [vmem:[%s12384_s1 + $0x4f0] sm:$0xf0] }
 0x1c2   : > { %3926 = vmatpush.bf16.msrb.mxu2 %v8969_v14  ;;  %9043 = vmatmul.msk.bf16.vlgmr.msra.gmra.mxu1 %vm3792_vm2, %v12637_v16  ;;  %v8908_v14 = vld [vmem:[%s12384_s1 + $0x1b8] sm:$0xf]  ;;  %v11284_v4 = vld [vmem:[%s12384_s1 + $0x4d8] sm:$0xf0]  ;;  %v9686_v3 = vld [vmem:[%s12384_s1 + $0x5e8] sm:$0xf] }
 0x1c3   : > { %3917 = vmatpush.bf16.msrb.mxu1 %v8825_v29  ;;  %9044 = vmatmul.msk.bf16.vlgmr.msrb.gmra.mxu0 %vm3792_vm2, %v12637_v16  ;;  %v11283_v29 = vld [vmem:[%s12384_s1 + $0x4d0] sm:$0xf0]  ;;  %v8909_v36 = vor.u32 %v11185_v15, %v8908_v14  ;;  %v11246_v14 = vld [vmem:[%s12384_s1 + $0x3ac] sm:$0xf]  ;;  %v9277_v15 = vld [vmem:[%s12384_s1 + $0x3b4] sm:$0xf0] }
 0x1c4   : > { %4560 = vmatpush.bf16.msra.mxu0 %v9204_v9  ;;  %4636 = vmatpush.bf16.msrb.mxu3 %v9424_v23  ;;  %v11258_v9 = vld [vmem:[%s12384_s1 + $0x40c] sm:$0xf]  ;;  %v9325_v23 = vld [vmem:[%s12384_s1 + $0x414] sm:$0xf0]  ;;  %v9420_v22 = vor.u32 %v11283_v29, %v9419_v21  ;;  %v11319_v32 = vld [vmem:[%s12384_s1 + $0x5f0] sm:$0xf0] }
 0x1c5   : > { %v9328_v25 = vor.u32 %v11258_v9, %v9325_v23  ;;  %v11298_v21 = vld [vmem:[%s12384_s1 + $0x548] sm:$0xf0]  ;;  %v9280_v9 = vor.u32 %v11246_v14, %v9277_v15  ;;  %v9359_v23 = vld [vmem:[%s12384_s1 + $0x450] sm:$0xf]  ;;  %v9415_v14 = vld [vmem:[%s12384_s1 + $0x4b8] sm:$0xf] }
 0x1c6   : > { %3927 = vmatpush.bf16.msrb.mxu2 %v8957_v30  ;;  %v9364_v30 = vor.u32 %v11267_v20, %v9361_v60  ;;  %v9492_v20 = vor.u32 %v11301_v42, %v9491_v46  ;;  %v9479_v60 = vld [vmem:[%s12384_s1 + $0x540] sm:$0xf]  ;;  %v9241_v46 = vld [vmem:[%s12384_s1 + $0x36c] sm:$0xf0]  ;;  %v11281_v15 = vld [vmem:[%s12384_s1 + $0x4c0] sm:$0xf0] }
 0x1c7   : > { %3918 = vmatpush.bf16.msrb.mxu1 %v8813_v37  ;;  %v9524_v37 = vor.u32 %v11308_v27, %v9523_v24  ;;  %v11243_v24 = vld [vmem:[%s12384_s1 + $0x394] sm:$0xf] }
 0x1c8   : > { %4561 = vmatpush.bf16.msra.mxu0 %v9192_v39  ;;  %4637 = vmatpush.bf16.msrb.mxu3 %v9412_v28  ;;  %v11280_v39 = vld [vmem:[%s12384_s1 + $0x4b8] sm:$0xf0]  ;;  %v11255_v28 = vld [vmem:[%s12384_s1 + $0x3f4] sm:$0xf] }
 0x1c9   : > { %v9408_v45 = vor.u32 %v11280_v39, %v9407_v34  ;;  %v9316_v17 = vor.u32 %v11255_v28, %v9313_v38  ;;  %v9451_v34 = vld [vmem:[%s12384_s1 + $0x500] sm:$0xf]  ;;  %v11290_v39 = vld [vmem:[%s12384_s1 + $0x508] sm:$0xf0]  ;;  %v9734_v28 = vld [vmem:[%s12384_s1 + $0x648] sm:$0xf] }
 0x1ca   : > { %3928 = vmatpush.bf16.msrb.mxu2 %v8945_v41  ;;  %v11305_v41 = vld [vmem:[%s12384_s1 + $0x580] sm:$0xf0]  ;;  %v11331_v38 = vld [vmem:[%s12384_s1 + $0x650] sm:$0xf0] }
 0x1cb   : > { %3919 = vmatpush.bf16.msrb.mxu1 %v8801_v48  ;;  %v11307_v48 = vld [vmem:[%s12384_s1 + $0x590] sm:$0xf0] }
 0x1cc   : > { %4562 = vmatpush.bf16.msra.mxu0 %v9180_v49  ;;  %4638 = vmatpush.bf16.msrb.mxu3 %v9400_v51  ;;  %v9512_v49 = vor.u32 %v11305_v41, %v9511_v44  ;;  %v11277_v51 = vld [vmem:[%s12384_s1 + $0x4a0] sm:$0xf0]  ;;  %v9516_v54 = vor.u32 %v11307_v48, %v9515_v47  ;;  %v9467_v41 = vld [vmem:[%s12384_s1 + $0x528] sm:$0xf]  ;;  %v9735_v47 = vor.u32 %v11331_v38, %v9734_v28  ;;  %v11303_v48 = vld [vmem:[%s12384_s1 + $0x574] sm:$0xf] }
 0x1cd   : > { %v9396_v55 = vor.u32 %v11277_v51, %v9395_v5  ;;  %v9505_v5 = vld [vmem:[%s12384_s1 + $0x57c] sm:$0xf0]  ;;  %v9468_v51 = vor.u32 %v11295_v59, %v9467_v41  ;;  %v9687_v28 = vor.u32 %v11319_v32, %v9686_v3  ;;  %v11291_v38 = vld [vmem:[%s12384_s1 + $0x514] sm:$0xf]  ;;  %v9674_v59 = vld [vmem:[%s12384_s1 + $0x5d0] sm:$0xf] }
 0x1ce   : > { %3929 = vmatpush.bf16.msrb.mxu2 %v8933_v53  ;;  %v9499_v53 = vld [vmem:[%s12384_s1 + $0x560] sm:$0xf]  ;;  %v11275_v41 = vld [vmem:[%s12384_s1 + $0x490] sm:$0xf0] }
 0x1cf   : > { %3920 = vmatpush.bf16.msrb.mxu1 %v8789_v62  ;;  %v9383_v62 = vld [vmem:[%s12384_s1 + $0x480] sm:$0xf]  ;;  %v11219_v32 = vld [vmem:[%s12384_s1 + $0x2d4] sm:$0xf] }
 0x1d0   : > { %4563 = vmatpush.bf16.msra.mxu0 %v9168_v0  ;;  %4639 = vmatpush.bf16.msrb.mxu3 %v9388_v1  ;;  %v9500_v0 = vor.u32 %v11302_v31, %v9499_v53  ;;  %v11274_v1 = vld [vmem:[%s12384_s1 + $0x488] sm:$0xf0]  ;;  %v9455_v53 = vld [vmem:[%s12384_s1 + $0x510] sm:$0xf]  ;;  %v11292_v31 = vld [vmem:[%s12384_s1 + $0x518] sm:$0xf0] }
 0x1d1   : > { %3869 = vmatmul.bf16.vlgmr.msra.gmra.mxu2 %v12568_v35  ;;  %v9384_v8 = vor.u32 %v11274_v1, %v9383_v62  ;;  %v11300_v62 = vld [vmem:[%s12384_s1 + $0x55c] sm:$0xf]  ;;  %v9427_v1 = vld [vmem:[%s12384_s1 + $0x4d0] sm:$0xf]  ;;  %v9456_v2 = vor.u32 %v11292_v31, %v9455_v53  ;;  %v9662_v31 = vld [vmem:[%s12384_s1 + $0x5b8] sm:$0xf] }
 0x1d2   : > { %3921 = vmatmul.bf16.vlgmr.msrb.gmra.mxu1 %v12568_v35  ;;  %3930 = vmatpush.bf16.msrb.mxu2 %v8921_v11  ;;  %v9428_v42 = vor.u32 %v11284_v4, %v9427_v1  ;;  %v11272_v53 = vld [vmem:[%s12384_s1 + $0x478] sm:$0xf0]  ;;  %v9367_v4 = vld [vmem:[%s12384_s1 + $0x458] sm:$0xf]  ;;  %v9820_v3 = vld [vmem:[%s12384_s1 + $0x6fc] sm:$0xf0] }
 0x1d3   : > { %4582 = vmatpush.bf16.msra.mxu1 %v9444_v6  ;;  %4564 = vmatmul.bf16.vlgmr.msra.gmra.mxu0 %v12519_v18  ;;  %v9487_v6 = vld [vmem:[%s12384_s1 + $0x548] sm:$0xf] }
 0x1d4   : > { %4621 = vmatpush.bf16.msrb.mxu0 %v9352_v7  ;;  %4640 = vmatpush.bf16.msrb.mxu3 %v9376_v13  ;;  %v11299_v7 = vld [vmem:[%s12384_s1 + $0x550] sm:$0xf0] }
 0x1d5   : > { %v9488_v11 = vor.u32 %v11299_v7, %v9487_v6  ;;  %v11271_v13 = vld [vmem:[%s12384_s1 + $0x470] sm:$0xf0]  ;;  %v9710_v6 = vld [vmem:[%s12384_s1 + $0x618] sm:$0xf]  ;;  %v11325_v7 = vld [vmem:[%s12384_s1 + $0x620] sm:$0xf0] }
 0x1d6   : > { %3931 = vmatpush.bf16.msrb.mxu2 %v8909_v36  ;;  %v9372_v29 = vor.u32 %v11271_v13, %v9371_v63  ;;  %v11268_v36 = vld [vmem:[%s12384_s1 + $0x458] sm:$0xf0]  ;;  %v9711_v63 = vor.u32 %v11325_v7, %v9710_v6  ;;  %v9481_v13 = vld [vmem:[%s12384_s1 + $0x54c] sm:$0xf0]  ;;  %v11269_v6 = vld [vmem:[%s12384_s1 + $0x460] sm:$0xf0] }
 0x1d7   : > { %4583 = vmatpush.bf16.msra.mxu1 %v9432_v26  ;;  %v9475_v26 = vld [vmem:[%s12384_s1 + $0x530] sm:$0xf]  ;;  %v9650_v7 = vld [vmem:[%s12384_s1 + $0x5a0] sm:$0xf] }
 0x1d8   : > { %4622 = vmatpush.bf16.msrb.mxu0 %v9340_v19  ;;  %4641 = vmatpush.bf16.msrb.mxu3 %v9364_v30  ;;  %v11296_v19 = vld [vmem:[%s12384_s1 + $0x538] sm:$0xf0]  ;;  %v9265_v30 = vld [vmem:[%s12384_s1 + $0x39c] sm:$0xf0] }
 0x1d9   : > { %v9476_v27 = vor.u32 %v11296_v19, %v9475_v26  ;;  %v9268_v44 = vor.u32 %v11243_v24, %v9265_v30  ;;  %v9698_v26 = vld [vmem:[%s12384_s1 + $0x600] sm:$0xf]  ;;  %v11322_v19 = vld [vmem:[%s12384_s1 + $0x608] sm:$0xf0]  ;;  %v9469_v24 = vld [vmem:[%s12384_s1 + $0x534] sm:$0xf0] }
 0x1da   : > { %3932 = vmatpush.bf16.msrb.mxu2 %v8897_v40  ;;  %v9360_v40 = vor.u32 %v11268_v36, %v9359_v23  ;;  %v9699_v23 = vor.u32 %v11322_v19, %v9698_v26  ;;  %v11294_v36 = vld [vmem:[%s12384_s1 + $0x52c] sm:$0xf]  ;;  %v9181_v26 = vld [vmem:[%s12384_s1 + $0x2f4] sm:$0xf0]  ;;  %v9368_v19 = vor.u32 %v11269_v6, %v9367_v4 }
 0x1db   : > { %4584 = vmatpush.bf16.msra.mxu1 %v9420_v22  ;;  %4642 = vmatmul.bf16.vlgmr.msrb.gmra.mxu3 %v12604_v33  ;;  %v11306_v22 = vld [vmem:[%s12384_s1 + $0x58c] sm:$0xf] }
 0x1dc   : > { %4623 = vmatpush.bf16.msrb.mxu0 %v9328_v25  ;;  %4701 = vmatpush.bf16.msra.mxu3 %v9524_v37  ;;  %v9517_v25 = vld [vmem:[%s12384_s1 + $0x594] sm:$0xf0]  ;;  %v9480_v37 = vor.u32 %v11298_v21, %v9479_v60  ;;  %v11234_v21 = vld [vmem:[%s12384_s1 + $0x34c] sm:$0xf] }
 0x1dd   : > { %v11278_v30 = vld [vmem:[%s12384_s1 + $0x4a8] sm:$0xf0] }
 0x1de   : > { %3933 = vmatpush.bf16.msrb.mxu2 %v8885_v52  ;;  %v11328_v52 = vld [vmem:[%s12384_s1 + $0x638] sm:$0xf0] }
 0x1df   : > { %4585 = vmatpush.bf16.msra.mxu1 %v9408_v45  ;;  %v9520_v45 = vor.u32 %v11306_v22, %v9517_v25  ;;  %v9723_v58 = vor.u32 %v11328_v52, %v9722_v12  ;;  %v9472_v25 = vor.u32 %v11294_v36, %v9469_v24  ;;  %v9379_v12 = vld [vmem:[%s12384_s1 + $0x470] sm:$0xf]  ;;  %v9986_v24 = vld [vmem:[%s12384_s1 + $0x840] sm:$0xf] }
 0x1e0   : > { %4624 = vmatpush.bf16.msrb.mxu0 %v9316_v17  ;;  %4702 = vmatpush.bf16.msra.mxu3 %v9512_v49  ;;  %v9452_v17 = vor.u32 %v11290_v39, %v9451_v34  ;;  %v9439_v49 = vld [vmem:[%s12384_s1 + $0x4e8] sm:$0xf]  ;;  %v11231_v34 = vld [vmem:[%s12384_s1 + $0x334] sm:$0xf]  ;;  %v9380_v1 = vor.u32 %v11272_v53, %v9379_v12 }
 0x1e1   : > { %3934 = vmatmul.bf16.vlgmr.msrb.gmra.mxu2 %v12604_v33  ;;  %v9440_v57 = vor.u32 %v11287_v50, %v9439_v49  ;;  %v9205_v49 = vld [vmem:[%s12384_s1 + $0x324] sm:$0xf0]  ;;  %v11227_v53 = vld [vmem:[%s12384_s1 + $0x310] sm:$0xf0] }
 0x1e2   : > { %4597 = vmatpush.bf16.msra.mxu2 %v9516_v54  ;;  %v9508_v54 = vor.u32 %v11303_v48, %v9505_v5  ;;  %v11228_v5 = vld [vmem:[%s12384_s1 + $0x31c] sm:$0xf]  ;;  %v9199_v12 = vld [vmem:[%s12384_s1 + $0x308] sm:$0xf] }
 0x1e3   : > { %4586 = vmatpush.bf16.msra.mxu1 %v9396_v55  ;;  %v11240_v55 = vld [vmem:[%s12384_s1 + $0x37c] sm:$0xf]  ;;  %v9200_v4 = vor.u32 %v11227_v53, %v9199_v12  ;;  %v11333_v53 = vld [vmem:[%s12384_s1 + $0x664] sm:$0xf] }
 0x1e4   : > { %4625 = vmatpush.bf16.msrb.mxu0 %v9304_v56  ;;  %4703 = vmatpush.bf16.msra.mxu3 %v9500_v0  ;;  %v9253_v56 = vld [vmem:[%s12384_s1 + $0x384] sm:$0xf0] }
 0x1e5   : > { %v9493_v0 = vld [vmem:[%s12384_s1 + $0x564] sm:$0xf0] }
 0x1e6   : > { %4598 = vmatpush.bf16.msra.mxu2 %v9504_v61  ;;  %v9256_v61 = vor.u32 %v11240_v55, %v9253_v56  ;;  %v9208_v55 = vor.u32 %v11228_v5, %v9205_v49  ;;  %v9247_v56 = vld [vmem:[%s12384_s1 + $0x368] sm:$0xf]  ;;  %v11263_v5 = vld [vmem:[%s12384_s1 + $0x430] sm:$0xf0]  ;;  %v12844_v49 = vld [vmem:[%s937_s6] sm:$0x7] }
 0x1e7   : > { %4587 = vmatpush.bf16.msra.mxu1 %v9384_v8  ;;  %v9496_v8 = vor.u32 %v11300_v62, %v9493_v0  ;;  %v9193_v62 = vld [vmem:[%s12384_s1 + $0x30c] sm:$0xf0]  ;;  %s11577_s6 = smul.u32 312, %s13600_s28 }
 0x1e8   : > { %4626 = vmatpush.bf16.msrb.mxu0 %v9292_v10  ;;  %4704 = vmatpush.bf16.msra.mxu3 %v9488_v11  ;;  %v11237_v10 = vld [vmem:[%s12384_s1 + $0x364] sm:$0xf] }
 0x1e9   : > { %v11297_v11 = vld [vmem:[%s12384_s1 + $0x544] sm:$0xf]  ;;  %s13428_s2 = scalar_lea.vmem %s13568_s8, %s11577_s6  ;;  %s13489_s6 = sshll.u32 %s13600_s28, 4 }
 0x1ea   : > { %4599 = vmatpush.bf16.msra.mxu2 %v9492_v20  ;;  %v9244_v20 = vor.u32 %v11237_v10, %v9241_v46  ;;  %v9484_v60 = vor.u32 %v11297_v11, %v9481_v13  ;;  %v9235_v10 = vld [vmem:[%s12384_s1 + $0x350] sm:$0xf]  ;;  %v11236_v46 = vld [vmem:[%s12384_s1 + $0x358] sm:$0xf0]  ;;  %v11397_v11 = vld [vmem:[%s12384_s1 + $0x860] sm:$0xf0] }
 0x1eb   : > { %4588 = vmatpush.bf16.msra.mxu1 %v9372_v29  ;;  %v9229_v29 = vld [vmem:[%s12384_s1 + $0x354] sm:$0xf0]  ;;  %v11354_v13 = vld [vmem:[%s12384_s1 + $0x70c] sm:$0xf] }
 0x1ec   : > { %4627 = vmatpush.bf16.msrb.mxu0 %v9280_v9  ;;  %4705 = vmatpush.bf16.msra.mxu3 %v9476_v27  ;;  %v9416_v9 = vor.u32 %v11281_v15, %v9415_v14  ;;  %v9403_v27 = vld [vmem:[%s12384_s1 + $0x4a0] sm:$0xf]  ;;  %v9232_v22 = vor.u32 %v11234_v21, %v9229_v29  ;;  %v9832_v14 = vld [vmem:[%s12384_s1 + $0x714] sm:$0xf0]  ;;  %v11222_v15 = vld [vmem:[%s12384_s1 + $0x2ec] sm:$0xf] }
 0x1ed   : > { %v9404_v39 = vor.u32 %v11278_v30, %v9403_v27  ;;  %v9223_v29 = vld [vmem:[%s12384_s1 + $0x338] sm:$0xf]  ;;  %v9184_v36 = vor.u32 %v11222_v15, %v9181_v26  ;;  %v11394_v27 = vld [vmem:[%s12384_s1 + $0x848] sm:$0xf0]  ;;  %v11351_v30 = vld [vmem:[%s12384_s1 + $0x6f4] sm:$0xf] }
 0x1ee   : > { %4600 = vmatpush.bf16.msra.mxu2 %v9480_v37  ;;  %v9217_v37 = vld [vmem:[%s12384_s1 + $0x33c] sm:$0xf0]  ;;  %v11257_v15 = vld [vmem:[%s12384_s1 + $0x400] sm:$0xf0] }
 0x1ef   : > { %4589 = vmatpush.bf16.msra.mxu1 %v9360_v40  ;;  %v9457_v40 = vld [vmem:[%s12384_s1 + $0x51c] sm:$0xf0] }
 0x1f0   : > { %4628 = vmatpush.bf16.msrb.mxu0 %v9268_v44  ;;  %4706 = vmatpush.bf16.msra.mxu3 %v9464_v43  ;;  %v9391_v44 = vld [vmem:[%s12384_s1 + $0x488] sm:$0xf]  ;;  %v11316_v43 = vld [vmem:[%s12384_s1 + $0x5d8] sm:$0xf0]  ;;  %v9460_v48 = vor.u32 %v11291_v38, %v9457_v40  ;;  %v9211_v38 = vld [vmem:[%s12384_s1 + $0x320] sm:$0xf]  ;;  %v9823_v40 = vor.u32 %v11351_v30, %v9820_v3 }
 0x1f1   : > { %v9675_v50 = vor.u32 %v11316_v43, %v9674_v59  ;;  %v9974_v59 = vld [vmem:[%s12384_s1 + $0x828] sm:$0xf]  ;;  %v11391_v43 = vld [vmem:[%s12384_s1 + $0x830] sm:$0xf0] }
 0x1f2   : > { %4590 = vmatmul.bf16.vlgmr.msra.gmra.mxu1 %v12604_v33  ;;  %4601 = vmatpush.bf16.msra.mxu2 %v9468_v51  ;;  %v9392_v51 = vor.u32 %v11275_v41, %v9391_v44  ;;  %v11230_v41 = vld [vmem:[%s12384_s1 + $0x328] sm:$0xf0]  ;;  %v9830_v30 = vld [vmem:[%s12384_s1 + $0x708] sm:$0xf]  ;;  %v11355_v3 = vld [vmem:[%s12384_s1 + $0x710] sm:$0xf0] }
 0x1f3   : > { %4649 = vmatpush.bf16.msrb.mxu1 %v9520_v45  ;;  %4629 = vmatmul.bf16.vlgmr.msrb.gmra.mxu0 %v12568_v35  ;;  %v9220_v45 = vor.u32 %v11231_v34, %v9217_v37  ;;  %v9355_v34 = vld [vmem:[%s12384_s1 + $0x440] sm:$0xf]  ;;  %v11266_v37 = vld [vmem:[%s12384_s1 + $0x448] sm:$0xf0] }
 0x1f4   : > { %4686 = vmatpush.bf16.msra.mxu0 %v9452_v17  ;;  %5319 = vmatpush.bf16.msrb.mxu3 %v9735_v47  ;;  %v9259_v17 = vld [vmem:[%s12384_s1 + $0x380] sm:$0xf]  ;;  %v11242_v47 = vld [vmem:[%s12384_s1 + $0x388] sm:$0xf0] }
 0x1f5   : > { %9527 = vmatmul.msk.bf16.vlgmr.msra.gmra.mxu3 %vm3792_vm2, %v12637_v16  ;;  %v9260_v52 = vor.u32 %v11242_v47, %v9259_v17  ;;  %v11348_v17 = vld [vmem:[%s12384_s1 + $0x6dc] sm:$0xf]  ;;  %v9808_v47 = vld [vmem:[%s12384_s1 + $0x6e4] sm:$0xf0] }
 0x1f6   : > { %4602 = vmatpush.bf16.msra.mxu2 %v9456_v2 }
 0x1f7   : > { %4650 = vmatpush.bf16.msrb.mxu1 %v9508_v54  ;;  %v11313_v54 = vld [vmem:[%s12384_s1 + $0x5c0] sm:$0xf0] }
 0x1f8   : > { %4687 = vmatpush.bf16.msra.mxu0 %v9440_v57  ;;  %5320 = vmatpush.bf16.msrb.mxu3 %v9723_v58  ;;  %v11239_v57 = vld [vmem:[%s12384_s1 + $0x370] sm:$0xf0]  ;;  %v11225_v58 = vld [vmem:[%s12384_s1 + $0x304] sm:$0xf]  ;;  %v9663_v2 = vor.u32 %v11313_v54, %v9662_v31  ;;  %v9962_v31 = vld [vmem:[%s12384_s1 + $0x810] sm:$0xf] }
 0x1f9   : > { %9525 = vmatmul.msk.bf16.vlgmr.msra.gmra.mxu2 %vm3792_vm2, %v12637_v16  ;;  %v11388_v54 = vld [vmem:[%s12384_s1 + $0x818] sm:$0xf0] }
 0x1fa   : > { %4608 = vmatpush.bf16.msrb.mxu2 %v9256_v61  ;;  %v9248_v61 = vor.u32 %v11239_v57, %v9247_v56  ;;  %v11345_v56 = vld [vmem:[%s12384_s1 + $0x6c4] sm:$0xf]  ;;  %v9796_v57 = vld [vmem:[%s12384_s1 + $0x6cc] sm:$0xf0]  ;;  %v9963_v6 = vor.u32 %v11388_v54, %v9962_v31 }
 0x1fb   : > { %4651 = vmatpush.bf16.msrb.mxu1 %v9496_v8  ;;  %v11310_v8 = vld [vmem:[%s12384_s1 + $0x5a8] sm:$0xf0]  ;;  %v9748_v31 = vld [vmem:[%s12384_s1 + $0x66c] sm:$0xf0] }
 0x1fc   : > { %4688 = vmatpush.bf16.msra.mxu0 %v9428_v42  ;;  %5321 = vmatpush.bf16.msrb.mxu3 %v9711_v63  ;;  %v9196_v42 = vor.u32 %v11225_v58, %v9193_v62  ;;  %v9998_v63 = vld [vmem:[%s12384_s1 + $0x858] sm:$0xf]  ;;  %v12853_v58 = vperm.slane %v12844_v49, 0 }
 0x1fd   : > { %v12804_v0 = vpop.f32.mrf.mxu3  ;;  %v9999_v21 = vor.u32 %v11397_v11, %v9998_v63  ;;  %v11342_v63 = vld [vmem:[%s12384_s1 + $0x6ac] sm:$0xf]  ;;  %v9784_v11 = vld [vmem:[%s12384_s1 + $0x6b4] sm:$0xf0] }
 0x1fe   : > { %4609 = vmatpush.bf16.msrb.mxu2 %v9244_v20  ;;  %v9651_v20 = vor.u32 %v11310_v8, %v9650_v7  ;;  %v9187_v7 = vld [vmem:[%s12384_s1 + $0x2f0] sm:$0xf]  ;;  %v11224_v8 = vld [vmem:[%s12384_s1 + $0x2f8] sm:$0xf0] }
 0x1ff   : > { %4652 = vmatpush.bf16.msrb.mxu1 %v9484_v60  ;;  %v9236_v60 = vor.u32 %v11236_v46, %v9235_v10  ;;  %v9950_v10 = vld [vmem:[%s12384_s1 + $0x7f8] sm:$0xf]  ;;  %v11385_v46 = vld [vmem:[%s12384_s1 + $0x800] sm:$0xf0] }
 0x200   : > { %4689 = vmatpush.bf16.msra.mxu0 %v9416_v9  ;;  %5322 = vmatpush.bf16.msrb.mxu3 %v9699_v23  ;;  %v11233_v9 = vld [vmem:[%s12384_s1 + $0x340] sm:$0xf0]  ;;  %v9835_v23 = vor.u32 %v11354_v13, %v9832_v14  ;;  %v3806_v13 = vadd.f32 %v12804_v0, %v12853_v58  ;;  %v9319_v14 = vld [vmem:[%s12384_s1 + $0x3f8] sm:$0xf]  ;;  %v9787_v0 = vor.u32 %v11342_v63, %v9784_v11  ;;  %v9794_v11 = vld [vmem:[%s12384_s1 + $0x6c0] sm:$0xf] }
 0x202   : > { %4610 = vmatpush.bf16.msrb.mxu2 %v9232_v22  ;;  %v9169_v22 = vld [vmem:[%s12384_s1 + $0x2dc] sm:$0xf0] }
 0x203   : > { %4653 = vmatpush.bf16.msrb.mxu1 %v9472_v25  ;;  %v9172_v44 = vor.u32 %v11219_v32, %v9169_v22  ;;  %v11330_v32 = vld [vmem:[%s12384_s1 + $0x64c] sm:$0xf] }
 0x204   : > { %4690 = vmatpush.bf16.msra.mxu0 %v9404_v39  ;;  %5323 = vmatpush.bf16.msrb.mxu3 %v9687_v28  ;;  %v9224_v39 = vor.u32 %v11233_v9, %v9223_v29  ;;  %v9987_v28 = vor.u32 %v11394_v27, %v9986_v24  ;;  %v9938_v29 = vld [vmem:[%s12384_s1 + $0x7e0] sm:$0xf]  ;;  %v9320_v27 = vor.u32 %v11257_v15, %v9319_v14  ;;  %v11321_v14 = vld [vmem:[%s12384_s1 + $0x604] sm:$0xf] }
 0x205   : > { %v3807_v25 = vpop.f32.mrf.mxu3  ;;  %v9772_v24 = vld [vmem:[%s12384_s1 + $0x69c] sm:$0xf0] }
 0x206   : > { %4611 = vmatpush.bf16.msrb.mxu2 %v9220_v45  ;;  %v9356_v45 = vor.u32 %v11266_v37, %v9355_v34  ;;  %v9736_v25 = vld [vmem:[%s12384_s1 + $0x654] sm:$0xf0]  ;;  %v9307_v34 = vld [vmem:[%s12384_s1 + $0x3e0] sm:$0xf]  ;;  %v11254_v37 = vld [vmem:[%s12384_s1 + $0x3e8] sm:$0xf0] }
 0x207   : > { %4654 = vmatpush.bf16.msrb.mxu1 %v9460_v48  ;;  %v9343_v48 = vld [vmem:[%s12384_s1 + $0x428] sm:$0xf] }
 0x208   : > { %4691 = vmatpush.bf16.msra.mxu0 %v9392_v51  ;;  %5324 = vmatpush.bf16.msrb.mxu3 %v9675_v50  ;;  %v9212_v51 = vor.u32 %v11230_v41, %v9211_v38  ;;  %v9975_v50 = vor.u32 %v11391_v43, %v9974_v59  ;;  %v9760_v41 = vld [vmem:[%s12384_s1 + $0x684] sm:$0xf0]  ;;  %v9739_v59 = vor.u32 %v11330_v32, %v9736_v25  ;;  %v9688_v25 = vld [vmem:[%s12384_s1 + $0x5f4] sm:$0xf0] }
 0x209   : > { %v9308_v43 = vor.u32 %v11254_v37, %v9307_v34  ;;  %v9910_v34 = vld [vmem:[%s12384_s1 + $0x7a0] sm:$0xf]  ;;  %v11374_v37 = vld [vmem:[%s12384_s1 + $0x7a8] sm:$0xf0] }
 0x20a   : > { %4612 = vmatpush.bf16.msrb.mxu2 %v9208_v55  ;;  %9526 = vmatmul.msk.bf16.vlgmr.msrb.gmra.mxu1 %vm3792_vm2, %v12637_v16  ;;  %v9344_v55 = vor.u32 %v11263_v5, %v9343_v48  ;;  %v9724_v48 = vld [vmem:[%s12384_s1 + $0x63c] sm:$0xf0]  ;;  %v9295_v5 = vld [vmem:[%s12384_s1 + $0x3c8] sm:$0xf] }
 0x20b   : > { %4660 = vmatpush.bf16.msra.mxu1 %v9260_v52  ;;  %v9811_v52 = vor.u32 %v11348_v17, %v9808_v47  ;;  %v11352_v17 = vld [vmem:[%s12384_s1 + $0x6f8] sm:$0xf0]  ;;  %v11327_v47 = vld [vmem:[%s12384_s1 + $0x634] sm:$0xf] }
 0x20c   : > { %4692 = vmatpush.bf16.msra.mxu0 %v9380_v1  ;;  %5325 = vmatpush.bf16.msrb.mxu3 %v9663_v2  ;;  %v9331_v1 = vld [vmem:[%s12384_s1 + $0x410] sm:$0xf]  ;;  %v11260_v2 = vld [vmem:[%s12384_s1 + $0x418] sm:$0xf0]  ;;  %v9727_v54 = vor.u32 %v11327_v47, %v9724_v48  ;;  %v9676_v47 = vld [vmem:[%s12384_s1 + $0x5dc] sm:$0xf0] }
 0x20d   : > { %v12855_v62 = vpop.f32.mrf.mxu3  ;;  %v9898_v48 = vld [vmem:[%s12384_s1 + $0x788] sm:$0xf] }
 0x20e   : > { %4613 = vmatpush.bf16.msrb.mxu2 %v9196_v42  ;;  %v9332_v42 = vor.u32 %v11260_v2, %v9331_v1  ;;  %v11324_v1 = vld [vmem:[%s12384_s1 + $0x61c] sm:$0xf] }
 0x20f   : > { %4661 = vmatpush.bf16.msra.mxu1 %v9248_v61  ;;  %v9799_v61 = vor.u32 %v11345_v56, %v9796_v57  ;;  %v9806_v56 = vld [vmem:[%s12384_s1 + $0x6d8] sm:$0xf]  ;;  %v11349_v57 = vld [vmem:[%s12384_s1 + $0x6e0] sm:$0xf0] }
 0x210   : > { %4693 = vmatpush.bf16.msra.mxu0 %v9368_v19  ;;  %5326 = vmatpush.bf16.msrb.mxu3 %v9651_v20  ;;  %v9188_v19 = vor.u32 %v11224_v8, %v9187_v7  ;;  %v9951_v20 = vor.u32 %v11385_v46, %v9950_v10  ;;  %v11380_v7 = vld [vmem:[%s12384_s1 + $0x7d8] sm:$0xf0]  ;;  %v9751_v10 = vor.u32 %v11333_v53, %v9748_v31  ;;  %v9902_v53 = vld [vmem:[%s12384_s1 + $0x798] sm:$0xf]  ;;  %v11373_v31 = vld [vmem:[%s12384_s1 + $0x7a0] sm:$0xf0] }
 0x211   : > { %v11248_v8 = vld [vmem:[%s12384_s1 + $0x3b8] sm:$0xf0]  ;;  %v9807_v46 = vor.u32 %v11349_v57, %v9806_v56  ;;  %v9758_v56 = vld [vmem:[%s12384_s1 + $0x678] sm:$0xf]  ;;  %v11337_v57 = vld [vmem:[%s12384_s1 + $0x680] sm:$0xf0] }
 0x212   : > { %4614 = vmatpush.bf16.msrb.mxu2 %v9184_v36  ;;  %v11339_v36 = vld [vmem:[%s12384_s1 + $0x694] sm:$0xf] }
 0x213   : > { %4662 = vmatpush.bf16.msra.mxu1 %v9236_v60  ;;  %4694 = vmatmul.bf16.vlgmr.msra.gmra.mxu0 %v12604_v33  ;;  %v9175_v60 = vld [vmem:[%s12384_s1 + $0x2d8] sm:$0xf]  ;;  %v9775_v38 = vor.u32 %v11339_v36, %v9772_v24 }
 0x214   : > { %5360 = vmatpush.bf16.msrb.mxu0 %v9999_v21  ;;  %5384 = vmatpush.bf16.msra.mxu3 %v9835_v23  ;;  %v11221_v21 = vld [vmem:[%s12384_s1 + $0x2e0] sm:$0xf0]  ;;  %v11382_v23 = vld [vmem:[%s12384_s1 + $0x7e8] sm:$0xf0] }
 0x215   : > { %5327 = vmatmul.bf16.vlgmr.msrb.gmra.mxu3 %v12519_v18  ;;  %v3818_v26 = vpop.f32.mrf.mxu0  ;;  %v3859_v22 = vpop.f32.mrf.mxu3 }
 0x216   : > { %4615 = vmatpush.bf16.msrb.mxu2 %v9172_v44  ;;  %v12873_v9 = vadd.f32 %v3818_v26, %v3806_v13  ;;  %v11336_v44 = vld [vmem:[%s12384_s1 + $0x67c] sm:$0xf]  ;;  %v11346_v13 = vld [vmem:[%s12384_s1 + $0x6c8] sm:$0xf0]  ;;  %v9700_v26 = vld [vmem:[%s12384_s1 + $0x60c] sm:$0xf0] }
 0x217   : > { %4663 = vmatpush.bf16.msra.mxu1 %v9224_v39  ;;  %v9176_v39 = vor.u32 %v11221_v21, %v9175_v60  ;;  %v9763_v12 = vor.u32 %v11336_v44, %v9760_v41  ;;  %v9271_v60 = vld [vmem:[%s12384_s1 + $0x398] sm:$0xf]  ;;  %v11245_v21 = vld [vmem:[%s12384_s1 + $0x3a0] sm:$0xf0]  ;;  %v9703_v36 = vor.u32 %v11321_v14, %v9700_v26  ;;  %v9911_v41 = vor.u32 %v11374_v37, %v9910_v34  ;;  %v9652_v14 = vld [vmem:[%s12384_s1 + $0x5ac] sm:$0xf0] }
 0x218   : > { %5361 = vmatpush.bf16.msrb.mxu0 %v9987_v28  ;;  %5385 = vmatpush.bf16.msra.mxu3 %v9823_v40  ;;  %v9939_v28 = vor.u32 %v11382_v23, %v9938_v29  ;;  %v9831_v40 = vor.u32 %v11355_v3, %v9830_v30  ;;  %v9795_v29 = vor.u32 %v11346_v13, %v9794_v11  ;;  %v11379_v23 = vld [vmem:[%s12384_s1 + $0x7d0] sm:$0xf0]  ;;  %v11318_v3 = vld [vmem:[%s12384_s1 + $0x5ec] sm:$0xf]  ;;  %v11309_v13 = vld [vmem:[%s12384_s1 + $0x5a4] sm:$0xf] }
 0x219   : > { %4616 = vmatmul.bf16.vlgmr.msrb.gmra.mxu2 %v12519_v18  ;;  %v11343_v30 = vld [vmem:[%s12384_s1 + $0x6b0] sm:$0xf0]  ;;  %v9272_v22 = vor.u32 %v11245_v21, %v9271_v60  ;;  %v9691_v44 = vor.u32 %v11318_v3, %v9688_v25  ;;  %v11334_v11 = vld [vmem:[%s12384_s1 + $0x668] sm:$0xf0]  ;;  %v9874_v26 = vld [vmem:[%s12384_s1 + $0x758] sm:$0xf] }
 0x21a   : > { %4673 = vmatpush.bf16.msra.mxu2 %v9356_v45  ;;  %v9818_v45 = vld [vmem:[%s12384_s1 + $0x6f0] sm:$0xf]  ;;  %v9862_v25 = vld [vmem:[%s12384_s1 + $0x740] sm:$0xf]  ;;  %v11362_v34 = vld [vmem:[%s12384_s1 + $0x748] sm:$0xf0] }
 0x21b   : > { %4664 = vmatpush.bf16.msra.mxu1 %v9212_v51  ;;  %v11251_v51 = vld [vmem:[%s12384_s1 + $0x3d0] sm:$0xf0] }
 0x21c   : > { %5362 = vmatpush.bf16.msrb.mxu0 %v9975_v50  ;;  %5386 = vmatpush.bf16.msra.mxu3 %v9811_v52  ;;  %v9819_v52 = vor.u32 %v11352_v17, %v9818_v45  ;;  %v11315_v45 = vld [vmem:[%s12384_s1 + $0x5d4] sm:$0xf] }
 0x21d   : > { %v3820_v50 = vpop.f32.mrf.mxu0  ;;  %v12900_v2 = vpop.f32.mrf.mxu3  ;;  %v11375_v37 = vld [vmem:[%s12384_s1 + $0x7b4] sm:$0xf] }
 0x21e   : > { %4674 = vmatpush.bf16.msra.mxu2 %v9344_v55  ;;  %v9296_v55 = vor.u32 %v11251_v51, %v9295_v5  ;;  %v11371_v5 = vld [vmem:[%s12384_s1 + $0x790] sm:$0xf0] }
 0x21f   : > { %4665 = vmatpush.bf16.msra.mxu1 %v9200_v4  ;;  %v9712_v4 = vld [vmem:[%s12384_s1 + $0x624] sm:$0xf0] }
 0x220   : > { %5363 = vmatpush.bf16.msrb.mxu0 %v9963_v6  ;;  %5387 = vmatpush.bf16.msra.mxu3 %v9799_v61  ;;  %v9934_v6 = vld [vmem:[%s12384_s1 + $0x7d0] sm:$0xf] }
 0x221   : > { %v9283_v61 = vld [vmem:[%s12384_s1 + $0x3b0] sm:$0xf]  ;;  %v9935_v63 = vor.u32 %v11380_v7, %v9934_v6  ;;  %v11368_v6 = vld [vmem:[%s12384_s1 + $0x778] sm:$0xf0]  ;;  %v9903_v7 = vor.u32 %v11373_v31, %v9902_v53  ;;  %v9904_v31 = vld [vmem:[%s12384_s1 + $0x7a4] sm:$0xf0] }
 0x222   : > { %4675 = vmatpush.bf16.msra.mxu2 %v9332_v42  ;;  %v9715_v42 = vor.u32 %v11324_v1, %v9712_v4  ;;  %v9284_v15 = vor.u32 %v11248_v8, %v9283_v61  ;;  %v9664_v1 = vld [vmem:[%s12384_s1 + $0x5c4] sm:$0xf0]  ;;  %v9886_v4 = vld [vmem:[%s12384_s1 + $0x770] sm:$0xf]  ;;  %v9759_v61 = vor.u32 %v11337_v57, %v9758_v56  ;;  %v9890_v8 = vld [vmem:[%s12384_s1 + $0x780] sm:$0xf] }
 0x223   : > { %4666 = vmatpush.bf16.msra.mxu1 %v9188_v19  ;;  %v9922_v19 = vld [vmem:[%s12384_s1 + $0x7b8] sm:$0xf]  ;;  %v11361_v57 = vld [vmem:[%s12384_s1 + $0x740] sm:$0xf0] }
 0x224   : > { %5364 = vmatpush.bf16.msrb.mxu0 %v9951_v20  ;;  %5388 = vmatpush.bf16.msra.mxu3 %v9787_v0  ;;  %v11377_v20 = vld [vmem:[%s12384_s1 + $0x7c0] sm:$0xf0]  ;;  %v9926_v0 = vld [vmem:[%s12384_s1 + $0x7c8] sm:$0xf]  ;;  %v9854_v56 = vld [vmem:[%s12384_s1 + $0x738] sm:$0xf] }
 0x225   : > { %v9923_v24 = vor.u32 %v11377_v20, %v9922_v19  ;;  %v3911_v32 = vpop.f32.mrf.mxu3  ;;  %v11365_v19 = vld [vmem:[%s12384_s1 + $0x760] sm:$0xf0]  ;;  %v11378_v20 = vld [vmem:[%s12384_s1 + $0x7cc] sm:$0xf] }
 0x226   : > { %4676 = vmatpush.bf16.msra.mxu2 %v9320_v27  ;;  %v9782_v27 = vld [vmem:[%s12384_s1 + $0x6a8] sm:$0xf]  ;;  %v9875_v3 = vor.u32 %v11365_v19, %v9874_v26  ;;  %v11366_v19 = vld [vmem:[%s12384_s1 + $0x76c] sm:$0xf] }
 0x227   : > { %4667 = vmatpush.bf16.msra.mxu1 %v9176_v39  ;;  %v9927_v39 = vor.u32 %v11379_v23, %v9926_v0  ;;  %v9838_v0 = vld [vmem:[%s12384_s1 + $0x710] sm:$0xf]  ;;  %v11356_v23 = vld [vmem:[%s12384_s1 + $0x718] sm:$0xf0] }
 0x228   : > { %5365 = vmatpush.bf16.msrb.mxu0 %v9939_v28  ;;  %5389 = vmatpush.bf16.msra.mxu3 %v9775_v38  ;;  %v9783_v28 = vor.u32 %v11343_v30, %v9782_v27  ;;  %v9914_v38 = vld [vmem:[%s12384_s1 + $0x7b0] sm:$0xf]  ;;  %v11367_v27 = vld [vmem:[%s12384_s1 + $0x770] sm:$0xf0]  ;;  %v9655_v30 = vor.u32 %v11309_v13, %v9652_v14  ;;  %v11396_v13 = vld [vmem:[%s12384_s1 + $0x85c] sm:$0xf] }
 0x229   : > { %v10000_v14 = vld [vmem:[%s12384_s1 + $0x864] sm:$0xf0] }
 0x22a   : > { %4677 = vmatpush.bf16.msra.mxu2 %v9308_v43  ;;  %4668 = vmatmul.bf16.vlgmr.msra.gmra.mxu1 %v12519_v18  ;;  %v11340_v43 = vld [vmem:[%s12384_s1 + $0x698] sm:$0xf0] }
 0x22b   : > { %5332 = vmatpush.bf16.msrb.mxu1 %v9831_v40  ;;  %10008 = vmatmul.msk.bf16.vlgmr.msrb.gmra.mxu0 %vm3792_vm2, %v12637_v16  ;;  %v11376_v40 = vld [vmem:[%s12384_s1 + $0x7b8] sm:$0xf0] }
 0x22c   : > { %5371 = vmatpush.bf16.msra.mxu0 %v9739_v59  ;;  %5390 = vmatpush.bf16.msra.mxu3 %v9763_v12  ;;  %v9770_v59 = vld [vmem:[%s12384_s1 + $0x690] sm:$0xf]  ;;  %v9915_v12 = vor.u32 %v11376_v40, %v9914_v38  ;;  %v9826_v38 = vld [vmem:[%s12384_s1 + $0x6f8] sm:$0xf]  ;;  %v11353_v40 = vld [vmem:[%s12384_s1 + $0x700] sm:$0xf0] }
 0x22e   : > { %4678 = vmatpush.bf16.msra.mxu2 %v9296_v55  ;;  %v9899_v55 = vor.u32 %v11371_v5, %v9898_v48  ;;  %v11359_v48 = vld [vmem:[%s12384_s1 + $0x730] sm:$0xf0]  ;;  %v11372_v5 = vld [vmem:[%s12384_s1 + $0x79c] sm:$0xf] }
 0x22f   : > { %5333 = vmatpush.bf16.msrb.mxu1 %v9819_v52  ;;  %v3831_v17 = vpop.f32.mrf.mxu1  ;;  %v12935_v50 = vpop.f32.mrf.mxu0  ;;  %v9771_v52 = vor.u32 %v11340_v43, %v9770_v59  ;;  %v9863_v59 = vor.u32 %v11362_v34, %v9862_v25  ;;  %v11363_v25 = vld [vmem:[%s12384_s1 + $0x754] sm:$0xf]  ;;  %v9868_v34 = vld [vmem:[%s12384_s1 + $0x75c] sm:$0xf0] }
 0x230   : > { %5372 = vmatpush.bf16.msra.mxu0 %v9727_v54  ;;  %5391 = vmatpush.bf16.msra.mxu3 %v9751_v10  ;;  %v12933_v51 = vadd.f32 %v3831_v17, %v12873_v9  ;;  %v9679_v54 = vor.u32 %v11315_v45, %v9676_v47  ;;  %v11312_v9 = vld [vmem:[%s12384_s1 + $0x5bc] sm:$0xf]  ;;  %v11370_v10 = vld [vmem:[%s12384_s1 + $0x788] sm:$0xf0]  ;;  %v9827_v17 = vor.u32 %v11353_v40, %v9826_v38  ;;  %v9850_v47 = vld [vmem:[%s12384_s1 + $0x728] sm:$0xf] }
 0x231   : > { %v9891_v21 = vor.u32 %v11370_v10, %v9890_v8  ;;  %v9855_v8 = vor.u32 %v11361_v57, %v9854_v56  ;;  %v9892_v10 = vld [vmem:[%s12384_s1 + $0x78c] sm:$0xf0]  ;;  %v11390_v40 = vld [vmem:[%s12384_s1 + $0x82c] sm:$0xf]  ;;  %v9964_v56 = vld [vmem:[%s12384_s1 + $0x81c] sm:$0xf0] }
 0x232   : > { %4679 = vmatpush.bf16.msra.mxu2 %v9284_v15 }
 0x233   : > { %5334 = vmatpush.bf16.msrb.mxu1 %v9807_v46  ;;  %5392 = vmatmul.bf16.vlgmr.msra.gmra.mxu3 %v12568_v35  ;;  %v9746_v46 = vld [vmem:[%s12384_s1 + $0x660] sm:$0xf] }
 0x234   : > { %5373 = vmatpush.bf16.msra.mxu0 %v9715_v42  ;;  %5449 = vmatpush.bf16.msrb.mxu3 %v9935_v63  ;;  %v9667_v42 = vor.u32 %v11312_v9, %v9664_v1  ;;  %v9887_v63 = vor.u32 %v11368_v6, %v9886_v4  ;;  %v9851_v9 = vor.u32 %v11359_v48, %v9850_v47  ;;  %v11360_v47 = vld [vmem:[%s12384_s1 + $0x73c] sm:$0xf] }
 0x235   : > { %v9907_v1 = vor.u32 %v11372_v5, %v9904_v31 }
 0x236   : > { %4680 = vmatpush.bf16.msra.mxu2 %v9272_v22  ;;  %v9839_v22 = vor.u32 %v11356_v23, %v9838_v0  ;;  %v9790_v0 = vld [vmem:[%s12384_s1 + $0x6b0] sm:$0xf]  ;;  %v11344_v23 = vld [vmem:[%s12384_s1 + $0x6b8] sm:$0xf0] }
 0x237   : > { %5335 = vmatpush.bf16.msrb.mxu1 %v9795_v29  ;;  %v3833_v15 = vpop.f32.mrf.mxu1  ;;  %v3885_v60 = vpop.f32.mrf.mxu0  ;;  %v9928_v29 = vld [vmem:[%s12384_s1 + $0x7d4] sm:$0xf0] }
 0x238   : > { %5374 = vmatpush.bf16.msra.mxu0 %v9703_v36  ;;  %5450 = vmatpush.bf16.msrb.mxu3 %v9923_v24  ;;  %v9747_v36 = vor.u32 %v11334_v11, %v9746_v46  ;;  %v9878_v24 = vld [vmem:[%s12384_s1 + $0x768] sm:$0xf]  ;;  %v9931_v32 = vor.u32 %v11378_v20, %v9928_v29  ;;  %v11358_v11 = vld [vmem:[%s12384_s1 + $0x728] sm:$0xf0]  ;;  %v9880_v29 = vld [vmem:[%s12384_s1 + $0x774] sm:$0xf0] }
 0x239   : > { %4681 = vmatmul.bf16.vlgmr.msra.gmra.mxu2 %v12568_v35  ;;  %v9802_v46 = vld [vmem:[%s12384_s1 + $0x6c8] sm:$0xf] }
 0x23a   : > { %5345 = vmatpush.bf16.msrb.mxu2 %v9927_v39  ;;  %v9879_v39 = vor.u32 %v11367_v27, %v9878_v24  ;;  %v13001_v24 = vperm.slane %v12844_v49, 2  ;;  %v11393_v27 = vld [vmem:[%s12384_s1 + $0x844] sm:$0xf] }
 0x23b   : > { %5336 = vmatpush.bf16.msrb.mxu1 %v9783_v28  ;;  %v9916_v28 = vld [vmem:[%s12384_s1 + $0x7bc] sm:$0xf0] }
 0x23c   : > { %5375 = vmatpush.bf16.msra.mxu0 %v9691_v44  ;;  %5451 = vmatpush.bf16.msrb.mxu3 %v9911_v41  ;;  %v9866_v44 = vld [vmem:[%s12384_s1 + $0x750] sm:$0xf]  ;;  %v11364_v41 = vld [vmem:[%s12384_s1 + $0x758] sm:$0xf0]  ;;  %v9919_v45 = vor.u32 %v11375_v37, %v9916_v28  ;;  %v9778_v37 = vld [vmem:[%s12384_s1 + $0x698] sm:$0xf]  ;;  %v3910_v38 = vadd.f32 %v12900_v2, %v13001_v24 }
 0x23d   : > { %v9867_v53 = vor.u32 %v11364_v41, %v9866_v44  ;;  %v9976_v44 = vld [vmem:[%s12384_s1 + $0x834] sm:$0xf0]  ;;  %v13014_v41 = vperm.slane %v12844_v49, 1  ;;  %v9856_v2 = vld [vmem:[%s12384_s1 + $0x744] sm:$0xf0] }
 0x23e   : > { %5346 = vmatpush.bf16.msrb.mxu2 %v9915_v12  ;;  %v11338_v49 = vld [vmem:[%s12384_s1 + $0x688] sm:$0xf0]  ;;  %v9859_v57 = vor.u32 %v11360_v47, %v9856_v2 }
 0x23f   : > { %5337 = vmatpush.bf16.msrb.mxu1 %v9771_v52  ;;  %v12968_v43 = vpop.f32.mrf.mxu1  ;;  %v11386_v47 = vld [vmem:[%s12384_s1 + $0x808] sm:$0xf0] }
 0x240   : > { %5376 = vmatpush.bf16.msra.mxu0 %v9679_v54  ;;  %5452 = vmatpush.bf16.msrb.mxu3 %v9899_v55  ;;  %v12974_v12 = vpop.f32.mrf.mxu0  ;;  %v12976_v52 = vpop.f32.mrf.mxu3  ;;  %v9814_v54 = vld [vmem:[%s12384_s1 + $0x6e0] sm:$0xf]  ;;  %v11350_v55 = vld [vmem:[%s12384_s1 + $0x6e8] sm:$0xf0] }
 0x241   : > { %v9815_v4 = vor.u32 %v11350_v55, %v9814_v54  ;;  %v9979_v54 = vor.u32 %v11390_v40, %v9976_v44  ;;  %v11387_v55 = vld [vmem:[%s12384_s1 + $0x814] sm:$0xf]  ;;  %v11389_v40 = vld [vmem:[%s12384_s1 + $0x820] sm:$0xf0] }
 0x242   : > { %5347 = vmatpush.bf16.msrb.mxu2 %v9903_v7  ;;  %v11369_v7 = vld [vmem:[%s12384_s1 + $0x784] sm:$0xf] }
 0x243   : > { %5338 = vmatpush.bf16.msrb.mxu1 %v9759_v61  ;;  %v9895_v26 = vor.u32 %v11369_v7, %v9892_v10  ;;  %v9844_v7 = vld [vmem:[%s12384_s1 + $0x72c] sm:$0xf0]  ;;  %v11335_v10 = vld [vmem:[%s12384_s1 + $0x670] sm:$0xf0] }
 0x244   : > { %5377 = vmatpush.bf16.msra.mxu0 %v9667_v42  ;;  %5453 = vmatpush.bf16.msrb.mxu3 %v9887_v63  ;;  %v3844_v6 = vpop.f32.mrf.mxu2  ;;  %v11347_v42 = vld [vmem:[%s12384_s1 + $0x6d0] sm:$0xf0]  ;;  %v9842_v63 = vld [vmem:[%s12384_s1 + $0x720] sm:$0xf] }
 0x245   : > { %v12986_v61 = vadd.f32 %v3844_v6, %v12933_v51  ;;  %v9803_v51 = vor.u32 %v11347_v42, %v9802_v46  ;;  %v3858_v6 = vadd.f32 %v12855_v62, %v13014_v41  ;;  %v9967_v42 = vor.u32 %v11387_v55, %v9964_v56  ;;  %v9946_v56 = vld [vmem:[%s12384_s1 + $0x7e8] sm:$0xf] }
 0x246   : > { %5348 = vmatpush.bf16.msrb.mxu2 %v9891_v21  ;;  %v9843_v21 = vor.u32 %v11358_v11, %v9842_v63  ;;  %v10006_v63 = vld [vmem:[%s12384_s1 + $0x860] sm:$0xf]  ;;  %v11398_v11 = vld [vmem:[%s12384_s1 + $0x868] sm:$0xf0] }
 0x247   : > { %5339 = vmatpush.bf16.msrb.mxu1 %v9747_v36  ;;  %v3898_v15 = vpop.f32.mrf.mxu1  ;;  %v10003_v36 = vor.u32 %v11396_v13, %v10000_v14  ;;  %v11384_v14 = vld [vmem:[%s12384_s1 + $0x7fc] sm:$0xf] }
 0x248   : > { %5378 = vmatpush.bf16.msra.mxu0 %v9655_v30  ;;  %5454 = vmatpush.bf16.msrb.mxu3 %v9875_v3  ;;  %v3950_v20 = vpop.f32.mrf.mxu0  ;;  %v4580_v60 = vpop.f32.mrf.mxu3  ;;  %v9988_v30 = vld [vmem:[%s12384_s1 + $0x84c] sm:$0xf0]  ;;  %v9883_v3 = vor.u32 %v11366_v19, %v9880_v29  ;;  %v9952_v15 = vld [vmem:[%s12384_s1 + $0x804] sm:$0xf0]  ;;  %v11395_v29 = vld [vmem:[%s12384_s1 + $0x850] sm:$0xf0] }
 0x249   : > { %v9991_v28 = vor.u32 %v11393_v27, %v9988_v30  ;;  %v10007_v20 = vor.u32 %v11398_v11, %v10006_v63  ;;  %v9955_v60 = vor.u32 %v11384_v14, %v9952_v15  ;;  %v9742_v27 = vld [vmem:[%s12384_s1 + $0x650] sm:$0xf]  ;;  %v11332_v30 = vld [vmem:[%s12384_s1 + $0x658] sm:$0xf0]  ;;  %v11317_v63 = vld [vmem:[%s12384_s1 + $0x5e0] sm:$0xf0] }
 0x24a   : > { %5340 = vmatmul.bf16.vlgmr.msrb.gmra.mxu1 %v12568_v35  ;;  %5349 = vmatpush.bf16.msrb.mxu2 %v9879_v39  ;;  %v11341_v39 = vld [vmem:[%s12384_s1 + $0x6a0] sm:$0xf0]  ;;  %v11314_v14 = vld [vmem:[%s12384_s1 + $0x5c8] sm:$0xf0] }
 0x24b   : > { %5397 = vmatpush.bf16.msra.mxu1 %v9931_v32  ;;  %5379 = vmatmul.bf16.vlgmr.msra.gmra.mxu0 %v12519_v18  ;;  %v9791_v32 = vor.u32 %v11344_v23, %v9790_v0  ;;  %v11381_v23 = vld [vmem:[%s12384_s1 + $0x7e4] sm:$0xf] }
 0x24c   : > { %5436 = vmatpush.bf16.msrb.mxu0 %v9839_v22  ;;  %5455 = vmatpush.bf16.msrb.mxu3 %v9863_v59  ;;  %v3846_v22 = vpop.f32.mrf.mxu2 }
 0x24d   : > { %v9982_v22 = vld [vmem:[%s12384_s1 + $0x830] sm:$0xf] }
 0x24e   : > { %5350 = vmatpush.bf16.msrb.mxu2 %v9867_v53  ;;  %v9766_v53 = vld [vmem:[%s12384_s1 + $0x680] sm:$0xf] }
 0x24f   : > { %5398 = vmatpush.bf16.msra.mxu1 %v9919_v45  ;;  %v3922_v59 = vpop.f32.mrf.mxu1  ;;  %v9871_v45 = vor.u32 %v11363_v25, %v9868_v34  ;;  %v9743_v34 = vor.u32 %v11332_v30, %v9742_v27 }
 0x250   : > { %5437 = vmatpush.bf16.msrb.mxu0 %v9827_v17  ;;  %5456 = vmatpush.bf16.msrb.mxu3 %v9851_v9  ;;  %v9779_v17 = vor.u32 %v11341_v39, %v9778_v37  ;;  %v13018_v48 = vadd.f32 %v3922_v59, %v3910_v38  ;;  %v4565_v5 = vpop.f32.mrf.mxu0  ;;  %v9767_v9 = vor.u32 %v11338_v49, %v9766_v53  ;;  %v9730_v37 = vld [vmem:[%s12384_s1 + $0x638] sm:$0xf]  ;;  %v11329_v39 = vld [vmem:[%s12384_s1 + $0x640] sm:$0xf0]  ;;  %v9718_v59 = vld [vmem:[%s12384_s1 + $0x620] sm:$0xf] }
 0x251   : > { %v4566_v31 = vadd.f32 %v4565_v5, %v12853_v58  ;;  %v9970_v38 = vld [vmem:[%s12384_s1 + $0x818] sm:$0xf]  ;;  %v9731_v44 = vor.u32 %v11329_v39, %v9730_v37  ;;  %v9706_v49 = vld [vmem:[%s12384_s1 + $0x608] sm:$0xf]  ;;  %v11409_v37 = vld [vmem:[%s13091_s30 + $0x54] sm:$0xf] }
 0x252   : > { %5351 = vmatpush.bf16.msrb.mxu2 %v9855_v8  ;;  %v9754_v8 = vld [vmem:[%s12384_s1 + $0x668] sm:$0xf]  ;;  %v10055_v39 = vld [vmem:[%s13091_s30 + $0x58] sm:$0xf0] }
 0x253   : > { %5399 = vmatpush.bf16.msra.mxu1 %v9907_v1  ;;  %5457 = vmatmul.bf16.vlgmr.msrb.gmra.mxu3 %v12604_v33  ;;  %v11357_v1 = vld [vmem:[%s12384_s1 + $0x724] sm:$0xf] }
 0x254   : > { %5438 = vmatpush.bf16.msrb.mxu0 %v9815_v4  ;;  %v13028_v4 = vadd.f32 %v12976_v52, %v4566_v31  ;;  %v3870_v46 = vpop.f32.mrf.mxu2  ;;  %v9847_v62 = vor.u32 %v11357_v1, %v9844_v7  ;;  %v11323_v31 = vld [vmem:[%s12384_s1 + $0x610] sm:$0xf0]  ;;  %v9694_v1 = vld [vmem:[%s12384_s1 + $0x5f0] sm:$0xf] }
 0x255   : > { %v3871_v13 = vadd.f32 %v3870_v46, %v3858_v6  ;;  %v11320_v6 = vld [vmem:[%s12384_s1 + $0x5f8] sm:$0xf0] }
 0x256   : > { %5352 = vmatpush.bf16.msrb.mxu2 %v9843_v21  ;;  %v9994_v21 = vld [vmem:[%s12384_s1 + $0x848] sm:$0xf]  ;;  %v9695_v46 = vor.u32 %v11320_v6, %v9694_v1  ;;  %v11414_v1 = vld [vmem:[%s13091_s30 + $0x74] sm:$0xf0] }
 0x257   : > { %5400 = vmatpush.bf16.msra.mxu1 %v9895_v26  ;;  %v3924_v52 = vpop.f32.mrf.mxu1  ;;  %v9755_v26 = vor.u32 %v11335_v10, %v9754_v8 }
 0x258   : > { %5439 = vmatpush.bf16.msrb.mxu0 %v9803_v51  ;;  %v3884_v51 = vadd.f32 %v12935_v50, %v3871_v13  ;;  %v4567_v19 = vpop.f32.mrf.mxu0  ;;  %v9995_v50 = vor.u32 %v11395_v29, %v9994_v21  ;;  %v9670_v13 = vld [vmem:[%s12384_s1 + $0x5c0] sm:$0xf]  ;;  %v3952_v29 = vmax.f32 %v12986_v61, 0.0  ;;  %v10071_v61 = vld [vmem:[%s13091_s30 + $0x78] sm:$0xf0] }
 0x259   : > { %5353 = vmatmul.bf16.vlgmr.msrb.gmra.mxu2 %v12604_v33 }
 0x25a   : > { %5412 = vmatpush.bf16.msra.mxu2 %v10003_v36  ;;  %v13043_v0 = vadd.f32 %v12968_v43, %v3884_v51  ;;  %v9940_v36 = vld [vmem:[%s12384_s1 + $0x7ec] sm:$0xf0]  ;;  %v11392_v43 = vld [vmem:[%s12384_s1 + $0x838] sm:$0xf0]  ;;  %v11311_v51 = vld [vmem:[%s12384_s1 + $0x5b0] sm:$0xf0] }
 0x25b   : > { %5401 = vmatpush.bf16.msra.mxu1 %v9883_v3 }
 0x25c   : > { %5440 = vmatpush.bf16.msrb.mxu0 %v9791_v32  ;;  %v3872_v3 = vpop.f32.mrf.mxu2  ;;  %v9943_v32 = vor.u32 %v11381_v23, %v9940_v36  ;;  %v11413_v36 = vld [vmem:[%s13091_s30 + $0x74] sm:$0xf] }
 0x25d   : > { %v10074_v30 = vor.u32 %v11413_v36, %v10071_v61  ;;  %v11411_v3 = vld [vmem:[%s13091_s30 + $0x64] sm:$0xf]  ;;  %v11426_v36 = vld [vmem:[%s13091_s30 + $0xd4] sm:$0xf0] }
 0x25e   : > { %5413 = vmatpush.bf16.msra.mxu2 %v9991_v28  ;;  %v13053_v25 = vpop.f32.mrf.mxu3  ;;  %v9983_v28 = vor.u32 %v11392_v43, %v9982_v22 }
 0x25f   : > { %5402 = vmatpush.bf16.msra.mxu1 %v9871_v45  ;;  %5773 = vmatpush.bf16.msra.mxu3 %v10074_v30  ;;  %v11410_v30 = vld [vmem:[%s13091_s30 + $0x54] sm:$0xf0] }
 0x260   : > { %5441 = vmatpush.bf16.msrb.mxu0 %v9779_v17  ;;  %v9958_v17 = vld [vmem:[%s12384_s1 + $0x800] sm:$0xf] }
 0x261   : > { %v9959_v55 = vor.u32 %v11386_v47, %v9958_v17 }
 0x262   : > { %5414 = vmatpush.bf16.msra.mxu2 %v9979_v54 }
 0x263   : > { %5403 = vmatpush.bf16.msra.mxu1 %v9859_v57  ;;  %v11383_v57 = vld [vmem:[%s12384_s1 + $0x7f0] sm:$0xf0] }
 0x264   : > { %5442 = vmatpush.bf16.msrb.mxu0 %v9767_v9  ;;  %v3935_v45 = vpop.f32.mrf.mxu2  ;;  %v9707_v9 = vor.u32 %v11323_v31, %v9706_v49 }
 0x265   : > { %v3936_v5 = vadd.f32 %v3935_v45, %v13018_v48  ;;  %v9947_v48 = vor.u32 %v11383_v57, %v9946_v56  ;;  %v11430_v56 = vld [vmem:[%s13091_s30 + $0xf4] sm:$0xf0] }
 0x266   : > { %5415 = vmatpush.bf16.msra.mxu2 %v9967_v42  ;;  %v4645_v2 = vpop.f32.mrf.mxu3  ;;  %v9682_v42 = vld [vmem:[%s12384_s1 + $0x5d8] sm:$0xf] }
 0x267   : > { %5404 = vmatpush.bf16.msra.mxu1 %v9847_v62  ;;  %v13069_v54 = vadd.f32 %v12974_v12, %v3936_v5  ;;  %v9683_v11 = vor.u32 %v11317_v63, %v9682_v42  ;;  %v9671_v62 = vor.u32 %v11314_v14, %v9670_v13  ;;  %v11403_v2 = vld [vmem:[%s13091_s30 + $0x24] sm:$0xf]  ;;  %v11428_v42 = vld [vmem:[%s13091_s30 + $0xe4] sm:$0xf0]  ;;  %v10061_v63 = vld [vmem:[%s13091_s30 + $0x60] sm:$0xf] }
 0x268   : > { %5443 = vmatpush.bf16.msrb.mxu0 %v9755_v26  ;;  %v9658_v26 = vld [vmem:[%s12384_s1 + $0x5a8] sm:$0xf] }
 0x269   : > { %v9659_v19 = vor.u32 %v11311_v51, %v9658_v26  ;;  %v11412_v14 = vld [vmem:[%s13091_s30 + $0x64] sm:$0xf0] }
 0x26a   : > { %5416 = vmatpush.bf16.msra.mxu2 %v9955_v60  ;;  %5405 = vmatmul.bf16.vlgmr.msra.gmra.mxu1 %v12604_v33  ;;  %v11326_v33 = vld [vmem:[%s12384_s1 + $0x628] sm:$0xf0]  ;;  %v10062_v51 = vor.u32 %v11412_v14, %v10061_v63  ;;  %v11418_v63 = vld [vmem:[%s13091_s30 + $0x94] sm:$0xf0]  ;;  %s959_s1 = scalar_lea.vmem %s13570_s10, %s10860_s27  ;;  %s13597_s27 = sld [smem:[#allocation3_spill]] }
 0x26b   : > { %5464 = vmatpush.bf16.msrb.mxu1 %v10007_v20  ;;  %5444 = vmatmul.bf16.vlgmr.msrb.gmra.mxu0 %v12568_v35  ;;  %v9971_v35 = vor.u32 %v11389_v40, %v9970_v38  ;;  %v9719_v53 = vor.u32 %v11326_v33, %v9718_v59  ;;  %v10047_v38 = vld [vmem:[%s13091_s30 + $0x48] sm:$0xf0]  ;;  %v11405_v33 = vld [vmem:[%s13091_s30 + $0x34] sm:$0xf]  ;;  %v11402_v14 = vld [vmem:[%s13091_s30 + $0x14] sm:$0xf0] }
 0x26c   : > { %v3937_v8 = vpop.f32.mrf.mxu2 }
 0x26d   : > { %v10023_v8 = vld [vmem:[%s13091_s30 + $0x18] sm:$0xf0] }
 0x26e   : > { %5417 = vmatpush.bf16.msra.mxu2 %v9943_v32  ;;  %v10063_v32 = vld [vmem:[%s13091_s30 + $0x68] sm:$0xf0] }
 0x26f   : > { %5465 = vmatpush.bf16.msrb.mxu1 %v9995_v50  ;;  %v4591_v7 = vpop.f32.mrf.mxu1  ;;  %v10066_v43 = vor.u32 %v11411_v3, %v10063_v32  ;;  %v10327_v3 = vld [vmem:[%s13091_s30 + $0x220] sm:$0xf]  ;;  %v11468_v32 = vld [vmem:[%s13091_s30 + $0x224] sm:$0xf0] }
 0x270   : > { %v4592_v10 = vadd.f32 %v4591_v7, %v13028_v4  ;;  %v4630_v12 = vpop.f32.mrf.mxu0  ;;  %v11401_v7 = vld [vmem:[%s13091_s30 + $0x14] sm:$0xf] }
 0x271   : > { %10009 = vmatmul.msk.bf16.vlgmr.msra.gmra.mxu2 %vm3792_vm2, %v12637_v16  ;;  %5774 = vmatpush.bf16.msra.mxu3 %v10066_v43  ;;  %v10328_v43 = vor.u32 %v11468_v32, %v10327_v3  ;;  %v11454_v3 = vld [vmem:[%s13091_s30 + $0x1b4] sm:$0xf0] }
 0x272   : > { %5423 = vmatpush.bf16.msrb.mxu2 %v9743_v34 }
 0x273   : > { %5466 = vmatpush.bf16.msrb.mxu1 %v9983_v28  ;;  %v11407_v28 = vld [vmem:[%s13091_s30 + $0x44] sm:$0xf] }
 0x274   : > { %v10050_v40 = vor.u32 %v11407_v28, %v10047_v38 }
 0x276   : > { %5424 = vmatpush.bf16.msrb.mxu2 %v9731_v44 }
 0x277   : > { %5467 = vmatpush.bf16.msrb.mxu1 %v9971_v35  ;;  %v4593_v52 = vpop.f32.mrf.mxu1  ;;  %v10039_v35 = vld [vmem:[%s13091_s30 + $0x38] sm:$0xf0] }
 0x278   : > { %v13082_v15 = vpop.f32.mrf.mxu3  ;;  %v4632_v4 = vpop.f32.mrf.mxu0  ;;  %v10042_v45 = vor.u32 %v11405_v33, %v10039_v35  ;;  %v11399_v52 = vld [vmem:[%s13091_s30 + $0x4] sm:$0xf]  ;;  %v10319_v33 = vld [vmem:[%s13091_s30 + $0x210] sm:$0xf]  ;;  %v11466_v35 = vld [vmem:[%s13091_s30 + $0x214] sm:$0xf0] }
 0x279   : > { %v10015_v4 = vld [vmem:[%s13091_s30 + $0x8] sm:$0xf0] }
 0x27a   : > { %5425 = vmatpush.bf16.msrb.mxu2 %v9719_v53  ;;  %v10031_v53 = vld [vmem:[%s13091_s30 + $0x28] sm:$0xf0] }
 0x27b   : > { %5468 = vmatpush.bf16.msrb.mxu1 %v9959_v55  ;;  %v10034_v49 = vor.u32 %v11403_v2, %v10031_v53  ;;  %v10133_v55 = vld [vmem:[%s13091_s30 + $0xf0] sm:$0xf]  ;;  %v11406_v53 = vld [vmem:[%s13091_s30 + $0x34] sm:$0xf0] }
 0x27c   : > { %v4604_v20 = vpop.f32.mrf.mxu2  ;;  %v10134_v57 = vor.u32 %v11430_v56, %v10133_v55  ;;  %v10037_v2 = vld [vmem:[%s13091_s30 + $0x30] sm:$0xf]  ;;  %v11464_v55 = vld [vmem:[%s13091_s30 + $0x204] sm:$0xf0]  ;;  %v10093_v56 = vld [vmem:[%s13091_s30 + $0xa0] sm:$0xf] }
 0x27d   : > { %v4605_v60 = vadd.f32 %v4604_v20, %v4592_v10  ;;  %v10026_v10 = vor.u32 %v11401_v7, %v10023_v8  ;;  %v10335_v20 = vld [vmem:[%s13091_s30 + $0x230] sm:$0xf]  ;;  %v11404_v7 = vld [vmem:[%s13091_s30 + $0x24] sm:$0xf0] }
 0x27e   : > { %5426 = vmatpush.bf16.msrb.mxu2 %v9707_v9  ;;  %v10069_v9 = vld [vmem:[%s13091_s30 + $0x70] sm:$0xf] }
 0x27f   : > { %5469 = vmatpush.bf16.msrb.mxu1 %v9947_v48  ;;  %v4712_v23 = vmax.f32 %v4605_v60, 0.0  ;;  %v10070_v48 = vor.u32 %v11414_v1, %v10069_v9  ;;  %v11470_v60 = vld [vmem:[%s13091_s30 + $0x234] sm:$0xf0] }
 0x280   : > { %v4710_v21 = vpop.f32.mrf.mxu3 }
 0x282   : > { %5427 = vmatpush.bf16.msrb.mxu2 %v9695_v46  ;;  %10010 = vmatmul.msk.bf16.vlgmr.msrb.gmra.mxu1 %vm3792_vm2, %v12637_v16  ;;  %v13093_v16 = vmax.f32 %v3952_v29, %v4712_v23  ;;  %v10336_v29 = vor.u32 %v11470_v60, %v10335_v20  ;;  %v10117_v23 = vld [vmem:[%s13091_s30 + $0xd0] sm:$0xf] }
 0x283   : > { %5734 = vmatpush.bf16.msra.mxu1 %v10070_v48  ;;  %v10118_v61 = vor.u32 %v11426_v36, %v10117_v23  ;;  %v10029_v48 = vld [vmem:[%s13091_s30 + $0x20] sm:$0xf]  ;;  %v11416_v23 = vld [vmem:[%s13091_s30 + $0x84] sm:$0xf0] }
 0x284   : > { %v4606_v50 = vpop.f32.mrf.mxu2  ;;  %v10030_v8 = vor.u32 %v11404_v7, %v10029_v48  ;;  %v10239_v48 = vld [vmem:[%s13091_s30 + $0x170] sm:$0xf]  ;;  %v11446_v7 = vld [vmem:[%s13091_s30 + $0x174] sm:$0xf0] }
 0x286   : > { %5428 = vmatpush.bf16.msrb.mxu2 %v9683_v11 }
 0x287   : > { %v4656_v27 = vpop.f32.mrf.mxu1  ;;  %5735 = vmatpush.bf16.msra.mxu1 %v10062_v51  ;;  %v10295_v51 = vld [vmem:[%s13091_s30 + $0x1e0] sm:$0xf] }
 0x28a   : > { %5429 = vmatpush.bf16.msrb.mxu2 %v9671_v62  ;;  %v3953_v62 = vmax.f32 %v13043_v0, 0.0 }
 0x28e   : > { %5430 = vmatpush.bf16.msrb.mxu2 %v9659_v19  ;;  %v10018_v19 = vor.u32 %v11399_v52, %v10015_v4 }
 0x28f   : > { %v4658_v22 = vpop.f32.mrf.mxu1 }
 0x290   : > { %v13100_v34 = vpop.f32.mrf.mxu0  ;;  %v10109_v22 = vld [vmem:[%s13091_s30 + $0xc0] sm:$0xf] }
 0x291   : > { %5431 = vmatmul.bf16.vlgmr.msrb.gmra.mxu2 %v12519_v18  ;;  %v10058_v18 = vor.u32 %v11409_v37, %v10055_v39  ;;  %v11424_v37 = vld [vmem:[%s13091_s30 + $0xc4] sm:$0xf0]  ;;  %v10045_v39 = vld [vmem:[%s13091_s30 + $0x40] sm:$0xf] }
 0x292   : > { %5747 = vmatpush.bf16.msra.mxu2 %v10134_v57  ;;  %v10110_v38 = vor.u32 %v11424_v37, %v10109_v22  ;;  %v11420_v57 = vld [vmem:[%s13091_s30 + $0xa4] sm:$0xf0]  ;;  %v11458_v37 = vld [vmem:[%s13091_s30 + $0x1d4] sm:$0xf0] }
 0x293   : > { %5775 = vmatpush.bf16.msra.mxu3 %v10058_v18  ;;  %v11408_v18 = vld [vmem:[%s13091_s30 + $0x44] sm:$0xf0]  ;;  %v10094_v1 = vor.u32 %v11420_v57, %v10093_v56  ;;  %v10165_v57 = vld [vmem:[%s13091_s30 + $0x130] sm:$0xf] }
 0x297   : > { %5776 = vmatpush.bf16.msra.mxu3 %v10050_v40  ;;  %v10046_v40 = vor.u32 %v11408_v18, %v10045_v39 }
 0x298   : > { %v13106_v44 = vpop.f32.mrf.mxu3  ;;  %v4697_v59 = vpop.f32.mrf.mxu0 }
 0x29b   : > { %5777 = vmatpush.bf16.msra.mxu3 %v10042_v45  ;;  %v10320_v45 = vor.u32 %v11466_v35, %v10319_v33  ;;  %v10279_v35 = vld [vmem:[%s13091_s30 + $0x1c0] sm:$0xf] }
 0x29c   : > { %v4617_v17 = vpop.f32.mrf.mxu2 }
 0x29d   : > { %v4618_v47 = vadd.f32 %v4617_v17, %v13014_v41  ;;  %v10101_v17 = vld [vmem:[%s13091_s30 + $0xb0] sm:$0xf] }
 0x29f   : > { %v4631_v31 = vadd.f32 %v4630_v12, %v4618_v47  ;;  %5778 = vmatpush.bf16.msra.mxu3 %v10034_v49  ;;  %v10125_v12 = vld [vmem:[%s13091_s30 + $0xe0] sm:$0xf]  ;;  %v11422_v47 = vld [vmem:[%s13091_s30 + $0xb4] sm:$0xf0] }
 0x2a0   : > { %v5330_v5 = vpop.f32.mrf.mxu3  ;;  %v10311_v49 = vld [vmem:[%s13091_s30 + $0x200] sm:$0xf] }
 0x2a1   : > { %v4644_v6 = vadd.f32 %v13053_v25, %v4631_v31  ;;  %v10126_v25 = vor.u32 %v11428_v42, %v10125_v12  ;;  %v10102_v5 = vor.u32 %v11422_v47, %v10101_v17  ;;  %v10038_v31 = vor.u32 %v11406_v53, %v10037_v2  ;;  %v10085_v42 = vld [vmem:[%s13091_s30 + $0x90] sm:$0xf]  ;;  %v10247_v53 = vld [vmem:[%s13091_s30 + $0x180] sm:$0xf] }
 0x2a2   : > { %v10312_v9 = vor.u32 %v11464_v55, %v10311_v49  ;;  %v10255_v47 = vld [vmem:[%s13091_s30 + $0x190] sm:$0xf] }
 0x2a3   : > { %v4657_v46 = vadd.f32 %v4656_v27, %v4644_v6  ;;  %5779 = vmatpush.bf16.msra.mxu3 %v10026_v10  ;;  %5748 = vmatpush.bf16.msra.mxu2 %v10126_v25  ;;  %v10053_v27 = vld [vmem:[%s13091_s30 + $0x50] sm:$0xf] }
 0x2a4   : > { %v4619_v11 = vpop.f32.mrf.mxu2  ;;  %v10054_v50 = vor.u32 %v11410_v30, %v10053_v27  ;;  %v10303_v10 = vld [vmem:[%s13091_s30 + $0x1f0] sm:$0xf]  ;;  %v11400_v27 = vld [vmem:[%s13091_s30 + $0x4] sm:$0xf0] }
 0x2a5   : > { %v4713_v21 = vmax.f32 %v4657_v46, 0.0  ;;  %v11462_v46 = vld [vmem:[%s13091_s30 + $0x1f4] sm:$0xf0]  ;;  %v10086_v11 = vor.u32 %v11418_v63, %v10085_v42  ;;  %v10021_v25 = vld [vmem:[%s13091_s30 + $0x10] sm:$0xf] }
 0x2a6   : > { %5736 = vmatpush.bf16.msra.mxu1 %v10054_v50  ;;  %v10304_v12 = vor.u32 %v11462_v46, %v10303_v10  ;;  %v10022_v4 = vor.u32 %v11402_v14, %v10021_v25  ;;  %v10271_v30 = vld [vmem:[%s13091_s30 + $0x1b0] sm:$0xf]  ;;  %v10157_v46 = vld [vmem:[%s13091_s30 + $0x120] sm:$0xf]  ;;  %v5329_v14 = vadd.f32 %v13106_v44, %v12853_v58  ;;  %v10135_v58 = vld [vmem:[%s13091_s30 + $0xf8] sm:$0xf0] }
 0x2a7   : > { %v13123_v13 = vpop.f32.mrf.mxu1  ;;  %v13135_v0 = vmax.f32 %v3953_v62, %v4713_v21  ;;  %5780 = vmatpush.bf16.msra.mxu3 %v10018_v19  ;;  %5749 = vmatpush.bf16.msra.mxu2 %v10118_v61  ;;  %v11460_v19 = vld [vmem:[%s13091_s30 + $0x1e4] sm:$0xf0]  ;;  %v10013_v61 = vld [vmem:[%s13091_s30] sm:$0xf]  ;;  %v10272_v22 = vor.u32 %v11454_v3, %v10271_v30 }
 0x2a8   : > { %v13129_v26 = vpop.f32.mrf.mxu0  ;;  %v4670_v52 = vadd.f32 %v13123_v13, %v13001_v24  ;;  %v10296_v21 = vor.u32 %v11460_v19, %v10295_v51  ;;  %v10014_v50 = vor.u32 %v11400_v27, %v10013_v61  ;;  %v10231_v63 = vld [vmem:[%s13091_s30 + $0x160] sm:$0xf]  ;;  %v10223_v51 = vld [vmem:[%s13091_s30 + $0x150] sm:$0xf]  ;;  %v11442_v19 = vld [vmem:[%s13091_s30 + $0x154] sm:$0xf0] }
 0x2a9   : > { %v10215_v30 = vld [vmem:[%s13091_s30 + $0x140] sm:$0xf] }
 0x2aa   : > { %5737 = vmatpush.bf16.msra.mxu1 %v10046_v40  ;;  %v11452_v40 = vld [vmem:[%s13091_s30 + $0x1a4] sm:$0xf0] }
 0x2ab   : > { %6068 = vmatpush.bf16.msrb.mxu3 %v10336_v29  ;;  %5750 = vmatpush.bf16.msra.mxu2 %v10110_v38  ;;  %v10077_v29 = vld [vmem:[%s13091_s30 + $0x80] sm:$0xf] }
 0x2ac   : > { %v10078_v36 = vor.u32 %v11416_v23, %v10077_v29  ;;  %v10263_v38 = vld [vmem:[%s13091_s30 + $0x1a0] sm:$0xf]  ;;  %v11432_v29 = vld [vmem:[%s13091_s30 + $0x104] sm:$0xf0] }
 0x2ad   : > { %v10264_v33 = vor.u32 %v11452_v40, %v10263_v38  ;;  %v10127_v40 = vld [vmem:[%s13091_s30 + $0xe8] sm:$0xf0] }
 0x2ae   : > { %5738 = vmatpush.bf16.msra.mxu1 %v10038_v31  ;;  %v11448_v31 = vld [vmem:[%s13091_s30 + $0x184] sm:$0xf0] }
 0x2af   : > { %v4671_v28 = vpop.f32.mrf.mxu1  ;;  %6069 = vmatpush.bf16.msrb.mxu3 %v10328_v43  ;;  %5751 = vmatpush.bf16.msra.mxu2 %v10102_v5  ;;  %v10287_v43 = vld [vmem:[%s13091_s30 + $0x1d0] sm:$0xf]  ;;  %v11450_v5 = vld [vmem:[%s13091_s30 + $0x194] sm:$0xf0]  ;;  %v10248_v56 = vor.u32 %v11448_v31, %v10247_v53  ;;  %v11492_v53 = vld [vmem:[%s13091_s30 + $0x2e4] sm:$0xf0] }
 0x2b0   : > { %v5369_v59 = vpop.f32.mrf.mxu0  ;;  %v10288_v39 = vor.u32 %v11458_v37, %v10287_v43  ;;  %v10256_v2 = vor.u32 %v11450_v5, %v10255_v47  ;;  %v11494_v43 = vld [vmem:[%s13091_s30 + $0x2f4] sm:$0xf0]  ;;  %v10159_v47 = vld [vmem:[%s13091_s30 + $0x128] sm:$0xf0]  ;;  %v10119_v31 = vld [vmem:[%s13091_s30 + $0xd8] sm:$0xf0] }
 0x2b2   : > { %5739 = vmatpush.bf16.msra.mxu1 %v10030_v8  ;;  %v10240_v8 = vor.u32 %v11446_v7, %v10239_v48  ;;  %v11433_v48 = vld [vmem:[%s13091_s30 + $0x114] sm:$0xf]  ;;  %v10151_v7 = vld [vmem:[%s13091_s30 + $0x118] sm:$0xf0] }
 0x2b3   : > { %6070 = vmatpush.bf16.msrb.mxu3 %v10320_v45  ;;  %5752 = vmatpush.bf16.msra.mxu2 %v10094_v1  ;;  %v11456_v45 = vld [vmem:[%s13091_s30 + $0x1c4] sm:$0xf0] }
 0x2b6   : > { %v13155_v6 = vpop.f32.mrf.mxu3  ;;  %5740 = vmatpush.bf16.msra.mxu1 %v10022_v4  ;;  %v11434_v4 = vld [vmem:[%s13091_s30 + $0x114] sm:$0xf0] }
 0x2b7   : > { %6071 = vmatpush.bf16.msrb.mxu3 %v10312_v9  ;;  %5753 = vmatpush.bf16.msra.mxu2 %v10086_v11  ;;  %v11438_v9 = vld [vmem:[%s13091_s30 + $0x134] sm:$0xf0]  ;;  %v11444_v11 = vld [vmem:[%s13091_s30 + $0x164] sm:$0xf0] }
 0x2b8   : > { %v10166_v1 = vor.u32 %v11438_v9, %v10165_v57  ;;  %v10232_v25 = vor.u32 %v11444_v11, %v10231_v63  ;;  %v10457_v57 = vld [vmem:[%s13091_s30 + $0x2d0] sm:$0xf]  ;;  %v11490_v9 = vld [vmem:[%s13091_s30 + $0x2d4] sm:$0xf0] }
 0x2b9   : > { %v10458_v11 = vor.u32 %v11490_v9, %v10457_v57  ;;  %v11415_v57 = vld [vmem:[%s13091_s30 + $0x84] sm:$0xf]  ;;  %v10079_v9 = vld [vmem:[%s13091_s30 + $0x88] sm:$0xf0] }
 0x2ba   : > { %5741 = vmatpush.bf16.msra.mxu1 %v10014_v50  ;;  %5764 = vmatpush.bf16.msra.mxu0 %v10166_v1  ;;  %v11440_v50 = vld [vmem:[%s13091_s30 + $0x144] sm:$0xf0] }
 0x2bb   : > { %6072 = vmatpush.bf16.msrb.mxu3 %v10304_v12  ;;  %5754 = vmatpush.bf16.msra.mxu2 %v10078_v36  ;;  %v11436_v12 = vld [vmem:[%s13091_s30 + $0x124] sm:$0xf0]  ;;  %v10216_v3 = vor.u32 %v11440_v50, %v10215_v30  ;;  %v10095_v30 = vld [vmem:[%s13091_s30 + $0xa8] sm:$0xf0]  ;;  %v10359_v50 = vld [vmem:[%s13091_s30 + $0x260] sm:$0xf] }
 0x2bc   : > { %v4682_v62 = vpop.f32.mrf.mxu2  ;;  %v10158_v42 = vor.u32 %v11436_v12, %v10157_v46  ;;  %v10154_v46 = vor.u32 %v11433_v48, %v10151_v7  ;;  %v10111_v12 = vld [vmem:[%s13091_s30 + $0xc8] sm:$0xf0]  ;;  %v11473_v48 = vld [vmem:[%s13091_s30 + $0x254] sm:$0xf]  ;;  %v10353_v7 = vld [vmem:[%s13091_s30 + $0x258] sm:$0xf0] }
 0x2bd   : > { %v4683_v20 = vadd.f32 %v4682_v62, %v4670_v52  ;;  %v10149_v52 = vld [vmem:[%s13091_s30 + $0x110] sm:$0xf] }
 0x2be   : > { %v5395_v60 = vpop.f32.mrf.mxu3  ;;  %5765 = vmatpush.bf16.msra.mxu0 %v10158_v42  ;;  %v10150_v62 = vor.u32 %v11434_v4, %v10149_v52  ;;  %v11431_v52 = vld [vmem:[%s13091_s30 + $0x104] sm:$0xf]  ;;  %v10143_v4 = vld [vmem:[%s13091_s30 + $0x108] sm:$0xf0] }
 0x2bf   : > { %v4696_v13 = vadd.f32 %v13100_v34, %v4683_v20  ;;  %6073 = vmatpush.bf16.msrb.mxu3 %v10296_v21  ;;  %v3954_v34 = vmax.f32 %v13069_v54, 0.0  ;;  %6055 = vmatpush.bf16.msrb.mxu2 %v10272_v22  ;;  %v10280_v54 = vor.u32 %v11456_v45, %v10279_v35  ;;  %v10224_v60 = vor.u32 %v11442_v19, %v10223_v51  ;;  %v10141_v21 = vld [vmem:[%s13091_s30 + $0x100] sm:$0xf]  ;;  %v10473_v22 = vld [vmem:[%s13091_s30 + $0x2f0] sm:$0xf] }
 0x2c0   : > { %v10142_v36 = vor.u32 %v11432_v29, %v10141_v21  ;;  %v10465_v35 = vld [vmem:[%s13091_s30 + $0x2e0] sm:$0xf]  ;;  %v11421_v51 = vld [vmem:[%s13091_s30 + $0xb4] sm:$0xf]  ;;  %v10103_v19 = vld [vmem:[%s13091_s30 + $0xb8] sm:$0xf0] }
 0x2c1   : > { %v4709_v32 = vadd.f32 %v13082_v15, %v4696_v13  ;;  %v11429_v13 = vld [vmem:[%s13091_s30 + $0xf4] sm:$0xf]  ;;  %v10106_v21 = vor.u32 %v11421_v51, %v10103_v19  ;;  %v11478_v29 = vld [vmem:[%s13091_s30 + $0x274] sm:$0xf0] }
 0x2c2   : > { %5766 = vmatpush.bf16.msra.mxu0 %v10150_v62  ;;  %v10138_v27 = vor.u32 %v11429_v13, %v10135_v58  ;;  %v10146_v62 = vor.u32 %v11431_v52, %v10143_v4  ;;  %v10441_v58 = vld [vmem:[%s13091_s30 + $0x2b0] sm:$0xf]  ;;  %v10345_v52 = vld [vmem:[%s13091_s30 + $0x248] sm:$0xf0] }
 0x2c3   : > { %v4714_v18 = vmax.f32 %v4709_v32, 0.0  ;;  %6074 = vmatpush.bf16.msrb.mxu3 %v10288_v39  ;;  %6056 = vmatpush.bf16.msrb.mxu2 %v10264_v33  ;;  %v11437_v39 = vld [vmem:[%s13091_s30 + $0x134] sm:$0xf]  ;;  %v10474_v33 = vor.u32 %v11494_v43, %v10473_v22  ;;  %v11476_v43 = vld [vmem:[%s13091_s30 + $0x264] sm:$0xf0] }
 0x2c4   : > { %v4684_v59 = vpop.f32.mrf.mxu2 }
 0x2c5   : > { %v13186_v17 = vmax.f32 %v3954_v34, %v4714_v18  ;;  %v10167_v34 = vld [vmem:[%s13091_s30 + $0x138] sm:$0xf0] }
 0x2c6   : > { %5767 = vmatpush.bf16.msra.mxu0 %v10142_v36  ;;  %v10170_v18 = vor.u32 %v11437_v39, %v10167_v34  ;;  %v10360_v39 = vor.u32 %v11476_v43, %v10359_v50  ;;  %v11506_v50 = vld [vmem:[%s13091_s30 + $0x354] sm:$0xf0] }
 0x2c7   : > { %v5341_v28 = vpop.f32.mrf.mxu1  ;;  %6075 = vmatpush.bf16.msrb.mxu3 %v10280_v54  ;;  %6057 = vmatpush.bf16.msrb.mxu2 %v10256_v2  ;;  %v11435_v54 = vld [vmem:[%s13091_s30 + $0x124] sm:$0xf] }
 0x2c8   : > { %v13182_v15 = vpop.f32.mrf.mxu0  ;;  %v5342_v20 = vadd.f32 %v5341_v28, %v5329_v14  ;;  %v11427_v28 = vld [vmem:[%s13091_s30 + $0xe4] sm:$0xf]  ;;  %5803 = vmatpush.bf16.msrb.mxu1 %v10170_v18  ;;  %v11488_v14 = vld [vmem:[%s13091_s30 + $0x2c4] sm:$0xf0]  ;;  %v10433_v18 = vld [vmem:[%s13091_s30 + $0x2a0] sm:$0xf] }
 0x2c9   : > { %v10130_v45 = vor.u32 %v11427_v28, %v10127_v40  ;;  %v5381_v1 = vadd.f32 %v13182_v15, %v13014_v41  ;;  %v11484_v28 = vld [vmem:[%s13091_s30 + $0x2a4] sm:$0xf0]  ;;  %v11417_v40 = vld [vmem:[%s13091_s30 + $0x94] sm:$0xf] }
 0x2ca   : > { %5786 = vmatpush.bf16.msrb.mxu0 %v10138_v27  ;;  %v11419_v27 = vld [vmem:[%s13091_s30 + $0xa4] sm:$0xf] }
 0x2cb   : > { %6058 = vmatpush.bf16.msrb.mxu2 %v10248_v56  ;;  %v10466_v56 = vor.u32 %v11492_v53, %v10465_v35  ;;  %v5394_v41 = vadd.f32 %v13155_v6, %v5381_v1  ;;  %v10098_v22 = vor.u32 %v11419_v27, %v10095_v30  ;;  %v11475_v35 = vld [vmem:[%s13091_s30 + $0x264] sm:$0xf]  ;;  %v10434_v53 = vor.u32 %v11484_v28, %v10433_v18  ;;  %v10343_v1 = vld [vmem:[%s13091_s30 + $0x240] sm:$0xf]  ;;  %v10521_v27 = vld [vmem:[%s13091_s30 + $0x350] sm:$0xf] }
 0x2cc   : > { %v11504_v18 = vld [vmem:[%s13091_s30 + $0x344] sm:$0xf0] }
 0x2ce   : > { %5787 = vmatpush.bf16.msrb.mxu0 %v10130_v45  ;;  %v10361_v45 = vld [vmem:[%s13091_s30 + $0x268] sm:$0xf0] }
 0x2cf   : > { %v5343_v49 = vpop.f32.mrf.mxu1  ;;  %6059 = vmatpush.bf16.msrb.mxu2 %v10240_v8  ;;  %v11423_v8 = vld [vmem:[%s13091_s30 + $0xc4] sm:$0xf] }
 0x2d0   : > { %v5382_v55 = vpop.f32.mrf.mxu0  ;;  %v11425_v49 = vld [vmem:[%s13091_s30 + $0xd4] sm:$0xf]  ;;  %v10114_v42 = vor.u32 %v11423_v8, %v10111_v12  ;;  %v10082_v8 = vor.u32 %v11415_v57, %v10079_v9  ;;  %v10265_v9 = vld [vmem:[%s13091_s30 + $0x1a8] sm:$0xf0] }
 0x2d1   : > { %v10122_v55 = vor.u32 %v11425_v49, %v10119_v31  ;;  %v10425_v31 = vld [vmem:[%s13091_s30 + $0x290] sm:$0xf] }
 0x2d3   : > { %6060 = vmatpush.bf16.msrb.mxu2 %v10232_v25  ;;  %5788 = vmatpush.bf16.msrb.mxu0 %v10122_v55  ;;  %v10449_v25 = vld [vmem:[%s13091_s30 + $0x2c0] sm:$0xf]  ;;  %v11482_v55 = vld [vmem:[%s13091_s30 + $0x294] sm:$0xf0] }
 0x2d4   : > { %v10426_v12 = vor.u32 %v11482_v55, %v10425_v31  ;;  %v11500_v31 = vld [vmem:[%s13091_s30 + $0x324] sm:$0xf0] }
 0x2d6   : > { %v13196_v10 = vpop.f32.mrf.mxu3 }
 0x2d7   : > { %6061 = vmatpush.bf16.msrb.mxu2 %v10224_v60  ;;  %5789 = vmatpush.bf16.msrb.mxu0 %v10114_v42 }
 0x2db   : > { %6062 = vmatpush.bf16.msrb.mxu2 %v10216_v3  ;;  %5790 = vmatpush.bf16.msrb.mxu0 %v10106_v21  ;;  %v11515_v21 = vld [vmem:[%s13091_s30 + $0x3a4] sm:$0xf] }
 0x2dc   : > { %v5354_v23 = vpop.f32.mrf.mxu2 }
 0x2dd   : > { %v5355_v44 = vadd.f32 %v5354_v23, %v5342_v20  ;;  %v10367_v20 = vld [vmem:[%s13091_s30 + $0x270] sm:$0xf]  ;;  %v10450_v23 = vor.u32 %v11488_v14, %v10449_v25  ;;  %v10356_v25 = vor.u32 %v11473_v48, %v10353_v7  ;;  %v11471_v14 = vld [vmem:[%s13091_s30 + $0x244] sm:$0xf]  ;;  %v10329_v48 = vld [vmem:[%s13091_s30 + $0x228] sm:$0xf0] }
 0x2de   : > { %v5460_v61 = vpop.f32.mrf.mxu3  ;;  %v10368_v36 = vor.u32 %v11478_v29, %v10367_v20  ;;  %v10348_v19 = vor.u32 %v11471_v14, %v10345_v52  ;;  %v10537_v20 = vld [vmem:[%s13091_s30 + $0x370] sm:$0xf]  ;;  %v10563_v29 = vld [vmem:[%s13091_s30 + $0x3a8] sm:$0xf0]  ;;  %v11496_v14 = vld [vmem:[%s13091_s30 + $0x304] sm:$0xf0] }
 0x2df   : > { %v5368_v32 = vadd.f32 %v13129_v26, %v5355_v44  ;;  %v11486_v44 = vld [vmem:[%s13091_s30 + $0x2b4] sm:$0xf0]  ;;  %v11477_v61 = vld [vmem:[%s13091_s30 + $0x274] sm:$0xf]  ;;  %5791 = vmatpush.bf16.msrb.mxu0 %v10098_v22 }
 0x2e1   : > { %v5475_v37 = vmax.f32 %v5368_v32, 0.0  ;;  %v10369_v32 = vld [vmem:[%s13091_s30 + $0x278] sm:$0xf0] }
 0x2e3   : > { %v5478_v38 = vmax.f32 %v13093_v16, %v5475_v37  ;;  %v10162_v16 = vor.u32 %v11435_v54, %v10159_v47  ;;  %v10442_v37 = vor.u32 %v11486_v44, %v10441_v58  ;;  %v11474_v47 = vld [vmem:[%s13091_s30 + $0x254] sm:$0xf0]  ;;  %v11513_v58 = vld [vmem:[%s13091_s30 + $0x394] sm:$0xf]  ;;  %v10555_v44 = vld [vmem:[%s13091_s30 + $0x398] sm:$0xf0] }
 0x2e4   : > { %v5356_v26 = vpop.f32.mrf.mxu2  ;;  %v10558_v30 = vor.u32 %v11513_v58, %v10555_v44 }
 0x2e5   : > { %v13225_v5 = vpack.c.bf16 %v5478_v38, %v5478_v38  ;;  %5804 = vmatpush.bf16.msrb.mxu1 %v10162_v16  ;;  %v10372_v38 = vor.u32 %v11477_v61, %v10369_v32  ;;  %v10087_v26 = vld [vmem:[%s13091_s30 + $0x98] sm:$0xf0]  ;;  %v10547_v32 = vld [vmem:[%s13091_s30 + $0x388] sm:$0xf0] }
 0x2e6   : > { %v10090_v54 = vor.u32 %v11417_v40, %v10087_v26  ;;  %v11502_v26 = vld [vmem:[%s13091_s30 + $0x334] sm:$0xf0] }
 0x2e7   : > { %v5406_v59 = vpop.f32.mrf.mxu1  ;;  %5742 = vmatmul.bf16.vlgmr.msra.gmra.mxu1 %v13225_v5  ;;  %5781 = vmatmul.bf16.vlgmr.msra.gmra.mxu3 %v13225_v5 }
 0x2e8   : > { %v13227_v2 = vpop.f32.mrf.mxu0  ;;  %6378 = vmatpush.bf16.msra.mxu3 %v10474_v33  ;;  %v5407_v60 = vadd.f32 %v5406_v59, %v5394_v41  ;;  %v10351_v59 = vld [vmem:[%s13091_s30 + $0x250] sm:$0xf]  ;;  %5792 = vmatpush.bf16.msrb.mxu0 %v10090_v54  ;;  %v11517_v41 = vld [vmem:[%s13091_s30 + $0x3b4] sm:$0xf]  ;;  %v10273_v54 = vld [vmem:[%s13091_s30 + $0x1b8] sm:$0xf0] }
 0x2e9   : > { %5805 = vmatpush.bf16.msrb.mxu1 %v10154_v46  ;;  %v10352_v16 = vor.u32 %v11474_v47, %v10351_v59  ;;  %v11472_v46 = vld [vmem:[%s13091_s30 + $0x244] sm:$0xf0] }
 0x2ea   : > { %v10344_v42 = vor.u32 %v11472_v46, %v10343_v1  ;;  %v11467_v1 = vld [vmem:[%s13091_s30 + $0x224] sm:$0xf] }
 0x2ec   : > { %6379 = vmatpush.bf16.msra.mxu3 %v10466_v56  ;;  %v10364_v56 = vor.u32 %v11475_v35, %v10361_v45  ;;  %5793 = vmatpush.bf16.msrb.mxu0 %v10082_v8  ;;  %v11453_v45 = vld [vmem:[%s13091_s30 + $0x1b4] sm:$0xf]  ;;  %v11498_v8 = vld [vmem:[%s13091_s30 + $0x314] sm:$0xf0] }
 0x2ed   : > { %5806 = vmatpush.bf16.msrb.mxu1 %v10146_v62  ;;  %v10276_v55 = vor.u32 %v11453_v45, %v10273_v54  ;;  %v10475_v45 = vld [vmem:[%s13091_s30 + $0x2f8] sm:$0xf0] }
 0x2ef   : > { %v5408_v63 = vpop.f32.mrf.mxu1 }
 0x2f0   : > { %v5447_v15 = vpop.f32.mrf.mxu0  ;;  %6380 = vmatpush.bf16.msra.mxu3 %v10458_v11  ;;  %v10417_v63 = vld [vmem:[%s13091_s30 + $0x280] sm:$0xf]  ;;  %v11480_v11 = vld [vmem:[%s13091_s30 + $0x284] sm:$0xf0] }
 0x2f1   : > { %6085 = vmatpush.bf16.msra.mxu1 %v10368_v36  ;;  %v10571_v15 = vld [vmem:[%s13091_s30 + $0x3b8] sm:$0xf0]  ;;  %v10418_v4 = vor.u32 %v11480_v11, %v10417_v63  ;;  %v10566_v36 = vor.u32 %v11515_v21, %v10563_v29  ;;  %v11465_v11 = vld [vmem:[%s13091_s30 + $0x214] sm:$0xf] }
 0x2f2   : > { %v10574_v51 = vor.u32 %v11517_v41, %v10571_v15  ;;  %v10257_v63 = vld [vmem:[%s13091_s30 + $0x198] sm:$0xf0]  ;;  %v10481_v15 = vld [vmem:[%s13091_s30 + $0x300] sm:$0xf] }
 0x2f4   : > { %v5419_v6 = vpop.f32.mrf.mxu2  ;;  %6381 = vmatpush.bf16.msra.mxu3 %v10450_v23  ;;  %v10529_v23 = vld [vmem:[%s13091_s30 + $0x360] sm:$0xf] }
 0x2f5   : > { %v5420_v13 = vadd.f32 %v5419_v6, %v5407_v60  ;;  %6086 = vmatpush.bf16.msra.mxu1 %v10360_v39  ;;  %v11510_v60 = vld [vmem:[%s13091_s30 + $0x374] sm:$0xf0] }
 0x2f6   : > { %v10538_v6 = vor.u32 %v11510_v60, %v10537_v20  ;;  %v10313_v20 = vld [vmem:[%s13091_s30 + $0x208] sm:$0xf0]  ;;  %v10482_v60 = vor.u32 %v11496_v14, %v10481_v15  ;;  %v11485_v14 = vld [vmem:[%s13091_s30 + $0x2b4] sm:$0xf] }
 0x2f7   : > { %v5476_v3 = vmax.f32 %v5420_v13, 0.0  ;;  %v11508_v13 = vld [vmem:[%s13091_s30 + $0x364] sm:$0xf0] }
 0x2f8   : > { %6382 = vmatpush.bf16.msra.mxu3 %v10442_v37  ;;  %v10530_v61 = vor.u32 %v11508_v13, %v10529_v23  ;;  %v10522_v37 = vor.u32 %v11506_v50, %v10521_v27  ;;  %v10241_v23 = vld [vmem:[%s13091_s30 + $0x178] sm:$0xf0]  ;;  %v10233_v27 = vld [vmem:[%s13091_s30 + $0x168] sm:$0xf0] }
 0x2f9   : > { %v5479_v34 = vmax.f32 %v13135_v0, %v5476_v3  ;;  %6087 = vmatpush.bf16.msra.mxu1 %v10352_v16  ;;  %v11511_v3 = vld [vmem:[%s13091_s30 + $0x384] sm:$0xf]  ;;  %v10497_v16 = vld [vmem:[%s13091_s30 + $0x320] sm:$0xf]  ;;  %v10305_v13 = vld [vmem:[%s13091_s30 + $0x1f8] sm:$0xf0] }
 0x2fa   : > { %v10550_v39 = vor.u32 %v11511_v3, %v10547_v32  ;;  %v10498_v7 = vor.u32 %v11500_v31, %v10497_v16  ;;  %v10297_v50 = vld [vmem:[%s13091_s30 + $0x1e8] sm:$0xf0]  ;;  %v11491_v16 = vld [vmem:[%s13091_s30 + $0x2e4] sm:$0xf] }
 0x2fb   : > { %v13265_v33 = vpack.c.bf16 %v5479_v34, %v5479_v34  ;;  %v10513_v34 = vld [vmem:[%s13091_s30 + $0x340] sm:$0xf]  ;;  %v10467_v31 = vld [vmem:[%s13091_s30 + $0x2e8] sm:$0xf0] }
 0x2fc   : > { %v5421_v0 = vpop.f32.mrf.mxu2  ;;  %6383 = vmatpush.bf16.msra.mxu3 %v10434_v53  ;;  %v10514_v40 = vor.u32 %v11504_v18, %v10513_v34 }
 0x2fd   : > { %5755 = vmatmul.bf16.vlgmr.msra.gmra.mxu2 %v13265_v33  ;;  %6076 = vmatmul.bf16.vlgmr.msrb.gmra.mxu3 %v13265_v33 }
 0x2fe   : > { %6124 = vmatpush.bf16.msra.mxu2 %v10372_v38  ;;  %6088 = vmatpush.bf16.msra.mxu1 %v10344_v42  ;;  %v11449_v42 = vld [vmem:[%s13091_s30 + $0x194] sm:$0xf] }
 0x2ff   : > { %v13270_v49 = vpop.f32.mrf.mxu1  ;;  %v10260_v52 = vor.u32 %v11449_v42, %v10257_v63  ;;  %v10451_v42 = vld [vmem:[%s13091_s30 + $0x2c8] sm:$0xf0]  ;;  %v11509_v63 = vld [vmem:[%s13091_s30 + $0x374] sm:$0xf] }
 0x300   : > { %6384 = vmatpush.bf16.msra.mxu3 %v10426_v12  ;;  %v10332_v12 = vor.u32 %v11467_v1, %v10329_v48  ;;  %v11489_v1 = vld [vmem:[%s13091_s30 + $0x2d4] sm:$0xf]  ;;  %v10459_v48 = vld [vmem:[%s13091_s30 + $0x2d8] sm:$0xf0] }
 0x302   : > { %6125 = vmatpush.bf16.msra.mxu2 %v10364_v56  ;;  %v11451_v56 = vld [vmem:[%s13091_s30 + $0x1a4] sm:$0xf] }
 0x303   : > { %v10268_v46 = vor.u32 %v11451_v56, %v10265_v9  ;;  %v10553_v56 = vld [vmem:[%s13091_s30 + $0x390] sm:$0xf]  ;;  %v11514_v9 = vld [vmem:[%s13091_s30 + $0x394] sm:$0xf0] }
 0x304   : > { %6385 = vmatpush.bf16.msra.mxu3 %v10418_v4 }
 0x306   : > { %6126 = vmatpush.bf16.msra.mxu2 %v10356_v25  ;;  %v10321_v25 = vld [vmem:[%s13091_s30 + $0x218] sm:$0xf0] }
 0x307   : > { %v5473_v62 = vpop.f32.mrf.mxu1  ;;  %v10324_v4 = vor.u32 %v11465_v11, %v10321_v25  ;;  %v10539_v11 = vld [vmem:[%s13091_s30 + $0x378] sm:$0xf0] }
 0x308   : > { %6447 = vmatpush.bf16.msrb.mxu3 %v10574_v51  ;;  %v11447_v62 = vld [vmem:[%s13091_s30 + $0x184] sm:$0xf]  ;;  %v10249_v51 = vld [vmem:[%s13091_s30 + $0x188] sm:$0xf0]  ;;  %v10542_v15 = vor.u32 %v11509_v63, %v10539_v11 }
 0x309   : > { %v10252_v21 = vor.u32 %v11447_v62, %v10249_v51  ;;  %v10531_v62 = vld [vmem:[%s13091_s30 + $0x368] sm:$0xf0] }
 0x30a   : > { %6127 = vmatpush.bf16.msra.mxu2 %v10348_v19  ;;  %v11463_v19 = vld [vmem:[%s13091_s30 + $0x204] sm:$0xf] }
 0x30b   : > { %v10316_v29 = vor.u32 %v11463_v19, %v10313_v20  ;;  %v11483_v20 = vld [vmem:[%s13091_s30 + $0x2a4] sm:$0xf] }
 0x30c   : > { %6448 = vmatpush.bf16.msrb.mxu3 %v10566_v36  ;;  %v11461_v36 = vld [vmem:[%s13091_s30 + $0x1f4] sm:$0xf] }
 0x30d   : > { %6063 = vmatmul.bf16.vlgmr.msrb.gmra.mxu2 %v13225_v5  ;;  %6386 = vmatmul.bf16.vlgmr.msra.gmra.mxu3 %v13225_v5  ;;  %v10308_v44 = vor.u32 %v11461_v36, %v10305_v13  ;;  %v11481_v36 = vld [vmem:[%s13091_s30 + $0x294] sm:$0xf]  ;;  %v10427_v13 = vld [vmem:[%s13091_s30 + $0x298] sm:$0xf0] }
 0x30e   : > { %6391 = vmatpush.bf16.msrb.mxu2 %v10538_v6  ;;  %v11445_v6 = vld [vmem:[%s13091_s30 + $0x174] sm:$0xf] }
 0x30f   : > { %v10244_v58 = vor.u32 %v11445_v6, %v10241_v23 }
 0x310   : > { %6449 = vmatpush.bf16.msrb.mxu3 %v10558_v30  ;;  %v11459_v30 = vld [vmem:[%s13091_s30 + $0x1e4] sm:$0xf] }
 0x311   : > { %v10300_v32 = vor.u32 %v11459_v30, %v10297_v50  ;;  %v11479_v30 = vld [vmem:[%s13091_s30 + $0x284] sm:$0xf]  ;;  %v10419_v50 = vld [vmem:[%s13091_s30 + $0x288] sm:$0xf0] }
 0x312   : > { %6392 = vmatpush.bf16.msrb.mxu2 %v10530_v61  ;;  %v11443_v61 = vld [vmem:[%s13091_s30 + $0x164] sm:$0xf] }
 0x313   : > { %v10236_v3 = vor.u32 %v11443_v61, %v10233_v27  ;;  %v10430_v61 = vor.u32 %v11481_v36, %v10427_v13 }
 0x314   : > { %v5432_v22 = vpop.f32.mrf.mxu2  ;;  %6450 = vmatpush.bf16.msrb.mxu3 %v10550_v39  ;;  %v10289_v39 = vld [vmem:[%s13091_s30 + $0x1d8] sm:$0xf0] }
 0x315   : > { %v5433_v43 = vadd.f32 %v5432_v22, %v13001_v24  ;;  %v10505_v24 = vld [vmem:[%s13091_s30 + $0x330] sm:$0xf]  ;;  %v11441_v22 = vld [vmem:[%s13091_s30 + $0x154] sm:$0xf] }
 0x316   : > { %6393 = vmatpush.bf16.msrb.mxu2 %v10522_v37  ;;  %v10506_v0 = vor.u32 %v11502_v26, %v10505_v24  ;;  %v11457_v37 = vld [vmem:[%s13091_s30 + $0x1d4] sm:$0xf]  ;;  %v10281_v24 = vld [vmem:[%s13091_s30 + $0x1c8] sm:$0xf0]  ;;  %v10569_v26 = vld [vmem:[%s13091_s30 + $0x3b0] sm:$0xf] }
 0x317   : > { %v5446_v28 = vadd.f32 %v13227_v2, %v5433_v43  ;;  %v11469_v2 = vld [vmem:[%s13091_s30 + $0x234] sm:$0xf]  ;;  %v10225_v43 = vld [vmem:[%s13091_s30 + $0x158] sm:$0xf0]  ;;  %v10292_v18 = vor.u32 %v11457_v37, %v10289_v39  ;;  %v10499_v37 = vld [vmem:[%s13091_s30 + $0x328] sm:$0xf0] }
 0x318   : > { %v10228_v34 = vor.u32 %v11441_v22, %v10225_v43  ;;  %v10422_v22 = vor.u32 %v11479_v30, %v10419_v50  ;;  %v11531_v50 = vld [vmem:[%s13428_s2 + $0x60] sm:$0xff] }
 0x319   : > { %v5459_v38 = vadd.f32 %v13196_v10, %v5446_v28  ;;  %v10337_v10 = vld [vmem:[%s13091_s30 + $0x238] sm:$0xf0]  ;;  %v11439_v28 = vld [vmem:[%s13091_s30 + $0x144] sm:$0xf]  ;;  %6590 = vmatpush.bf16.msra.mxu3 %v11531_v50 }
 0x31a   : > { %6394 = vmatpush.bf16.msrb.mxu2 %v10514_v40  ;;  %v11455_v40 = vld [vmem:[%s13091_s30 + $0x1c4] sm:$0xf] }
 0x31b   : > { %v5472_v59 = vadd.f32 %v13270_v49, %v5459_v38  ;;  %v10340_v49 = vor.u32 %v11469_v2, %v10337_v10  ;;  %v10217_v38 = vld [vmem:[%s13091_s30 + $0x148] sm:$0xf0]  ;;  %v11562_v50 = vld [vmem:[%s959_s1 + $0x20] sm:$0xff] }
 0x31c   : > { %v5434_v35 = vpop.f32.mrf.mxu2  ;;  %v10220_v54 = vor.u32 %v11439_v28, %v10217_v38  ;;  %v11495_v38 = vld [vmem:[%s13091_s30 + $0x304] sm:$0xf] }
 0x31d   : > { %v5477_v47 = vmax.f32 %v5472_v59, 0.0  ;;  %v11518_v59 = vld [vmem:[%s13091_s30 + $0x3b4] sm:$0xf0]  ;;  %v11493_v35 = vld [vmem:[%s13091_s30 + $0x2f4] sm:$0xf] }
 0x31e   : > { %6395 = vmatpush.bf16.msrb.mxu2 %v10506_v0  ;;  %v10570_v2 = vor.u32 %v11518_v59, %v10569_v26  ;;  %v10478_v10 = vor.u32 %v11493_v35, %v10475_v45  ;;  %v10561_v0 = vld [vmem:[%s13091_s30 + $0x3a0] sm:$0xf] }
 0x31f   : > { %v5480_v53 = vmax.f32 %v13186_v17, %v5477_v47  ;;  %v10489_v17 = vld [vmem:[%s13091_s30 + $0x310] sm:$0xf]  ;;  %v10284_v47 = vor.u32 %v11455_v40, %v10281_v24  ;;  %v10483_v40 = vld [vmem:[%s13091_s30 + $0x308] sm:$0xf0]  ;;  %v5484_v45 = vld [vmem:[%s946_s29] sm:$0x3]  ;;  %s976_s29 = scalar_lea.vmem %s13575_s15, %s13600_s28 }
 0x320   : > { %v10490_v41 = vor.u32 %v11498_v8, %v10489_v17  ;;  %v10462_v17 = vor.u32 %v11489_v1, %v10459_v48  ;;  %v10545_v8 = vld [vmem:[%s13091_s30 + $0x380] sm:$0xf]  ;;  %v10486_v24 = vor.u32 %v11495_v38, %v10483_v40  ;;  %v11525_v1 = vld [vmem:[%s13428_s2 + $0x30] sm:$0xff]  ;;  %v11538_v48 = vld [vmem:[%s13428_s2 + $0x98] sm:$0xff] }
 0x321   : > { %v13318_v57 = vpack.c.bf16 %v5480_v53, %v5480_v53  ;;  %v11516_v53 = vld [vmem:[%s13091_s30 + $0x3a4] sm:$0xf0]  ;;  %v11557_v38 = vld [vmem:[%s13428_s2 + $0x130] sm:$0xff] }
 0x322   : > { %6396 = vmatpush.bf16.msrb.mxu2 %v10498_v7  ;;  %v10554_v7 = vor.u32 %v11514_v9, %v10553_v56 }
 0x323   : > { %10171 = vmatmul.msk.bf16.vlgmr.msra.gmra.mxu0 %vm5730_vm3, %v13318_v57  ;;  %10172 = vmatmul.msk.bf16.vlgmr.msrb.gmra.mxu1 %vm5730_vm3, %v13318_v57 }
 0x324   : > { %6094 = vmatpush.bf16.msra.mxu0 %v10276_v55  ;;  %6107 = vmatpush.bf16.msrb.mxu1 %v10340_v49  ;;  %v10562_v55 = vor.u32 %v11516_v53, %v10561_v0  ;;  %v10470_v49 = vor.u32 %v11491_v16, %v10467_v31 }
 0x325   : > { %10374 = vmatmul.msk.bf16.vlgmr.msra.gmra.mxu2 %vm5730_vm3, %v13318_v57  ;;  %10576 = vmatmul.msk.bf16.vlgmr.msrb.gmra.mxu3 %vm5730_vm3, %v13318_v57 }
 0x326   : > { %6397 = vmatpush.bf16.msrb.mxu2 %v10490_v41 }
 0x328   : > { %6095 = vmatpush.bf16.msra.mxu0 %v10268_v46  ;;  %6108 = vmatpush.bf16.msrb.mxu1 %v10332_v12  ;;  %v11512_v46 = vld [vmem:[%s13091_s30 + $0x384] sm:$0xf0]  ;;  %v11487_v12 = vld [vmem:[%s13091_s30 + $0x2c4] sm:$0xf] }
 0x329   : > { %v10546_v25 = vor.u32 %v11512_v46, %v10545_v8  ;;  %v10454_v41 = vor.u32 %v11487_v12, %v10451_v42  ;;  %v11524_v8 = vld [vmem:[%s13428_s2 + $0x28] sm:$0xff]  ;;  %v11537_v46 = vld [vmem:[%s13428_s2 + $0x90] sm:$0xff]  ;;  %v11523_v12 = vld [vmem:[%s13428_s2 + $0x20] sm:$0xff] }
 0x32a   : > { %6398 = vmatpush.bf16.msrb.mxu2 %v10482_v60  ;;  %v10435_v60 = vld [vmem:[%s13091_s30 + $0x2a8] sm:$0xf0] }
 0x32b   : > { %v10438_v6 = vor.u32 %v11483_v20, %v10435_v60  ;;  %v11536_v42 = vld [vmem:[%s13428_s2 + $0x88] sm:$0xff] }
 0x32c   : > { %6096 = vmatpush.bf16.msra.mxu0 %v10260_v52  ;;  %6109 = vmatpush.bf16.msrb.mxu1 %v10324_v4  ;;  %v10443_v52 = vld [vmem:[%s13091_s30 + $0x2b8] sm:$0xf0]  ;;  %v11507_v4 = vld [vmem:[%s13091_s30 + $0x364] sm:$0xf] }
 0x32d   : > { %v10446_v51 = vor.u32 %v11485_v14, %v10443_v52  ;;  %v10534_v19 = vor.u32 %v11507_v4, %v10531_v62  ;;  %v11535_v14 = vld [vmem:[%s13428_s2 + $0x80] sm:$0xff]  ;;  %v13442_v52 = vperm.slane %v5484_v45, 1  ;;  %v11521_v62 = vld [vmem:[%s13428_s2 + $0x10] sm:$0xff] }
 0x330   : > { %6097 = vmatpush.bf16.msra.mxu0 %v10252_v21  ;;  %6110 = vmatpush.bf16.msrb.mxu1 %v10316_v29  ;;  %v11505_v21 = vld [vmem:[%s13091_s30 + $0x354] sm:$0xf]  ;;  %v10523_v29 = vld [vmem:[%s13091_s30 + $0x358] sm:$0xf0] }
 0x331   : > { %v10526_v23 = vor.u32 %v11505_v21, %v10523_v29 }
 0x333   : > { %5794 = vmatmul.bf16.vlgmr.msrb.gmra.mxu0 %v13265_v33  ;;  %10373 = vmatmul.msk.bf16.vlgmr.msra.gmra.mxu1 %vm5730_vm3, %v13318_v57 }
 0x334   : > { %6098 = vmatpush.bf16.msra.mxu0 %v10244_v58  ;;  %6111 = vmatpush.bf16.msrb.mxu1 %v10308_v44  ;;  %v11503_v58 = vld [vmem:[%s13091_s30 + $0x344] sm:$0xf]  ;;  %v10515_v44 = vld [vmem:[%s13091_s30 + $0x348] sm:$0xf0] }
 0x335   : > { %6399 = vmatmul.bf16.vlgmr.msrb.gmra.mxu2 %v13265_v33  ;;  %v10518_v27 = vor.u32 %v11503_v58, %v10515_v44  ;;  %v11520_v58 = vld [vmem:[%s13428_s2 + $0x8] sm:$0xff]  ;;  %v11533_v44 = vld [vmem:[%s13428_s2 + $0x70] sm:$0xff] }
 0x338   : > { %6099 = vmatpush.bf16.msra.mxu0 %v10236_v3  ;;  %6112 = vmatpush.bf16.msrb.mxu1 %v10300_v32  ;;  %v11501_v3 = vld [vmem:[%s13091_s30 + $0x334] sm:$0xf]  ;;  %v10507_v32 = vld [vmem:[%s13091_s30 + $0x338] sm:$0xf0] }
 0x339   : > { %v10510_v43 = vor.u32 %v11501_v3, %v10507_v32  ;;  %v11519_v32 = vld [vmem:[%s13428_s2] sm:$0xff] }
 0x33c   : > { %6100 = vmatpush.bf16.msra.mxu0 %v10228_v34  ;;  %6113 = vmatpush.bf16.msrb.mxu1 %v10292_v18  ;;  %v11497_v34 = vld [vmem:[%s13091_s30 + $0x314] sm:$0xf]  ;;  %v10491_v18 = vld [vmem:[%s13091_s30 + $0x318] sm:$0xf0] }
 0x33d   : > { %v10494_v28 = vor.u32 %v11497_v34, %v10491_v18  ;;  %v11529_v34 = vld [vmem:[%s13428_s2 + $0x50] sm:$0xff]  ;;  %v11528_v18 = vld [vmem:[%s13428_s2 + $0x48] sm:$0xff] }
 0x340   : > { %6101 = vmatpush.bf16.msra.mxu0 %v10220_v54  ;;  %6114 = vmatpush.bf16.msrb.mxu1 %v10284_v47  ;;  %v13415_v54 = vperm.slane %v5484_v45, 0  ;;  %v11543_v45 = vld [vmem:[%s13428_s2 + $0xc0] sm:$0xff] }
 0x343   : > { %6102 = vmatmul.bf16.vlgmr.msra.gmra.mxu0 %v13225_v5  ;;  %6115 = vmatmul.bf16.vlgmr.msrb.gmra.mxu1 %v13265_v33 }
 0x344   : > { %6408 = vmatpush.bf16.msrb.mxu0 %v10570_v2  ;;  %6417 = vmatpush.bf16.msra.mxu1 %v10478_v10 }
 0x348   : > { %6409 = vmatpush.bf16.msrb.mxu0 %v10562_v55  ;;  %6418 = vmatpush.bf16.msra.mxu1 %v10470_v49  ;;  %v11526_v55 = vld [vmem:[%s13428_s2 + $0x38] sm:$0xff]  ;;  %v11539_v49 = vld [vmem:[%s13428_s2 + $0xa0] sm:$0xff] }
 0x349   : > { %6574 = vmatpush.bf16.msra.mxu2 %v11526_v55  ;;  %v11542_v55 = vld [vmem:[%s13428_s2 + $0xb8] sm:$0xff] }
 0x34c   : > { %6410 = vmatpush.bf16.msrb.mxu0 %v10554_v7  ;;  %6419 = vmatpush.bf16.msra.mxu1 %v10462_v17 }
 0x34d   : > { %6575 = vmatpush.bf16.msra.mxu2 %v11525_v1  ;;  %v11541_v1 = vld [vmem:[%s13428_s2 + $0xb0] sm:$0xff] }
 0x350   : > { %6411 = vmatpush.bf16.msrb.mxu0 %v10546_v25  ;;  %6420 = vmatpush.bf16.msra.mxu1 %v10454_v41 }
 0x351   : > { %6576 = vmatpush.bf16.msra.mxu2 %v11524_v8 }
 0x353   : > { %10575 = vmatmul.msk.bf16.vlgmr.msrb.gmra.mxu0 %vm5730_vm3, %v13318_v57  ;;  %v11499_v57 = vld [vmem:[%s13091_s30 + $0x324] sm:$0xf] }
 0x354   : > { %6430 = vmatpush.bf16.msra.mxu0 %v10542_v15  ;;  %6421 = vmatpush.bf16.msra.mxu1 %v10446_v51  ;;  %v10502_v39 = vor.u32 %v11499_v57, %v10499_v37  ;;  %v11522_v15 = vld [vmem:[%s13428_s2 + $0x18] sm:$0xff] }
 0x355   : > { %6577 = vmatpush.bf16.msra.mxu2 %v11523_v12  ;;  %v11534_v51 = vld [vmem:[%s13428_s2 + $0x78] sm:$0xff]  ;;  %v11540_v12 = vld [vmem:[%s13428_s2 + $0xa8] sm:$0xff] }
 0x356   : > { %v11530_v57 = vld [vmem:[%s13428_s2 + $0x58] sm:$0xff] }
 0x357   : > { %6591 = vmatpush.bf16.msra.mxu3 %v11530_v57  ;;  %v11558_v57 = vld [vmem:[%s959_s1] sm:$0xff] }
 0x358   : > { %6431 = vmatpush.bf16.msra.mxu0 %v10534_v19  ;;  %6422 = vmatpush.bf16.msra.mxu1 %v10438_v6 }
 0x359   : > { %6578 = vmatpush.bf16.msra.mxu2 %v11522_v15  ;;  %v11548_v15 = vld [vmem:[%s13428_s2 + $0xe8] sm:$0xff] }
 0x35b   : > { %6592 = vmatpush.bf16.msra.mxu3 %v11529_v34 }
 0x35c   : > { %6432 = vmatpush.bf16.msra.mxu0 %v10526_v23  ;;  %6423 = vmatpush.bf16.msra.mxu1 %v10430_v61 }
 0x35d   : > { %6579 = vmatpush.bf16.msra.mxu2 %v11521_v62  ;;  %v11546_v62 = vld [vmem:[%s13428_s2 + $0xd8] sm:$0xff] }
 0x35f   : > { %6593 = vmatpush.bf16.msra.mxu3 %v11528_v18  ;;  %v7007_v18 = vld [vmem:[%s973_s0] sm:$0x1]  ;;  %s989_s0 = scalar_lea.vmem %s13578_s18, %s13489_s6 }
 0x360   : > { %6433 = vmatpush.bf16.msra.mxu0 %v10518_v27  ;;  %6424 = vmatpush.bf16.msra.mxu1 %v10422_v22  ;;  %v11532_v22 = vld [vmem:[%s13428_s2 + $0x68] sm:$0xff] }
 0x361   : > { %6580 = vmatpush.bf16.msra.mxu2 %v11520_v58 }
 0x363   : > { %6425 = vmatmul.bf16.vlgmr.msra.gmra.mxu1 %v13225_v5 }
 0x364   : > { %6434 = vmatpush.bf16.msra.mxu0 %v10510_v43  ;;  %v5743_v26 = vpop.f32.mrf.mxu1  ;;  %6706 = vmatpush.bf16.msrb.mxu1 %v11539_v49  ;;  %v11551_v49 = vld [vmem:[%s13428_s2 + $0x100] sm:$0xff] }
 0x365   : > { %v5744_v47 = vadd.f32 %v5743_v26, %v13415_v54  ;;  %6581 = vmatpush.bf16.msra.mxu2 %v11519_v32 }
 0x368   : > { %6435 = vmatpush.bf16.msra.mxu0 %v10502_v39  ;;  %6707 = vmatpush.bf16.msrb.mxu1 %v11538_v48  ;;  %v11550_v48 = vld [vmem:[%s13428_s2 + $0xf8] sm:$0xff] }
 0x369   : > { %6855 = vmatpush.bf16.msrb.mxu2 %v11557_v38  ;;  %v7018_v38 = vsel %vm6961_vm5, %v7007_v18, 0 }
 0x36a   : > { %v5782_v59 = vpop.f32.mrf.mxu3 }
 0x36b   : > { %v5783_v19 = vadd.f32 %v5782_v59, %v13442_v52 }
 0x36c   : > { %6436 = vmatpush.bf16.msra.mxu0 %v10494_v28  ;;  %v5745_v35 = vpop.f32.mrf.mxu1  ;;  %6708 = vmatpush.bf16.msrb.mxu1 %v11537_v46  ;;  %v11544_v28 = vld [vmem:[%s13428_s2 + $0xc8] sm:$0xff] }
 0x370   : > { %6437 = vmatpush.bf16.msra.mxu0 %v10486_v24  ;;  %6709 = vmatpush.bf16.msrb.mxu1 %v11536_v42  ;;  %v11549_v42 = vld [vmem:[%s13428_s2 + $0xf0] sm:$0xff] }
 0x372   : > { %v5784_v5 = vpop.f32.mrf.mxu3 }
 0x373   : > { %6438 = vmatmul.bf16.vlgmr.msra.gmra.mxu0 %v13265_v33  ;;  %v11527_v5 = vld [vmem:[%s13428_s2 + $0x40] sm:$0xff] }
 0x374   : > { %6710 = vmatpush.bf16.msrb.mxu1 %v11535_v14  ;;  %6722 = vmatpush.bf16.msrb.mxu0 %v11544_v28  ;;  %v6955_v28 = vld [vmem:[%s970_s4] sm:$0x1] }
 0x375   : > { %6594 = vmatpush.bf16.msra.mxu3 %v11527_v5  ;;  %v11587_v5 = vld [vmem:[%s954_s24] ss:$0 sm:$0xff]  ;;  %s997_s24 = scalar_lea.vmem %s13580_s20, %s13489_s6 }
 0x378   : > { %6711 = vmatpush.bf16.msrb.mxu1 %v11534_v51  ;;  %6723 = vmatpush.bf16.msrb.mxu0 %v11543_v45 }
 0x37c   : > { %6712 = vmatpush.bf16.msrb.mxu1 %v11533_v44  ;;  %6724 = vmatpush.bf16.msrb.mxu0 %v11542_v55 }
 0x380   : > { %v5756_v2 = vpop.f32.mrf.mxu2  ;;  %v6077_v10 = vpop.f32.mrf.mxu3  ;;  %6713 = vmatpush.bf16.msrb.mxu1 %v11532_v22  ;;  %6725 = vmatpush.bf16.msrb.mxu0 %v11541_v1  ;;  %v11560_v22 = vld [vmem:[%s959_s1 + $0x10] sm:$0xff] }
 0x381   : > { %v5757_v0 = vadd.f32 %v5756_v2, %v5744_v47  ;;  %v11552_v47 = vld [vmem:[%s13428_s2 + $0x108] sm:$0xff] }
 0x382   : > { %v11556_v2 = vld [vmem:[%s13428_s2 + $0x128] sm:$0xff]  ;;  %6839 = vmatpush.bf16.msrb.mxu3 %v11552_v47 }
 0x383   : > { %6856 = vmatpush.bf16.msrb.mxu2 %v11556_v2 }
 0x384   : > { %6726 = vmatpush.bf16.msrb.mxu0 %v11540_v12  ;;  %v1007_v12 = vld [vmem:[%s13597_s27] sm:$0x3]  ;;  %s981_s27 = scalar_lea.vmem %s13576_s16, %s13489_s6 }
 0x386   : > { %6840 = vmatpush.bf16.msrb.mxu3 %v11551_v49 }
 0x388   : > { %v5758_v33 = vpop.f32.mrf.mxu2  ;;  %v6079_v53 = vpop.f32.mrf.mxu3 }
 0x38a   : > { %6841 = vmatpush.bf16.msrb.mxu3 %v11550_v48 }
 0x38e   : > { %6842 = vmatpush.bf16.msrb.mxu3 %v11549_v42  ;;  %v6956_v42 = vpack.c.bf16 %v1007_v12, %v1007_v12 }
 0x390   : > { %v6064_v16 = vpop.f32.mrf.mxu2  ;;  %v13423_v31 = vpop.f32.mrf.mxu3 }
 0x391   : > { %v6065_v4 = vadd.f32 %v6064_v16, %v13415_v54 }
 0x392   : > { %6843 = vmatpush.bf16.msrb.mxu3 %v11548_v15 }
 0x393   : > { %v6078_v29 = vadd.f32 %v6077_v10, %v6065_v4 }
 0x398   : > { %v6066_v56 = vpop.f32.mrf.mxu2  ;;  %v6389_v9 = vpop.f32.mrf.mxu3 }
 0x399   : > { %v11555_v56 = vld [vmem:[%s13428_s2 + $0x120] sm:$0xff] }
 0x39a   : > { %6857 = vmatpush.bf16.msrb.mxu2 %v11555_v56 }
 0x3a0   : > { %v5769_v7 = vpop.f32.mrf.mxu0  ;;  %v5808_v17 = vpop.f32.mrf.mxu1 }
 0x3a1   : > { %v5770_v20 = vadd.f32 %v5769_v7, %v5757_v0  ;;  %v11554_v7 = vld [vmem:[%s13428_s2 + $0x118] sm:$0xff] }
 0x3a2   : > { %6858 = vmatpush.bf16.msrb.mxu2 %v11554_v7 }
 0x3a3   : > { %v5812_v61 = vmax.f32 %v5770_v20, 0.0 }
 0x3a8   : > { %v6129_v63 = vpop.f32.mrf.mxu2  ;;  %v13438_v11 = vpop.f32.mrf.mxu3 }
 0x3a9   : > { %v5771_v25 = vpop.f32.mrf.mxu0  ;;  %v5810_v41 = vpop.f32.mrf.mxu1 }
 0x3b0   : > { %v6131_v60 = vpop.f32.mrf.mxu2  ;;  %v6454_v21 = vpop.f32.mrf.mxu3 }
 0x3b1   : > { %v5795_v6 = vpop.f32.mrf.mxu0  ;;  %v6090_v23 = vpop.f32.mrf.mxu1 }
 0x3b2   : > { %v5796_v36 = vadd.f32 %v5795_v6, %v5783_v19  ;;  %v6091_v13 = vadd.f32 %v6090_v23, %v6078_v29  ;;  %v11545_v19 = vld [vmem:[%s13428_s2 + $0xd0] sm:$0xff] }
 0x3b4   : > { %v5809_v27 = vadd.f32 %v5808_v17, %v5796_v36  ;;  %v6133_v30 = vmax.f32 %v6091_v13, 0.0  ;;  %v6388_v17 = vadd.f32 %v13423_v31, %v13415_v54  ;;  %v11547_v54 = vld [vmem:[%s13428_s2 + $0xe0] sm:$0xff] }
 0x3b5   : > { %6844 = vmatpush.bf16.msrb.mxu3 %v11547_v54 }
 0x3b6   : > { %v6135_v3 = vmax.f32 %v5812_v61, %v6133_v30  ;;  %v5813_v0 = vmax.f32 %v5809_v27, 0.0  ;;  %v11564_v61 = vld [vmem:[%s959_s1 + $0x30] sm:$0xff] }
 0x3b8   : > { %v6400_v43 = vpop.f32.mrf.mxu2 }
 0x3b9   : > { %v5797_v37 = vpop.f32.mrf.mxu0  ;;  %v6092_v39 = vpop.f32.mrf.mxu1  ;;  %v6401_v8 = vadd.f32 %v6400_v43, %v6388_v17  ;;  %6845 = vmatpush.bf16.msrb.mxu3 %v11546_v62  ;;  %v11559_v43 = vld [vmem:[%s959_s1 + $0x8] sm:$0xff] }
 0x3ba   : > { %v7009_v39 = vld.sshfl [vmem:[#allocation1 + $0x10] sm:$0xff pattern:$0x73625140] }
 0x3bd   : > { %6846 = vmatpush.bf16.msrb.mxu3 %v11545_v19 }
 0x3c0   : > { %v6402_v40 = vpop.f32.mrf.mxu2 }
 0x3c1   : > { %v6103_v24 = vpop.f32.mrf.mxu0  ;;  %v6116_v26 = vpop.f32.mrf.mxu1  ;;  %v6963_v40 = vsel %vm6961_vm5, %v6955_v28, 0 }
 0x3c2   : > { %v6104_v59 = vadd.f32 %v6103_v24, %v13442_v52  ;;  %6972 = vmatpush.bf16.msra.mxu1 %v6963_v40 }
 0x3c4   : > { %v6117_v35 = vadd.f32 %v6116_v26, %v6104_v59 }
 0x3c6   : > { %v6130_v10 = vadd.f32 %v6129_v63, %v6117_v35  ;;  %v11553_v63 = vld [vmem:[%s13428_s2 + $0x110] sm:$0xff]  ;;  %s13495_s2 = scalar_lea.vmem %s13572_s12, %s13489_s6  ;;  %s13598_s6 = sshll.u32 %s13600_s28, 1 }
 0x3c7   : > { %6859 = vmatpush.bf16.msrb.mxu2 %v11553_v63  ;;  %v11567_v34 = vld [vmem:[%s13495_s2 + $0x8] sm:$0xff]  ;;  %v11566_v17 = vld [vmem:[%s13495_s2] sm:$0xff]  ;;  %s992_s2 = scalar_lea.vmem %s13579_s19, %s13600_s28 }
 0x3c8   : > { %v6134_v33 = vmax.f32 %v6130_v10, 0.0  ;;  %v11588_v63 = vld [vmem:[%s962_s5] ss:$0 sm:$0xff]  ;;  %s1000_s5 = scalar_lea.vmem %s13581_s21, %s13600_s28 }
 0x3c9   : > { %v6105_v53 = vpop.f32.mrf.mxu0  ;;  %v6118_v16 = vpop.f32.mrf.mxu1  ;;  %v11592_v28 = vld [vmem:[%s1000_s5] ss:$0 sm:$0xff] }
 0x3ca   : > { %v6136_v9 = vmax.f32 %v5813_v0, %v6134_v33 }
 0x3d1   : > { %v6413_v46 = vpop.f32.mrf.mxu0 }
 0x3d2   : > { %v6414_v25 = vadd.f32 %v6413_v46, %v6401_v8 }
 0x3d4   : > { %v6456_v41 = vmax.f32 %v6414_v25, 0.0 }
 0x3d6   : > { %v6458_v14 = vmax.f32 %v6135_v3, %v6456_v41  ;;  %v11561_v3 = vld [vmem:[%s959_s1 + $0x18] sm:$0xff] }
 0x3d8   : > { %v6460_v31 = vpack.c.bf16 %v6458_v14, %v6458_v14 }
 0x3d9   : > { %v6415_v4 = vpop.f32.mrf.mxu0 }
 0x3da   : > { %6582 = vmatmul.bf16.vlgmr.msra.gmra.mxu2 %v6460_v31  ;;  %6714 = vmatmul.bf16.vlgmr.msrb.gmra.mxu1 %v6460_v31 }
 0x3db   : > { %7000 = vmatpush.bf16.msra.mxu2 %v11567_v34 }
 0x3df   : > { %7001 = vmatpush.bf16.msra.mxu2 %v11566_v17 }
 0x3e0   : > { %v6426_v51 = vpop.f32.mrf.mxu1 }
 0x3e1   : > { %v6427_v60 = vadd.f32 %v6426_v51, %v13442_v52  ;;  %v11565_v52 = vld [vmem:[%s959_s1 + $0x38] sm:$0xff] }
 0x3e2   : > { %6936 = vmatpush.bf16.msra.mxu0 %v11565_v52 }
 0x3e6   : > { %6937 = vmatpush.bf16.msra.mxu0 %v11564_v61  ;;  %v11573_v61 = vld [vmem:[%s997_s24 + $0x8] sm:$0xff] }
 0x3e8   : > { %v6428_v20 = vpop.f32.mrf.mxu1 }
 0x3e9   : > { %v11568_v20 = vld [vmem:[%s981_s27] sm:$0xff] }
 0x3ea   : > { %10820 = vmatmul.msk.bf16.vlgmr.msra.gmra.mxu1 %vm6957_vm6, %v6956_v42 }
 0x3f0   : > { %v6439_v21 = vpop.f32.mrf.mxu0 }
 0x3f1   : > { %v6440_v29 = vadd.f32 %v6439_v21, %v6427_v60  ;;  %v11571_v60 = vld [vmem:[%s989_s0 + $0x8] sm:$0xff]  ;;  %v11570_v21 = vld [vmem:[%s989_s0] sm:$0xff]  ;;  %s1004_s0 = scalar_lea.vmem %s13582_s22, %s13598_s6 }
 0x3f3   : > { %v6453_v6 = vadd.f32 %v13438_v11, %v6440_v29  ;;  %v11563_v11 = vld [vmem:[%s959_s1 + $0x28] sm:$0xff]  ;;  %s11601_s1 = smov 24  }
 0x3f4   : > { %6938 = vmatpush.bf16.msra.mxu0 %v11563_v11  ;;  %7010 = vrot.lane.b32.xlu0 %v7009_v39, %s11601_s1  ;;  %v11572_v11 = vld [vmem:[%s997_s24] sm:$0xff] }
 0x3f5   : > { %v6457_v23 = vmax.f32 %v6453_v6, 0.0 }
 0x3f7   : > { %v6459_v36 = vmax.f32 %v6136_v9, %v6457_v23  ;;  %v11589_v23 = vld [vmem:[%s976_s29] ss:$0 sm:$0xff] }
 0x3f8   : > { %v6441_v13 = vpop.f32.mrf.mxu0  ;;  %6939 = vmatpush.bf16.msra.mxu0 %v11562_v50 }
 0x3f9   : > { %v6461_v58 = vpack.c.bf16 %v6459_v36, %v6459_v36 }
 0x3fb   : > { %10629 = vmatmul.msk.bf16.vlgmr.msra.gmra.mxu3 %vm6570_vm4, %v6461_v58  ;;  %10708 = vmatmul.msk.bf16.vlgmr.msrb.gmra.mxu0 %vm6570_vm4, %v6461_v58 }
 0x3fc   : > { %10787 = vmatmul.msk.bf16.vlgmr.msrb.gmra.mxu2 %vm6570_vm4, %v6461_v58  ;;  %6940 = vmatpush.bf16.msra.mxu0 %v11561_v3 }
 0x3fd   : > { %7027 = vmatpush.bf16.msra.mxu3 %v7018_v38  ;;  %7108 = vmatpush.bf16.msrb.mxu2 %v11571_v60 }
 0x400   : > { %6941 = vmatpush.bf16.msra.mxu0 %v11560_v22 }
 0x401   : > { %7109 = vmatpush.bf16.msrb.mxu2 %v11570_v21 }
 0x404   : > { %6942 = vmatpush.bf16.msra.mxu0 %v11559_v43  ;;  %v11591_v43 = vld [vmem:[%s992_s2] ss:$0 sm:$0xff] }
 0x408   : > { %6943 = vmatpush.bf16.msra.mxu0 %v11558_v57 }
 0x40b   : > { %6847 = vmatmul.bf16.vlgmr.msrb.gmra.mxu3 %v6460_v31  ;;  %v11569_v31 = vld [vmem:[%s981_s27 + $0x8] sm:$0xff] }
 0x40c   : > { %7070 = vmatpush.bf16.msrb.mxu1 %v11569_v31  ;;  %7146 = vmatpush.bf16.msrb.mxu0 %v11573_v61 }
 0x410   : > { %7071 = vmatpush.bf16.msrb.mxu1 %v11568_v20  ;;  %7147 = vmatpush.bf16.msrb.mxu0 %v11572_v11 }
 0x457   : > { %v6715_v44 = vpop.f32.mrf.mxu1 }
 0x458   : > { %v6716_v2 = vadd.f32 %v11587_v5, %v6715_v44 }
 0x45d   : > { %v6583_v27 = vpop.f32.mrf.mxu2 }
 0x45e   : > { %v6584_v47 = vadd.f32 %v11587_v5, %v6583_v27  ;;  %v11590_v27 = vld [vmem:[%s984_s26] ss:$0 sm:$0xff] }
 0x45f   : > { %v6717_v30 = vpop.f32.mrf.mxu1 }
 0x465   : > { %v6585_v32 = vpop.f32.mrf.mxu2 }
 0x466   : > { %v7011_v8 = vpop.permute.xlu0 %7010 }
 0x467   : > { %v7013_v46 = vpack.c.bf16 %v7011_v8, %v7011_v8  ;;  %v6974_v4 = vpop.f32.mrf.mxu1 }
 0x469   : > { %10830 = vmatmul.msk.bf16.vlgmr.msra.gmra.mxu3 %vm6957_vm6, %v7013_v46 }
 0x46f   : > { %v6976_v51 = vpop.f32.mrf.mxu1 }
 0x478   : > { %v6728_v37 = vpop.f32.mrf.mxu0 }
 0x479   : > { %v6729_v0 = vadd.f32 %v6728_v37, %v6716_v2 }
 0x47b   : > { %v6732_v55 = vmax.f32 %v6729_v0, 0.0 }
 0x47e   : > { %v6596_v24 = vpop.f32.mrf.mxu3 }
 0x47f   : > { %v6861_v26 = vpop.f32.mrf.mxu2  ;;  %v6597_v10 = vadd.f32 %v6596_v24, %v6584_v47 }
 0x480   : > { %v6730_v59 = vpop.f32.mrf.mxu0 }
 0x481   : > { %v6600_v53 = vmax.f32 %v6597_v10, 0.0 }
 0x483   : > { %v6733_v56 = vmax.f32 %v6600_v53, %v6732_v55 }
 0x486   : > { %v6598_v35 = vpop.f32.mrf.mxu3 }
 0x487   : > { %v6863_v45 = vpop.f32.mrf.mxu2 }
 0x48e   : > { %v6848_v33 = vpop.f32.mrf.mxu3 }
 0x48f   : > { %v6849_v16 = vadd.f32 %v11587_v5, %v6848_v33 }
 0x491   : > { %v6862_v49 = vadd.f32 %v6861_v26, %v6849_v16 }
 0x493   : > { %v6865_v9 = vmax.f32 %v6862_v49, 0.0 }
 0x495   : > { %v6866_v1 = vmax.f32 %v6733_v56, %v6865_v9 }
 0x496   : > { %v6850_v48 = vpop.f32.mrf.mxu3 }
 0x497   : > { %v6883_v7 = vpack.c.bf16 %v6866_v1, %v6866_v1 }
 0x499   : > { %6944 = vmatmul.bf16.vlgmr.msra.gmra.mxu0 %v6883_v7 }
 0x4ec   : > { %v7029_v62 = vpop.f32.mrf.mxu3 }
 0x4f4   : > { %v7031_v19 = vpop.f32.mrf.mxu3 }
 0x516   : > { %v6945_v25 = vpop.f32.mrf.mxu0 }
 0x517   : > { %v6946_v41 = vadd.f32 %v11588_v63, %v6945_v25 }
 0x519   : > { %v6949_v15 = vmax.f32 %v6946_v41, 0.0 }
 0x51b   : > { %v6954_v14 = vpack.c.bf16 %v6949_v15, %v6949_v15 }
 0x51d   : > { %10829 = vmatmul.msk.bf16.vlgmr.msra.gmra.mxu2 %vm6990_vm7, %v6954_v14 }
 0x51e   : > { %v6947_v54 = vpop.f32.mrf.mxu0 }
 0x5a0   : > { %v7003_v29 = vpop.f32.mrf.mxu2 }
 0x5a1   : > { %v7004_v6 = vadd.f32 %v7003_v29, %v6974_v4 }
 0x5a3   : > { %v7033_v36 = vadd.f32 %v7029_v62, %v7004_v6 }
 0x5a5   : > { %v7038_v13 = vadd.f32 %v11589_v23, %v7033_v36 }
 0x5a7   : > { %v7039_v58 = vmax.f32 %v7038_v13, 0.0 }
 0x5a8   : > { %v7005_v52 = vpop.f32.mrf.mxu2 }
 0x5a9   : > { %v7044_v44 = vpack.c.bf16 %v7039_v58, %v7039_v58 }
 0x5ab   : > { %10839 = vmatmul.msk.bf16.vlgmr.msrb.gmra.mxu1 %vm6990_vm7, %v7044_v44 }
 0x628   : > { %v7073_v30 = vpop.f32.mrf.mxu1 }
 0x629   : > { %v7074_v50 = vadd.f32 %v11590_v27, %v7073_v30 }
 0x62b   : > { %v7077_v3 = vmax.f32 %v7074_v50, 0.0 }
 0x62d   : > { %v7082_v32 = vpack.c.bf16 %v7077_v3, %v7077_v3 }
 0x62f   : > { %10848 = vmatmul.msk.bf16.vlgmr.msrb.gmra.mxu2 %vm6990_vm7, %v7082_v32 }
 0x630   : > { %v7075_v22 = vpop.f32.mrf.mxu1 }
 0x6b2   : > { %v7111_v57 = vpop.f32.mrf.mxu2 }
 0x6b3   : > { %v7112_v37 = vadd.f32 %v11591_v43, %v7111_v57 }
 0x6b5   : > { %v7115_v39 = vmax.f32 %v7112_v37, 0.0 }
 0x6b7   : > { %v7120_v34 = vpack.c.bf16 %v7115_v39, %v7115_v39 }
 0x6b9   : > { %10857 = vmatmul.msk.bf16.vlgmr.msrb.gmra.mxu0 %vm6990_vm7, %v7120_v34 }
 0x6ba   : > { %v7113_v18 = vpop.f32.mrf.mxu2 }
 0x736   : > { %v7149_v38 = vpop.f32.mrf.mxu0 }
 0x737   : > { %v7150_v40 = vadd.f32 %v11592_v28, %v7149_v38 }
 0x739   : > { %7154 = vst.msk [vmem:[%s1004_s0] sm:$0x3] %vm7153_vm8, %v7150_v40 }
 0x73e   : > { %v7151_v24 = vpop.f32.mrf.mxu0 }
 0x73f PF: > { %s32_s3 = sadd.s32 1, %s11599_s3  }
 0x740   : > { %p29_p4 = scmp.ge.s32.totalorder %s32_s3, 4  }
 0x742   :  { %31 = sbr.rel (!%p29_p4) target bundleno = 8 (0x8), region = 203 }

</bundles_post_ra>
